<compile_context>
chip_gen: v5e
topology: v5e:2x2
jax: 0.10.0
libtpu: 0.0.40
codegen_flags: <defaults>
</compile_context>

<pallas_src>
import functools

import numpy as np
import jax
import jax.numpy as jnp
from jax import lax
from jax.experimental import pallas as pl
from jax.experimental.pallas import tpu as pltpu

EPS = 1e-5


def _vmem_limit_bytes():
    """~90% of physical VMEM, capped at 110 MiB (v5e/v6e: 128 MiB, v7x: 64 MiB)."""
    try:
        cap = int(pltpu.get_tpu_info().vmem_capacity_bytes)
    except Exception:
        cap = 0
    if cap < 32 * 1024 * 1024:
        cap = 64 * 1024 * 1024
    return int(min(cap * 9 // 10, 110 * 1024 * 1024))


def vit_pair_kernel(x_ref, bidr_ref, bidc_ref, cos_ref, sin_ref,
                    anw_ref, wqkv_ref, wo_ref, fnw_ref, w13_ref, w2_ref,
                    o_ref, xn_ref, acc_ref, *, head_dim, d_ff):
    """Grid step == (layer, head_pair).  o_ref carries the residual stream."""
    layer = pl.program_id(0)
    pair = pl.program_id(1)
    n_pairs = pl.num_programs(1)
    hd = head_dim
    hd2 = hd // 2

    def rmsnorm(v, w):
        var = jnp.mean(v * v, axis=-1, keepdims=True)
        return v * lax.rsqrt(var + EPS) * w

    # Seed the carried residual (resident output block) with the input once.
    @pl.when((layer == 0) & (pair == 0))
    def _():
        o_ref[...] = x_ref[...].astype(o_ref.dtype)

    # Once per layer: attention pre-norm + init the attention accumulator with
    # the residual (so acc ends the layer holding x + attn_out).
    @pl.when(pair == 0)
    def _():
        x = o_ref[...].astype(jnp.float32)
        xn_ref[...] = rmsnorm(x, anw_ref[...]).astype(jnp.bfloat16)
        acc_ref[...] = x

    # This pair's fused QKV projection: (S, D) @ (D, 6*hd) -> (S, 6*hd), f32 acc.
    qkv = jnp.dot(xn_ref[...], wqkv_ref[...], preferred_element_type=jnp.float32)
    q = qkv[:, :2 * hd]
    k = qkv[:, 2 * hd:4 * hd]
    v = qkv[:, 4 * hd:]

    # RoPE on the de-interleaved per-head [a | b] layout; rotate_half built from
    # static register slices (no VMEM scratch, no masked stores).
    def rotate_half(t):
        parts = []
        for j in range(2):                       # the two heads of this pair
            lo = j * hd
            parts.append(t[:, lo + hd2:lo + hd])
            parts.append(t[:, lo:lo + hd2])
        return jnp.concatenate(parts, axis=-1)

    cos_t = cos_ref[...]
    sin_t = sin_ref[...]                         # sign of sin already folded in
    qr = (q * cos_t + rotate_half(q) * sin_t).astype(jnp.bfloat16)
    kr = (k * cos_t + rotate_half(k) * sin_t).astype(jnp.bfloat16)
    vb = v.astype(jnp.bfloat16)

    # Block-diagonal (per-image) mask rebuilt on the fly from token block ids.
    same = bidr_ref[...] == bidc_ref[...]        # (S, S)

    # TODO(synk): replace with an online-softmax KV-tile loop at production S.
    outs = []
    for j in range(2):                           # two heads per grid step
        lo = j * hd
        s = lax.dot_general(qr[:, lo:lo + hd], kr[:, lo:lo + hd],
                            (((1,), (1,)), ((), ())),
                            preferred_element_type=jnp.float32)       # (S, S)
        s = jnp.where(same, s, -1e9)
        s = s - jnp.max(s, axis=-1, keepdims=True)
        e = jnp.exp(s)
        # approximate reciprocal (EUP slot); ~2^-12 rel. error, fine for inference
        pnorm = e * pl.reciprocal(jnp.sum(e, axis=-1, keepdims=True), approx=True)
        outs.append(jnp.dot(pnorm.astype(jnp.bfloat16), vb[:, lo:lo + hd],
                            preferred_element_type=jnp.float32))

    # Lane-dense pair output (2*hd wide, bf16) -> one K=2*hd partial of Wo,
    # accumulated into the f32 residual+attention accumulator.
    ao = jnp.concatenate(outs, axis=-1).astype(jnp.bfloat16)          # (S, 2*hd)
    acc_ref[...] += jnp.dot(ao, wo_ref[...], preferred_element_type=jnp.float32)

    # Once per layer, after the last pair: SwiGLU FFN + residual update.
    @pl.when(pair == n_pairs - 1)
    def _():
        h = acc_ref[...]                          # = x + attention output
        hn = rmsnorm(h, fnw_ref[...]).astype(jnp.bfloat16)
        gu = jnp.dot(hn, w13_ref[...], preferred_element_type=jnp.float32)  # (S, 2I)
        g = gu[:, :d_ff]
        u = gu[:, d_ff:]
        ff = jnp.dot((jax.nn.silu(g) * u).astype(jnp.bfloat16), w2_ref[...],
                     preferred_element_type=jnp.float32)
        o_ref[...] = (h + ff).astype(o_ref.dtype)


def vit_blocks_pallas(x, block_id, freqs_cos, freqs_sin, params, n_heads):
    S, D = x.shape
    H = n_heads
    Dh = D // H
    L = params["wq"].shape[0]
    I = params["w1"].shape[2]
    assert D % H == 0 and Dh % 2 == 0 and H % 2 == 0, \
        "kernel processes heads in pairs; needs even n_heads and even head_dim"
    # NOTE: at production scale keep S a multiple of 8, D/I multiples of 128 so
    # in-kernel slices stay on (8,128) tile boundaries.
    P = H // 2

    # --------- host-side weight prep (bf16 streaming, fusion, rope folding) ---------
    # de-interleave permutation inside each head: [0,2,4,..., 1,3,5,...]
    head_perm = np.concatenate([np.arange(0, Dh, 2), np.arange(1, Dh, 2)])
    perm = np.concatenate([h * Dh + head_perm for h in range(H)])
    wq_p = params["wq"][:, :, perm] * (Dh ** -0.5)      # fold attention scale into Wq
    wk_p = params["wk"][:, :, perm]

    def to_pairs(w):                                    # (L, D, D) -> (L, P, D, 2*Dh)
        return w.reshape(L, D, P, 2 * Dh).transpose(0, 2, 1, 3)

    wqkv = jnp.concatenate(
        [to_pairs(wq_p), to_pairs(wk_p), to_pairs(params["wv"])],
        axis=-1).astype(jnp.bfloat16)                   # (L, P, D, 6*Dh)
    wo_pairs = params["wo"].reshape(L, P, 2 * Dh, D).astype(jnp.bfloat16)
    w13 = jnp.concatenate([params["w1"], params["w3"]], axis=-1).astype(jnp.bfloat16)
    w2 = params["w2"].astype(jnp.bfloat16)
    anw = params["attn_norm"].astype(jnp.float32)       # (L, 1, D)
    fnw = params["ffn_norm"].astype(jnp.float32)

    # RoPE tables for one head pair in the de-interleaved [a|b] layout:
    #   rope(t) = t * cos + rotate_half(t) * sin,  rotate_half([a|b]) = [b|a]
    cos_h = jnp.concatenate([freqs_cos, freqs_cos], axis=-1)          # (S, Dh)
    sin_h = jnp.concatenate([-freqs_sin, freqs_sin], axis=-1)
    cos_p = jnp.tile(cos_h, (1, 2)).astype(jnp.float32)               # (S, 2*Dh)
    sin_p = jnp.tile(sin_h, (1, 2)).astype(jnp.float32)

    bid = jnp.asarray(block_id, jnp.float32)
    bid_row = bid.reshape(S, 1)
    bid_col = bid.reshape(1, S)

    xf = x.astype(jnp.float32)

    kern = functools.partial(vit_pair_kernel, head_dim=Dh, d_ff=I)
    fixed = lambda l, p: (0, 0)
    per_layer = lambda l, p: (l, 0, 0)
    per_pair = lambda l, p: (l, p, 0, 0)

    grid_spec = pltpu.PrefetchScalarGridSpec(
        num_scalar_prefetch=0,
        grid=(L, P),
        in_specs=[
            pl.BlockSpec((S, D), fixed),                     # x (residual seed)
            pl.BlockSpec((S, 1), fixed),                     # block ids (rows)
            pl.BlockSpec((1, S), fixed),                     # block ids (cols)
            pl.BlockSpec((S, 2 * Dh), fixed),                # rope cos (pair layout)
            pl.BlockSpec((S, 2 * Dh), fixed),                # rope sin (sign folded)
            pl.BlockSpec((None, 1, D), per_layer),           # attention_norm weight
            pl.BlockSpec((None, None, D, 6 * Dh), per_pair), # [Wq*s | Wk | Wv] pair cols
            pl.BlockSpec((None, None, 2 * Dh, D), per_pair), # Wo pair rows
            pl.BlockSpec((None, 1, D), per_layer),           # ffn_norm weight
            pl.BlockSpec((None, D, 2 * I), per_layer),       # fused [W1 | W3]
            pl.BlockSpec((None, I, D), per_layer),           # W2
        ],
        out_specs=pl.BlockSpec((S, D), fixed),               # resident residual / output
        scratch_shapes=[
            pltpu.VMEM((S, D), jnp.bfloat16),                # xn: attn pre-norm input
            pltpu.VMEM((S, D), jnp.float32),                 # acc: residual + Wo partials
        ],
    )

    flops = L * (8 * S * D * D + 4 * S * S * D + 6 * S * D * I)
    transcendentals = L * (H * S * S + S * I + H * S + 2 * S)
    bytes_accessed = (L * (4 * D * D + 3 * D * I) * 2        # bf16 weights per layer
                      + L * 2 * D * 4                        # norm weights
                      + 4 * S * D * 4 + 4 * S * Dh * 4 + 2 * S * 4)
    cost = pl.CostEstimate(flops=flops, transcendentals=transcendentals,
                           bytes_accessed=bytes_accessed)

    return pl.pallas_call(
        kern,
        out_shape=jax.ShapeDtypeStruct((S, D), jnp.float32),
        grid_spec=grid_spec,
        compiler_params=pltpu.CompilerParams(
            dimension_semantics=("arbitrary", "arbitrary"),
            vmem_limit_bytes=_vmem_limit_bytes()),
        cost_estimate=cost,
    )(xf, bid_row, bid_col, cos_p, sin_p, anw, wqkv, wo_pairs, fnw, w13, w2)


def ref_forward(x, block_id, freqs_cos, freqs_sin, params, n_heads):
    """Pure-JAX reference mirroring the PyTorch forward (pre-norm, interleaved
    RoPE, SwiGLU) with the same bf16-weight / f32-accumulate policy as the kernel."""
    S, D = x.shape
    Dh = D // n_heads
    L = params["wq"].shape[0]
    bf = jnp.bfloat16
    same = block_id[:, None] == block_id[None, :]

    def rms(v, w):
        return v * lax.rsqrt(jnp.mean(v * v, axis=-1, keepdims=True) + EPS) * w

    def rope(t):  # (S, H, Dh), interleaved complex-pair rotation (mistral style)
        a = t[..., 0::2]
        b = t[..., 1::2]
        c = freqs_cos[:, None, :]
        s = freqs_sin[:, None, :]
        return jnp.stack([a * c - b * s, a * s + b * c], axis=-1).reshape(t.shape)

    def mm(a, w):
        return jnp.dot(a.astype(bf), w.astype(bf), preferred_element_type=jnp.float32)

    for l in range(L):
        xn = rms(x, params["attn_norm"][l])
        q = mm(xn, params["wq"][l]).reshape(S, n_heads, Dh)
        k = mm(xn, params["wk"][l]).reshape(S, n_heads, Dh)
        v = mm(xn, params["wv"][l]).reshape(S, n_heads, Dh)
        q = rope(q)
        k = rope(k)
        s = jnp.einsum("qhd,khd->hqk", q.astype(bf), k.astype(bf),
                       preferred_element_type=jnp.float32) * (Dh ** -0.5)
        s = jnp.where(same[None], s, -1e9)
        p = jax.nn.softmax(s, axis=-1)
        o = jnp.einsum("hqk,khd->qhd", p.astype(bf), v.astype(bf),
                       preferred_element_type=jnp.float32).reshape(S, D)
        h = x + mm(o, params["wo"][l])
        hn = rms(h, params["ffn_norm"][l])
        ff = mm(jax.nn.silu(mm(hn, params["w1"][l])) * mm(hn, params["w3"][l]),
                params["w2"][l])
        x = h + ff
    return x


if __name__ == "__main__":
    # Small VisionEncoderArgs mirroring production structure (head_dim=64):
    # hidden_size=256, intermediate=512, heads=4, layers=2, seq=16.
    S, D, H, I, L = 16, 256, 4, 512, 2
    Dh = D // H
    seqlens = [9, 7]  # two "images" -> BlockDiagonalMask.from_seqlens([9, 7])

    key = jax.random.PRNGKey(0)
    keys = jax.random.split(key, 12)
    init = lambda k, shape: 0.02 * jax.random.normal(k, shape, jnp.float32)

    x = jax.random.normal(keys[0], (S, D), jnp.float32)
    params = {
        "attn_norm": 1.0 + 0.1 * jax.random.normal(keys[1], (L, 1, D), jnp.float32),
        "ffn_norm":  1.0 + 0.1 * jax.random.normal(keys[2], (L, 1, D), jnp.float32),
        # stored already transposed: (layer, in_features, out_features)
        "wq": init(keys[3], (L, D, D)),
        "wk": init(keys[4], (L, D, D)),
        "wv": init(keys[5], (L, D, D)),
        "wo": init(keys[6], (L, D, D)),
        "w1": init(keys[7], (L, D, I)),
        "w2": init(keys[8], (L, I, D)),
        "w3": init(keys[9], (L, D, I)),
    }

    # per-token image (block) ids -- replaces the dense BlockDiagonalMask bias
    block_id = jnp.asarray(np.repeat(np.arange(len(seqlens)), seqlens), jnp.int32)

    # RoPE tables (freqs_cis): cos/sin of shape (S, Dh//2)
    pos = np.arange(S)
    inv = 1.0 / (10000.0 ** (np.arange(0, Dh, 2) / Dh))
    ang = np.outer(pos, inv)
    freqs_cos = jnp.asarray(np.cos(ang), jnp.float32)
    freqs_sin = jnp.asarray(np.sin(ang), jnp.float32)

    out = vit_blocks_pallas(x, block_id, freqs_cos, freqs_sin, params, n_heads=H)
    out = jax.block_until_ready(out)

    ref = ref_forward(x, block_id, freqs_cos, freqs_sin, params, n_heads=H)
    np.testing.assert_allclose(np.asarray(out), np.asarray(ref), rtol=1e-2, atol=1e-2)

    print("KERNEL_OK")
</pallas_src>

<mosaic_0001>
module attributes {stable_mosaic.version = 11 : i64} {
  func.func @vit_pair_kernel(%arg0: i32, %arg1: i32, %arg2: memref<16x256xf32, #tpu.memory_space<vmem>>, %arg3: memref<16x1xf32, #tpu.memory_space<vmem>>, %arg4: memref<1x16xf32, #tpu.memory_space<vmem>>, %arg5: memref<16x128xf32, #tpu.memory_space<vmem>>, %arg6: memref<16x128xf32, #tpu.memory_space<vmem>>, %arg7: memref<1x1x256xf32, #tpu.memory_space<vmem>>, %arg8: memref<1x1x256x384xbf16, #tpu.memory_space<vmem>>, %arg9: memref<1x1x128x256xbf16, #tpu.memory_space<vmem>>, %arg10: memref<1x1x256xf32, #tpu.memory_space<vmem>>, %arg11: memref<1x256x1024xbf16, #tpu.memory_space<vmem>>, %arg12: memref<1x512x256xbf16, #tpu.memory_space<vmem>>, %arg13: memref<16x256xf32, #tpu.memory_space<vmem>>, %arg14: memref<16x256xbf16, #tpu.memory_space<vmem>>, %arg15: memref<16x256xf32, #tpu.memory_space<vmem>>) attributes {dimension_semantics = [#tpu.dimension_semantics<arbitrary>, #tpu.dimension_semantics<arbitrary>], iteration_bounds = array<i64: 2, 2>, scalar_prefetch = 0 : i64, scratch_operands = 2 : i64, tpu.core_type = #tpu.core_type<tc>, window_params = [{pipeline_mode = #tpu.pipeline_mode<synchronous>, transform_indices = @transform_0, window_bounds = array<i64: 16, 256>}, {pipeline_mode = #tpu.pipeline_mode<synchronous>, transform_indices = @transform_1, window_bounds = array<i64: 16, 1>}, {pipeline_mode = #tpu.pipeline_mode<synchronous>, transform_indices = @transform_2, window_bounds = array<i64: 1, 16>}, {pipeline_mode = #tpu.pipeline_mode<synchronous>, transform_indices = @transform_3, window_bounds = array<i64: 16, 128>}, {pipeline_mode = #tpu.pipeline_mode<synchronous>, transform_indices = @transform_4, window_bounds = array<i64: 16, 128>}, {transform_indices = @transform_5, window_bounds = array<i64: 1, 1, 256>}, {transform_indices = @transform_6, window_bounds = array<i64: 1, 1, 256, 384>}, {transform_indices = @transform_7, window_bounds = array<i64: 1, 1, 128, 256>}, {transform_indices = @transform_8, window_bounds = array<i64: 1, 1, 256>}, {transform_indices = @transform_9, window_bounds = array<i64: 1, 256, 1024>}, {transform_indices = @transform_10, window_bounds = array<i64: 1, 512, 256>}, {pipeline_mode = #tpu.pipeline_mode<synchronous>, transform_indices = @transform_11, window_bounds = array<i64: 16, 256>}]} {
    %c0_i32 = arith.constant 0 : i32
    %0 = arith.cmpi eq, %arg0, %c0_i32 : i32
    %c0_i32_0 = arith.constant 0 : i32
    %1 = arith.cmpi eq, %arg1, %c0_i32_0 : i32
    %2 = arith.andi %0, %1 : i1
    %3 = arith.extui %2 : i1 to i32
    %c0_i32_1 = arith.constant 0 : i32
    %4 = arith.cmpi ne, %3, %c0_i32_1 : i32
    scf.if %4 {
      %c0_37 = arith.constant 0 : index
      %c0_38 = arith.constant 0 : index
      %88 = vector.load %arg2[%c0_37, %c0_38] : memref<16x256xf32, #tpu.memory_space<vmem>>, vector<16x256xf32>
      %c0_39 = arith.constant 0 : index
      %c0_40 = arith.constant 0 : index
      %89 = vector.load %arg13[%c0_39, %c0_40] : memref<16x256xf32, #tpu.memory_space<vmem>>, vector<16x256xf32>
      tpu.vector_store %arg13[%c0_39, %c0_40], %88 {strides = array<i32>} : memref<16x256xf32, #tpu.memory_space<vmem>>, vector<16x256xf32>,
    } else {
    }
    %c0_i32_2 = arith.constant 0 : i32
    %5 = arith.cmpi eq, %arg1, %c0_i32_2 : i32
    %6 = arith.extui %5 : i1 to i32
    %c0_i32_3 = arith.constant 0 : i32
    %7 = arith.cmpi ne, %6, %c0_i32_3 : i32
    scf.if %7 {
      %c0_37 = arith.constant 0 : index
      %c0_38 = arith.constant 0 : index
      %88 = vector.load %arg13[%c0_37, %c0_38] : memref<16x256xf32, #tpu.memory_space<vmem>>, vector<16x256xf32>
      %c0_39 = arith.constant 0 : index
      %c0_40 = arith.constant 0 : index
      %c0_41 = arith.constant 0 : index
      %89 = vector.load %arg7[%c0_39, %c0_40, %c0_41] : memref<1x1x256xf32, #tpu.memory_space<vmem>>, vector<1x1x256xf32>
      %90 = vector.shape_cast %89 : vector<1x1x256xf32> to vector<1x256xf32>
      %91 = arith.mulf %88, %88 : vector<16x256xf32>
      %cst_42 = arith.constant dense<0.000000e+00> : vector<16xf32>
      %92 = vector.multi_reduction <add>, %91, %cst_42 [1] : vector<16x256xf32> to vector<16xf32>
      %93 = vector.shape_cast %92 : vector<16xf32> to vector<16x1xf32>
      %cst_43 = arith.constant 2.560000e+02 : f32
      %94 = vector.broadcast %cst_43 : f32 to vector<16x1xf32>
      %95 = arith.divf %93, %94 : vector<16x1xf32>
      %cst_44 = arith.constant 9.99999974E-6 : f32
      %96 = vector.broadcast %cst_44 : f32 to vector<16x1xf32>
      %97 = arith.addf %95, %96 : vector<16x1xf32>
      %98 = math.rsqrt %97 : vector<16x1xf32>
      %99 = vector.broadcast %98 : vector<16x1xf32> to vector<16x256xf32>
      %100 = arith.mulf %88, %99 : vector<16x256xf32>
      %101 = vector.broadcast %90 : vector<1x256xf32> to vector<16x256xf32>
      %102 = arith.mulf %100, %101 : vector<16x256xf32>
      %103 = arith.truncf %102 : vector<16x256xf32> to vector<16x256xbf16>
      %c0_45 = arith.constant 0 : index
      %c0_46 = arith.constant 0 : index
      %104 = vector.load %arg14[%c0_45, %c0_46] : memref<16x256xbf16, #tpu.memory_space<vmem>>, vector<16x256xbf16>
      tpu.vector_store %arg14[%c0_45, %c0_46], %103 {strides = array<i32>} : memref<16x256xbf16, #tpu.memory_space<vmem>>, vector<16x256xbf16>,
      %c0_47 = arith.constant 0 : index
      %c0_48 = arith.constant 0 : index
      %105 = vector.load %arg15[%c0_47, %c0_48] : memref<16x256xf32, #tpu.memory_space<vmem>>, vector<16x256xf32>
      tpu.vector_store %arg15[%c0_47, %c0_48], %88 {strides = array<i32>} : memref<16x256xf32, #tpu.memory_space<vmem>>, vector<16x256xf32>,
    } else {
    }
    %c0 = arith.constant 0 : index
    %c0_4 = arith.constant 0 : index
    %8 = vector.load %arg14[%c0, %c0_4] : memref<16x256xbf16, #tpu.memory_space<vmem>>, vector<16x256xbf16>
    %c0_5 = arith.constant 0 : index
    %c0_6 = arith.constant 0 : index
    %c0_7 = arith.constant 0 : index
    %c0_8 = arith.constant 0 : index
    %9 = vector.load %arg8[%c0_5, %c0_6, %c0_7, %c0_8] : memref<1x1x256x384xbf16, #tpu.memory_space<vmem>>, vector<1x1x256x384xbf16>
    %10 = vector.shape_cast %9 : vector<1x1x256x384xbf16> to vector<256x384xbf16>
    %cst = arith.constant dense<0.000000e+00> : vector<16x384xf32>
    %11 = tpu.matmul %8, %10, %cst {dimension_numbers = #tpu.dot_dimension_numbers<[1], [0], [0], [1], [0, 0, 1, 1], [], []>} : vector<16x256xbf16>, vector<256x384xbf16>, vector<16x384xf32> -> vector<16x384xf32>
    %12 = vector.extract_strided_slice %11 {offsets = [0, 0], sizes = [16, 128], strides = [1, 1]} : vector<16x384xf32> to vector<16x128xf32>
    %13 = vector.extract_strided_slice %11 {offsets = [0, 128], sizes = [16, 128], strides = [1, 1]} : vector<16x384xf32> to vector<16x128xf32>
    %14 = vector.extract_strided_slice %11 {offsets = [0, 256], sizes = [16, 128], strides = [1, 1]} : vector<16x384xf32> to vector<16x128xf32>
    %c0_9 = arith.constant 0 : index
    %c0_10 = arith.constant 0 : index
    %15 = vector.load %arg5[%c0_9, %c0_10] : memref<16x128xf32, #tpu.memory_space<vmem>>, vector<16x128xf32>
    %c0_11 = arith.constant 0 : index
    %c0_12 = arith.constant 0 : index
    %16 = vector.load %arg6[%c0_11, %c0_12] : memref<16x128xf32, #tpu.memory_space<vmem>>, vector<16x128xf32>
    %17 = arith.mulf %12, %15 : vector<16x128xf32>
    %18 = vector.extract_strided_slice %12 {offsets = [0, 32], sizes = [16, 32], strides = [1, 1]} : vector<16x128xf32> to vector<16x32xf32>
    %19 = vector.extract_strided_slice %12 {offsets = [0, 0], sizes = [16, 32], strides = [1, 1]} : vector<16x128xf32> to vector<16x32xf32>
    %20 = vector.extract_strided_slice %12 {offsets = [0, 96], sizes = [16, 32], strides = [1, 1]} : vector<16x128xf32> to vector<16x32xf32>
    %21 = vector.extract_strided_slice %12 {offsets = [0, 64], sizes = [16, 32], strides = [1, 1]} : vector<16x128xf32> to vector<16x32xf32>
    %22 = tpu.concatenate %18, %19, %20, %21 in 1 : vector<16x32xf32>, vector<16x32xf32>, vector<16x32xf32>, vector<16x32xf32> -> vector<16x128xf32>
    %23 = arith.mulf %22, %16 : vector<16x128xf32>
    %24 = arith.addf %17, %23 : vector<16x128xf32>
    %25 = arith.truncf %24 : vector<16x128xf32> to vector<16x128xbf16>
    %26 = arith.mulf %13, %15 : vector<16x128xf32>
    %27 = vector.extract_strided_slice %13 {offsets = [0, 32], sizes = [16, 32], strides = [1, 1]} : vector<16x128xf32> to vector<16x32xf32>
    %28 = vector.extract_strided_slice %13 {offsets = [0, 0], sizes = [16, 32], strides = [1, 1]} : vector<16x128xf32> to vector<16x32xf32>
    %29 = vector.extract_strided_slice %13 {offsets = [0, 96], sizes = [16, 32], strides = [1, 1]} : vector<16x128xf32> to vector<16x32xf32>
    %30 = vector.extract_strided_slice %13 {offsets = [0, 64], sizes = [16, 32], strides = [1, 1]} : vector<16x128xf32> to vector<16x32xf32>
    %31 = tpu.concatenate %27, %28, %29, %30 in 1 : vector<16x32xf32>, vector<16x32xf32>, vector<16x32xf32>, vector<16x32xf32> -> vector<16x128xf32>
    %32 = arith.mulf %31, %16 : vector<16x128xf32>
    %33 = arith.addf %26, %32 : vector<16x128xf32>
    %34 = arith.truncf %33 : vector<16x128xf32> to vector<16x128xbf16>
    %35 = arith.truncf %14 : vector<16x128xf32> to vector<16x128xbf16>
    %c0_13 = arith.constant 0 : index
    %c0_14 = arith.constant 0 : index
    %36 = vector.load %arg3[%c0_13, %c0_14] : memref<16x1xf32, #tpu.memory_space<vmem>>, vector<16x1xf32>
    %c0_15 = arith.constant 0 : index
    %c0_16 = arith.constant 0 : index
    %37 = vector.load %arg4[%c0_15, %c0_16] : memref<1x16xf32, #tpu.memory_space<vmem>>, vector<1x16xf32>
    %38 = vector.broadcast %36 : vector<16x1xf32> to vector<16x16xf32>
    %39 = vector.broadcast %37 : vector<1x16xf32> to vector<16x16xf32>
    %40 = arith.cmpf oeq, %38, %39 : vector<16x16xf32>
    %41 = vector.extract_strided_slice %25 {offsets = [0, 0], sizes = [16, 64], strides = [1, 1]} : vector<16x128xbf16> to vector<16x64xbf16>
    %42 = vector.extract_strided_slice %34 {offsets = [0, 0], sizes = [16, 64], strides = [1, 1]} : vector<16x128xbf16> to vector<16x64xbf16>
    %cst_17 = arith.constant dense<0.000000e+00> : vector<16x16xf32>
    %43 = tpu.matmul %41, %42, %cst_17 {dimension_numbers = #tpu.dot_dimension_numbers<[1], [1], [0], [0], [0, 0, 1, 0], [], []>} : vector<16x64xbf16>, vector<16x64xbf16>, vector<16x16xf32> -> vector<16x16xf32>
    %cst_18 = arith.constant -1.000000e+09 : f32
    %44 = vector.broadcast %cst_18 : f32 to vector<16x16xf32>
    %45 = arith.select %40, %43, %44 : vector<16x16xi1>, vector<16x16xf32>
    %cst_19 = arith.constant dense<0xFF800000> : vector<16xf32>
    %46 = vector.multi_reduction <maximumf>, %45, %cst_19 [1] : vector<16x16xf32> to vector<16xf32>
    %47 = vector.shape_cast %46 : vector<16xf32> to vector<16x1xf32>
    %48 = vector.broadcast %47 : vector<16x1xf32> to vector<16x16xf32>
    %49 = arith.subf %45, %48 : vector<16x16xf32>
    %50 = math.exp %49 : vector<16x16xf32>
    %cst_20 = arith.constant dense<0.000000e+00> : vector<16xf32>
    %51 = vector.multi_reduction <add>, %50, %cst_20 [1] : vector<16x16xf32> to vector<16xf32>
    %52 = vector.shape_cast %51 : vector<16xf32> to vector<16x1xf32>
    %53 = tpu.reciprocal %52 {approx = true} : vector<16x1xf32> -> vector<16x1xf32>
    %54 = vector.broadcast %53 : vector<16x1xf32> to vector<16x16xf32>
    %55 = arith.mulf %50, %54 : vector<16x16xf32>
    %56 = arith.truncf %55 : vector<16x16xf32> to vector<16x16xbf16>
    %57 = vector.extract_strided_slice %35 {offsets = [0, 0], sizes = [16, 64], strides = [1, 1]} : vector<16x128xbf16> to vector<16x64xbf16>
    %cst_21 = arith.constant dense<0.000000e+00> : vector<16x64xf32>
    %58 = tpu.matmul %56, %57, %cst_21 {dimension_numbers = #tpu.dot_dimension_numbers<[1], [0], [0], [1], [0, 0, 1, 1], [], []>} : vector<16x16xbf16>, vector<16x64xbf16>, vector<16x64xf32> -> vector<16x64xf32>
    %59 = vector.extract_strided_slice %25 {offsets = [0, 64], sizes = [16, 64], strides = [1, 1]} : vector<16x128xbf16> to vector<16x64xbf16>
    %60 = vector.extract_strided_slice %34 {offsets = [0, 64], sizes = [16, 64], strides = [1, 1]} : vector<16x128xbf16> to vector<16x64xbf16>
    %cst_22 = arith.constant dense<0.000000e+00> : vector<16x16xf32>
    %61 = tpu.matmul %59, %60, %cst_22 {dimension_numbers = #tpu.dot_dimension_numbers<[1], [1], [0], [0], [0, 0, 1, 0], [], []>} : vector<16x64xbf16>, vector<16x64xbf16>, vector<16x16xf32> -> vector<16x16xf32>
    %cst_23 = arith.constant -1.000000e+09 : f32
    %62 = vector.broadcast %cst_23 : f32 to vector<16x16xf32>
    %63 = arith.select %40, %61, %62 : vector<16x16xi1>, vector<16x16xf32>
    %cst_24 = arith.constant dense<0xFF800000> : vector<16xf32>
    %64 = vector.multi_reduction <maximumf>, %63, %cst_24 [1] : vector<16x16xf32> to vector<16xf32>
    %65 = vector.shape_cast %64 : vector<16xf32> to vector<16x1xf32>
    %66 = vector.broadcast %65 : vector<16x1xf32> to vector<16x16xf32>
    %67 = arith.subf %63, %66 : vector<16x16xf32>
    %68 = math.exp %67 : vector<16x16xf32>
    %cst_25 = arith.constant dense<0.000000e+00> : vector<16xf32>
    %69 = vector.multi_reduction <add>, %68, %cst_25 [1] : vector<16x16xf32> to vector<16xf32>
    %70 = vector.shape_cast %69 : vector<16xf32> to vector<16x1xf32>
    %71 = tpu.reciprocal %70 {approx = true} : vector<16x1xf32> -> vector<16x1xf32>
    %72 = vector.broadcast %71 : vector<16x1xf32> to vector<16x16xf32>
    %73 = arith.mulf %68, %72 : vector<16x16xf32>
    %74 = arith.truncf %73 : vector<16x16xf32> to vector<16x16xbf16>
    %75 = vector.extract_strided_slice %35 {offsets = [0, 64], sizes = [16, 64], strides = [1, 1]} : vector<16x128xbf16> to vector<16x64xbf16>
    %cst_26 = arith.constant dense<0.000000e+00> : vector<16x64xf32>
    %76 = tpu.matmul %74, %75, %cst_26 {dimension_numbers = #tpu.dot_dimension_numbers<[1], [0], [0], [1], [0, 0, 1, 1], [], []>} : vector<16x16xbf16>, vector<16x64xbf16>, vector<16x64xf32> -> vector<16x64xf32>
    %77 = tpu.concatenate %58, %76 in 1 : vector<16x64xf32>, vector<16x64xf32> -> vector<16x128xf32>
    %78 = arith.truncf %77 : vector<16x128xf32> to vector<16x128xbf16>
    %c0_27 = arith.constant 0 : index
    %c0_28 = arith.constant 0 : index
    %79 = vector.load %arg15[%c0_27, %c0_28] : memref<16x256xf32, #tpu.memory_space<vmem>>, vector<16x256xf32>
    %c0_29 = arith.constant 0 : index
    %c0_30 = arith.constant 0 : index
    %c0_31 = arith.constant 0 : index
    %c0_32 = arith.constant 0 : index
    %80 = vector.load %arg9[%c0_29, %c0_30, %c0_31, %c0_32] : memref<1x1x128x256xbf16, #tpu.memory_space<vmem>>, vector<1x1x128x256xbf16>
    %81 = vector.shape_cast %80 : vector<1x1x128x256xbf16> to vector<128x256xbf16>
    %cst_33 = arith.constant dense<0.000000e+00> : vector<16x256xf32>
    %82 = tpu.matmul %78, %81, %cst_33 {dimension_numbers = #tpu.dot_dimension_numbers<[1], [0], [0], [1], [0, 0, 1, 1], [], []>} : vector<16x128xbf16>, vector<128x256xbf16>, vector<16x256xf32> -> vector<16x256xf32>
    %83 = arith.addf %79, %82 : vector<16x256xf32>
    %c0_34 = arith.constant 0 : index
    %c0_35 = arith.constant 0 : index
    %84 = vector.load %arg15[%c0_34, %c0_35] : memref<16x256xf32, #tpu.memory_space<vmem>>, vector<16x256xf32>
    tpu.vector_store %arg15[%c0_34, %c0_35], %83 {strides = array<i32>} : memref<16x256xf32, #tpu.memory_space<vmem>>, vector<16x256xf32>,
    %c1_i32 = arith.constant 1 : i32
    %85 = arith.cmpi eq, %arg1, %c1_i32 : i32
    %86 = arith.extui %85 : i1 to i32
    %c0_i32_36 = arith.constant 0 : i32
    %87 = arith.cmpi ne, %86, %c0_i32_36 : i32
    scf.if %87 {
      %c0_37 = arith.constant 0 : index
      %c0_38 = arith.constant 0 : index
      %88 = vector.load %arg15[%c0_37, %c0_38] : memref<16x256xf32, #tpu.memory_space<vmem>>, vector<16x256xf32>
      %c0_39 = arith.constant 0 : index
      %c0_40 = arith.constant 0 : index
      %c0_41 = arith.constant 0 : index
      %89 = vector.load %arg10[%c0_39, %c0_40, %c0_41] : memref<1x1x256xf32, #tpu.memory_space<vmem>>, vector<1x1x256xf32>
      %90 = vector.shape_cast %89 : vector<1x1x256xf32> to vector<1x256xf32>
      %91 = arith.mulf %88, %88 : vector<16x256xf32>
      %cst_42 = arith.constant dense<0.000000e+00> : vector<16xf32>
      %92 = vector.multi_reduction <add>, %91, %cst_42 [1] : vector<16x256xf32> to vector<16xf32>
      %93 = vector.shape_cast %92 : vector<16xf32> to vector<16x1xf32>
      %cst_43 = arith.constant 2.560000e+02 : f32
      %94 = vector.broadcast %cst_43 : f32 to vector<16x1xf32>
      %95 = arith.divf %93, %94 : vector<16x1xf32>
      %cst_44 = arith.constant 9.99999974E-6 : f32
      %96 = vector.broadcast %cst_44 : f32 to vector<16x1xf32>
      %97 = arith.addf %95, %96 : vector<16x1xf32>
      %98 = math.rsqrt %97 : vector<16x1xf32>
      %99 = vector.broadcast %98 : vector<16x1xf32> to vector<16x256xf32>
      %100 = arith.mulf %88, %99 : vector<16x256xf32>
      %101 = vector.broadcast %90 : vector<1x256xf32> to vector<16x256xf32>
      %102 = arith.mulf %100, %101 : vector<16x256xf32>
      %103 = arith.truncf %102 : vector<16x256xf32> to vector<16x256xbf16>
      %c0_45 = arith.constant 0 : index
      %c0_46 = arith.constant 0 : index
      %c0_47 = arith.constant 0 : index
      %104 = vector.load %arg11[%c0_45, %c0_46, %c0_47] : memref<1x256x1024xbf16, #tpu.memory_space<vmem>>, vector<1x256x1024xbf16>
      %105 = vector.shape_cast %104 : vector<1x256x1024xbf16> to vector<256x1024xbf16>
      %cst_48 = arith.constant dense<0.000000e+00> : vector<16x1024xf32>
      %106 = tpu.matmul %103, %105, %cst_48 {dimension_numbers = #tpu.dot_dimension_numbers<[1], [0], [0], [1], [0, 0, 1, 1], [], []>} : vector<16x256xbf16>, vector<256x1024xbf16>, vector<16x1024xf32> -> vector<16x1024xf32>
      %107 = vector.extract_strided_slice %106 {offsets = [0, 0], sizes = [16, 512], strides = [1, 1]} : vector<16x1024xf32> to vector<16x512xf32>
      %108 = vector.extract_strided_slice %106 {offsets = [0, 512], sizes = [16, 512], strides = [1, 1]} : vector<16x1024xf32> to vector<16x512xf32>
      %109 = arith.negf %107 : vector<16x512xf32>
      %110 = math.exp %109 : vector<16x512xf32>
      %cst_49 = arith.constant 1.000000e+00 : f32
      %111 = vector.broadcast %cst_49 : f32 to vector<16x512xf32>
      %112 = arith.addf %111, %110 : vector<16x512xf32>
      %113 = arith.divf %111, %112 : vector<16x512xf32>
      %114 = arith.mulf %107, %113 : vector<16x512xf32>
      %115 = arith.mulf %114, %108 : vector<16x512xf32>
      %116 = arith.truncf %115 : vector<16x512xf32> to vector<16x512xbf16>
      %c0_50 = arith.constant 0 : index
      %c0_51 = arith.constant 0 : index
      %c0_52 = arith.constant 0 : index
      %117 = vector.load %arg12[%c0_50, %c0_51, %c0_52] : memref<1x512x256xbf16, #tpu.memory_space<vmem>>, vector<1x512x256xbf16>
      %118 = vector.shape_cast %117 : vector<1x512x256xbf16> to vector<512x256xbf16>
      %cst_53 = arith.constant dense<0.000000e+00> : vector<16x256xf32>
      %119 = tpu.matmul %116, %118, %cst_53 {dimension_numbers = #tpu.dot_dimension_numbers<[1], [0], [0], [1], [0, 0, 1, 1], [], []>} : vector<16x512xbf16>, vector<512x256xbf16>, vector<16x256xf32> -> vector<16x256xf32>
      %120 = arith.addf %88, %119 : vector<16x256xf32>
      %c0_54 = arith.constant 0 : index
      %c0_55 = arith.constant 0 : index
      %121 = vector.load %arg13[%c0_54, %c0_55] : memref<16x256xf32, #tpu.memory_space<vmem>>, vector<16x256xf32>
      tpu.vector_store %arg13[%c0_54, %c0_55], %120 {strides = array<i32>} : memref<16x256xf32, #tpu.memory_space<vmem>>, vector<16x256xf32>,
    } else {
    }
    return
  }
  func.func @transform_0(%arg0: i32, %arg1: i32) -> (i32, i32) {
    %c0_i32 = arith.constant 0 : i32
    %c0_i32_0 = arith.constant 0 : i32
    %c0_i32_1 = arith.constant 0 : i32
    return %c0_i32, %c0_i32_0 : i32, i32
  }
  func.func @transform_1(%arg0: i32, %arg1: i32) -> (i32, i32) {
    %c0_i32 = arith.constant 0 : i32
    %c0_i32_0 = arith.constant 0 : i32
    %c0_i32_1 = arith.constant 0 : i32
    return %c0_i32, %c0_i32_0 : i32, i32
  }
  func.func @transform_2(%arg0: i32, %arg1: i32) -> (i32, i32) {
    %c0_i32 = arith.constant 0 : i32
    %c0_i32_0 = arith.constant 0 : i32
    %c0_i32_1 = arith.constant 0 : i32
    return %c0_i32, %c0_i32_0 : i32, i32
  }
  func.func @transform_3(%arg0: i32, %arg1: i32) -> (i32, i32) {
    %c0_i32 = arith.constant 0 : i32
    %c0_i32_0 = arith.constant 0 : i32
    %c0_i32_1 = arith.constant 0 : i32
    return %c0_i32, %c0_i32_0 : i32, i32
  }
  func.func @transform_4(%arg0: i32, %arg1: i32) -> (i32, i32) {
    %c0_i32 = arith.constant 0 : i32
    %c0_i32_0 = arith.constant 0 : i32
    %c0_i32_1 = arith.constant 0 : i32
    return %c0_i32, %c0_i32_0 : i32, i32
  }
  func.func @transform_5(%arg0: i32, %arg1: i32) -> (i32, i32, i32) {
    %c0_i32 = arith.constant 0 : i32
    %c0_i32_0 = arith.constant 0 : i32
    %c0_i32_1 = arith.constant 0 : i32
    return %arg0, %c0_i32, %c0_i32_0 : i32, i32, i32
  }
  func.func @transform_6(%arg0: i32, %arg1: i32) -> (i32, i32, i32, i32) {
    %c0_i32 = arith.constant 0 : i32
    %c0_i32_0 = arith.constant 0 : i32
    %c0_i32_1 = arith.constant 0 : i32
    return %arg0, %arg1, %c0_i32, %c0_i32_0 : i32, i32, i32, i32
  }
  func.func @transform_7(%arg0: i32, %arg1: i32) -> (i32, i32, i32, i32) {
    %c0_i32 = arith.constant 0 : i32
    %c0_i32_0 = arith.constant 0 : i32
    %c0_i32_1 = arith.constant 0 : i32
    return %arg0, %arg1, %c0_i32, %c0_i32_0 : i32, i32, i32, i32
  }
  func.func @transform_8(%arg0: i32, %arg1: i32) -> (i32, i32, i32) {
    %c0_i32 = arith.constant 0 : i32
    %c0_i32_0 = arith.constant 0 : i32
    %c0_i32_1 = arith.constant 0 : i32
    return %arg0, %c0_i32, %c0_i32_0 : i32, i32, i32
  }
  func.func @transform_9(%arg0: i32, %arg1: i32) -> (i32, i32, i32) {
    %c0_i32 = arith.constant 0 : i32
    %c0_i32_0 = arith.constant 0 : i32
    %c0_i32_1 = arith.constant 0 : i32
    return %arg0, %c0_i32, %c0_i32_0 : i32, i32, i32
  }
  func.func @transform_10(%arg0: i32, %arg1: i32) -> (i32, i32, i32) {
    %c0_i32 = arith.constant 0 : i32
    %c0_i32_0 = arith.constant 0 : i32
    %c0_i32_1 = arith.constant 0 : i32
    return %arg0, %c0_i32, %c0_i32_0 : i32, i32, i32
  }
  func.func @transform_11(%arg0: i32, %arg1: i32) -> (i32, i32) {
    %c0_i32 = arith.constant 0 : i32
    %c0_i32_0 = arith.constant 0 : i32
    %c0_i32_1 = arith.constant 0 : i32
    return %c0_i32, %c0_i32_0 : i32, i32
  }
}

</mosaic_0001>

<bundles_post_ra>
// kernel: tpu_custom_call.1
= control target key start
LH: loop header
LB: loop body
LE: loop exit
PB: predicated region body
PF: predicated region fallthrough
CT: control target
= control target key end

     0   :  { %s6558_s0 = inlined_call_operand.hbm [shape: f32[16,256], index: 0, kind: input, shape index: {}]   ;;  %s6559_s1 = inlined_call_operand.vmem [shape: f32[16,1], index: 1, kind: input, shape index: {}]   ;;  %s6560_s2 = inlined_call_operand.hbm [shape: f32[1,16], index: 2, kind: input, shape index: {}]   ;;  %s6561_s3 = inlined_call_operand.vmem [shape: f32[16,128], index: 3, kind: input, shape index: {}]   ;;  %s6562_s4 = inlined_call_operand.hbm [shape: f32[16,128], index: 4, kind: input, shape index: {}]   ;;  %s6563_s5 = inlined_call_operand.vmem [shape: f32[2,1,256], index: 5, kind: input, shape index: {}]   ;;  %s6564_s6 = inlined_call_operand.hbm [shape: bf16[2,2,256,384], index: 6, kind: input, shape index: {}]   ;;  %s6565_s7 = inlined_call_operand.hbm [shape: bf16[2,2,128,256], index: 7, kind: input, shape index: {}]   ;;  %s6566_s8 = inlined_call_operand.vmem [shape: f32[2,1,256], index: 8, kind: input, shape index: {}]   ;;  %s6567_s9 = inlined_call_operand.hbm [shape: bf16[2,256,1024], index: 9, kind: input, shape index: {}]   ;;  %s6568_s10 = inlined_call_operand.hbm [shape: bf16[2,512,256], index: 10, kind: input, shape index: {}]   ;;  %s6569_s11 = inlined_call_operand.hbm [shape: f32[16,256], index: 11, kind: output, shape index: {}]  }
   0x1   :  { %6585 = sst [smem:[#allocation35_spill]] %s6558_s0 }
   0x2   :  { %6586 = sst [smem:[#allocation36_spill]] %s6559_s1 }
   0x3   :  { %6587 = sst [smem:[#allocation37_spill]] %s6560_s2 }
   0x4   :  { %6588 = sst [smem:[#allocation38_spill]] %s6561_s3 }
   0x5   :  { %6589 = sst [smem:[#allocation39_spill]] %s6562_s4 }
   0x6   :  { %6590 = sst [smem:[#allocation40_spill]] %s6563_s5 }
   0x7   :  { %6591 = sst [smem:[#allocation41_spill]] %s6564_s6 }
   0x8   :  { %6592 = sst [smem:[#allocation42_spill]] %s6566_s8 }
   0x9   :  { %6593 = sst [smem:[#allocation43_spill]] %s6567_s9 }
   0xa   :  { %6594 = sst [smem:[#allocation44_spill]] %s6569_s11 }
   0xb   :  { %16 = vsyncpa [#allocation5], 0 }
   0xc   :  { %17 = vsyncpa [#allocation8], 0 }
   0xd   :  { %18 = vsyncpa [#allocation11], 0 }
   0xe   :  { %20 = vsyncpa [#allocation11 + $0x1], 0 }
   0xf   :  { %21 = vsyncpa [#allocation14], 0 }
  0x10   :  { %23 = vsyncpa [#allocation14 + $0x1], 0 }
  0x11   :  { %24 = vsyncpa [#allocation6], 0  ;;  %s5429_s17 = smov 0   ;;  %s5431_s18 = smov 0  }
  0x12   :  { %s5433_s19 = smov 0   ;;  %s5435_s20 = smov 0  }
  0x13   :  { %s5437_s21 = smov 0   ;;  %s5439_s22 = smov 0  }
  0x14   :  { %s5441_s23 = smov 0   ;;  %s5443_s24 = smov 0  }
  0x15   :  { %s5445_s25 = smov 0   ;;  %s5447_s26 = smov 0  }
  0x16   :  { %s5449_s27 = smov 0  }
  0x17 LB: > { %6595 = sst [smem:[#allocation22_spill]] %s5315_s19  ;;  %s5481_s28 = sadd.s32 4294967295, %s5347_s27   ;;  %s5347_s27 = sphi %s5449_s27, %s30_s27   ;;  %s5343_s26 = sphi %s5447_s26, %s6666_s26   ;;  %s5339_s25 = sphi %s5445_s25, %s6661_s25   ;;  %s5335_s24 = sphi %s5443_s24, %s6665_s24   ;;  %s5331_s23 = sphi %s5441_s23, %s6660_s23   ;;  %s5327_s22 = sphi %s5439_s22, %s6659_s22   ;;  %s5323_s21 = sphi %s5437_s21, %s6658_s21   ;;  %s5319_s20 = sphi %s5435_s20, %s6657_s20   ;;  %s5315_s19 = sphi %s5433_s19, %s6656_s19   ;;  %s5311_s18 = sphi %s5431_s18, %s6664_s18   ;;  %s5307_s17 = sphi %s5429_s17, %s6663_s17  }
  0x18   : > { %6596 = sst [smem:[#allocation23_spill]] %s5323_s21  ;;  %p195_p0 = scmp.ne.s32.totalorder %s5323_s21, %s5319_s20 }
  0x19   : > { %6597 = sst [smem:[#allocation24_spill]] %s5327_s22  ;;  %p196_p1 = scmp.eq.s32.totalorder %s5481_s28, 0 }
  0x1a   : > { %6598 = sst [smem:[#allocation25_spill]] %s5331_s23  ;;  %p275_p2 = scmp.ne.s32.totalorder %s5311_s18, %s5307_s17 }
  0x1b   : > { %6599 = sst [smem:[#allocation26_spill]] %s5335_s24  ;;  %p3427_p3 = scmp.ge.s32.totalorder %s5347_s27, 1 }
  0x1c   : > { %6600 = sst [smem:[#allocation27_spill]] %s5339_s25  ;;  %p333_p4 = scmp.lt.s32.totalorder %s5347_s27, 5 }
  0x1d   : > { %6601 = sst [smem:[#allocation28_spill]] %s5481_s28  ;;  %p5490_p5 = por %p196_p1, %p195_p0 }
  0x1e   : > { %p5496_p6 = por %p275_p2, %p196_p1  ;;  %p5500_p7 = pnand %p3427_p3, %p333_p4 }
  0x1f   : > { %s6602_s29 = scalar_select %p5490_p5, 1, 0 }
  0x20   : > { %s6604_s30 = scalar_select %p5496_p6, 1, 0 }
  0x21   : > { %6603 = sst [smem:[#allocation29_spill]] %s6602_s29  ;;  %p4790_p8 = pneg %p5500_p7 }
  0x22   : > { %6605 = sst [smem:[#allocation30_spill]] %s6604_s30  ;;  %s5349_s16 = smov [#allocation7]  }
  0x23   : > { %s6607_s2 = sld [smem:[#allocation37_spill]]  ;;  %s364_s17 = sshll.u32 %s5349_s16, 4  ;;  %s365_s17 = int_to_ptr.vmem [resolvable:$true] %s364_s17 }
  0x24   : > { %p5511_p9 = pnand %p4790_p8, %p196_p1  ;;  %s39_s13 = sadd.s32 1, %s5339_s25 }
  0x25   : > { %p40_p10 = scmp.ge.s32.totalorder %s39_s13, 2  ;;  %s42_s14 = sadd.s32 1, %s5343_s26 }
  0x26   : > { %p189_p11 = scmp.ne.s32.totalorder %s5327_s22, %s5323_s21  ;;  %p190_p12 = scmp.eq.s32.totalorder %s5347_s27, 0 }
  0x27   : > { %s6668_s13 = smov (%p40_p10, %s39_s13), 0  ;;  %s6670_s14 = smov (!%p40_p10, %s42_s14), %s5343_s26 }
  0x28   : > { %6609 = sst [smem:[#allocation31_spill]] %s6668_s13  ;;  %s178_s16 = ssub.s32 %s5339_s25, %s6668_s13 }
  0x29   : > { %s362_s15 = sshll.u32 %s6607_s2, 4  ;;  %s182_s2 = sadd.s32 1, %s5327_s22  ;;  %s363_s15 = int_to_ptr.hbm [resolvable:$true] %s362_s15 }
  0x2a   : > { %4796 = dma.hbm_to_vmem [thread:$0]  (!%p5511_p9), %s363_s15, 16, %s365_s17, [#allocation8]  }
  0x2b   : > { %p44_p13 = scmp.ge.s32.totalorder %s6670_s14, 2  ;;  %p4816_p0 = scmp.lt.s32.totalorder %s5347_s27, 4 }
  0x2c   : > { %p5531_p2 = por %p190_p12, %p189_p11  ;;  %s401_s11 = sand.u32 1, %s5327_s22  }
  0x2d   : > { %s6672_s14 = smov (%p44_p13, %s6670_s14), 0  ;;  %s4762_s1 = smul.u32 384, %s401_s11 }
  0x2e   : > { %6611 = sst [smem:[#allocation32_spill]] %s6672_s14  ;;  %s177_s3 = ssub.s32 %s5343_s26, %s6672_s14 }
  0x2f   : > { %s179_s13 = sor.u32 %s178_s16, %s177_s3  ;;  %p260_p3 = scmp.eq.s32.totalorder %s177_s3, 0 }
  0x30   : > { %p180_p4 = scmp.eq.s32.totalorder %s179_s13, 0  ;;  %s4763_s8 = smul.u32 96, %s5339_s25 }
  0x31   : > { %s403_s5 = scalar_lea.vmem [#allocation10], %s4762_s1  ;;  %s4764_s17 = smul.u32 192, %s5343_s26 }
  0x32   : > { %s413_s23 = sshll.u32 %s403_s5, 4  ;;  %p5550_p8 = pnand %p4816_p0, %p5531_p2  ;;  %s414_s23 = int_to_ptr.vmem [resolvable:$true] %s413_s23 }
  0x33   : > { %s5543_s24 = scalar_select %p180_p4, %s5327_s22, %s182_s2  }
  0x34   : > { %s408_s13 = sadd.s32 %s4764_s17, %s4763_s8  ;;  %s6614_s6 = sld [smem:[#allocation41_spill]] }
  0x35   : > { %6612 = sst [smem:[#allocation33_spill]] %s5543_s24  ;;  %s3432_s1 = sshll.u32 %s408_s13, 2 }
  0x36   : > { %s5557_s24 = sshll.u32 %s401_s11, 7  ;;  %s6615_s30 = sand.u32 1, %s5347_s27  }
  0x37   : > { %s5561_s15 = scalar_lea.sflag [#allocation11], %s6615_s30  ;;  %s5350_s29 = smov 192  }
  0x38   : > { %s5351_s21 = smov 12   ;;  %s262_s8 = sadd.s32 1, %s5315_s19 }
  0x39   : > { %p269_p10 = scmp.ne.s32.totalorder %s5315_s19, %s5311_s18  ;;  %s456_s11 = sand.u32 1, %s5315_s19  }
  0x3a   : > { %s410_s2 = scalar_lea.hbm %s6614_s6, %s3432_s1  ;;  %s3437_s14 = sshll.u32 %s456_s11, 10 }
  0x3b   : > { %s411_s22 = sshll.u32 %s410_s2, 4  ;;  %p271_p11 = por %p269_p10, %p190_p12  ;;  %s412_s22 = int_to_ptr.hbm [resolvable:$true] %s411_s22 }
  0x3c   : > { %4803 = dma.hbm_to_vmem [thread:$0]  (!%p5550_p8), %s412_s22, 6144, %s414_s23, %s5561_s15, %s5350_s29, %s5350_s29, %s5351_s21  }
  0x3d   : > { %s5571_s17 = scalar_select %p260_p3, %s5315_s19, %s262_s8  }
  0x3e   : > { %s4502_s13 = sshll.u32 %s5343_s26, 10  ;;  %s6617_s9 = sld [smem:[#allocation43_spill]] }
  0x3f   : > { %6616 = sst [smem:[#allocation34_spill]] %s5571_s17  ;;  %s458_s6 = scalar_lea.vmem [#allocation13], %s3437_s14 }
  0x40   : > { %s466_s28 = sshll.u32 %s458_s6, 4  ;;  %p5582_p13 = pnand %p4816_p0, %p271_p11  ;;  %s467_s28 = int_to_ptr.vmem [resolvable:$true] %s466_s28 }
  0x41   : > { %s3440_s21 = sshll.u32 %s456_s11, 9  ;;  %s6619_s22 = sand.u32 1, %s5347_s27  }
  0x42   : > { %s5588_s23 = scalar_lea.sflag [#allocation14], %s6619_s22  ;;  %s5352_s29 = smov 512  }
  0x43   : > { %s5353_s8 = smov 32   ;;  %s480_s6 = scalar_lea.vmem [#allocation15], %s3440_s21 }
  0x44   : > { %s463_s5 = scalar_lea.hbm %s6617_s9, %s4502_s13  ;;  %s5593_s14 = sshll.u32 %s480_s6, 4  ;;  %s489_s14 = int_to_ptr.vmem [resolvable:$true] %s5593_s14 }
  0x45   : > { %s464_s2 = sshll.u32 %s463_s5, 4  ;;  %s6620_s0 = sld [smem:[#allocation35_spill]]  ;;  %s465_s2 = int_to_ptr.hbm [resolvable:$true] %s464_s2 }
  0x46   : > { %4809 = dma.hbm_to_vmem [thread:$0]  (!%p5582_p13), %s465_s2, 16384, %s467_s28, %s5588_s23, %s5352_s29, %s5352_s29, %s5353_s8  }
  0x47   : > { %s5354_s11 = smov [#allocation4]   ;;  %s5355_s22 = smov 256  }
  0x48   : > { %s346_s5 = sshll.u32 %s5354_s11, 4  ;;  %s5356_s9 = smov 16   ;;  %s347_s5 = int_to_ptr.vmem [resolvable:$true] %s346_s5 }
  0x49   : > { %s6621_s4 = sld [smem:[#allocation39_spill]]  ;;  %s5357_s29 = smov [#allocation9]  }
  0x4a   : > { %s378_s8 = sshll.u32 %s5357_s29, 4  ;;  %s3434_s6 = sshll.u32 %s5339_s25, 5  ;;  %s379_s8 = int_to_ptr.vmem [resolvable:$true] %s378_s8 }
  0x4b   : > { %s344_s30 = sshll.u32 %s6620_s0, 4  ;;  %s5358_s13 = smov 128   ;;  %s345_s30 = int_to_ptr.hbm [resolvable:$true] %s344_s30 }
  0x4c   : > { %4793 = dma.hbm_to_vmem [thread:$0]  (!%p5511_p9), %s345_s30, 512, %s347_s5, [#allocation5], %s5355_s22, %s5355_s22, %s5356_s9  }
  0x4d   : > { %s5359_s1 = smov 8   ;;  %s3435_s9 = sshll.u32 %s5343_s26, 6 }
  0x4e   : > { %s427_s30 = scalar_lea.vmem [#allocation12], %s5557_s24  ;;  %s432_s5 = sadd.s32 %s3435_s9, %s3434_s6 }
  0x4f   : > { %s376_s21 = sshll.u32 %s6621_s4, 4  ;;  %s437_s11 = sshll.u32 %s427_s30, 4  ;;  %s377_s21 = int_to_ptr.hbm [resolvable:$true] %s376_s21  ;;  %s438_s11 = int_to_ptr.vmem [resolvable:$true] %s437_s11 }
  0x50   : > { %4799 = dma.hbm_to_vmem [thread:$0]  (!%p5511_p9), %s377_s21, 256, %s379_s8, [#allocation8], %s5358_s13, %s5358_s13, %s5359_s1  }
  0x51   : > { %s3436_s22 = sshll.u32 %s432_s5, 2  ;;  %s4503_s28 = sshll.u32 %s5343_s26, 9 }
  0x52   : > { %s434_s0 = scalar_lea.hbm %s6565_s7, %s3436_s22  ;;  %s485_s17 = scalar_lea.hbm %s6568_s10, %s4503_s28 }
  0x53   : > { %s435_s20 = sshll.u32 %s434_s0, 4  ;;  %s486_s19 = sshll.u32 %s485_s17, 4  ;;  %s436_s20 = int_to_ptr.hbm [resolvable:$true] %s435_s20  ;;  %s487_s19 = int_to_ptr.hbm [resolvable:$true] %s486_s19 }
  0x54   : > { %4806 = dma.hbm_to_vmem [thread:$0]  (!%p5550_p8), %s436_s20, 2048, %s438_s11, %s5561_s15, %s5358_s13, %s5358_s13, %s5359_s1  }
  0x55   : > { %4812 = dma.hbm_to_vmem [thread:$0]  (!%p5582_p13), %s487_s19, 8192, %s489_s14, %s5588_s23, %s5358_s13, %s5358_s13, %s5359_s1  }
  0x56   : > { %500 = sbr.rel (%p5500_p7) target bundleno = 2043 (0x7fb), region = 64  ;;  %s6622_s24 = sld [smem:[#allocation28_spill]] (!%p5500_p7) }
  0x5b   : > { %5286 = dma.done.wait (%p196_p1), [#allocation5], 512  }
  0x5c   : > { %5288 = vsyncadd (%p196_p1), [#allocation5], 4294966784 }
  0x5d   : > { %5290 = dma.done.wait (%p196_p1), [#allocation8], 272  }
  0x5e   : > { %5292 = vsyncadd (%p196_p1), [#allocation8], 4294967024  ;;  %s6623_s0 = sld [smem:[#allocation23_spill]]  ;;  %s517_s25 = sand.u32 1, %s6622_s24  }
  0x5f   : > { %s518_s12 = scalar_lea.sflag [#allocation11], %s517_s25 }
  0x64   : > { %s519_s19 = sand.u32 1, %s6623_s0  }
  0x65   : > { %s4765_s16 = smul.u32 384, %s519_s19 }
  0x67   : > { %s5634_s15 = scalar_lea.vmem [#allocation10], %s4765_s16 }
  0x68   : > { %5294 = dma.done.wait (%p5490_p5), %s518_s12, 8192  }
  0x69   : > { %5296 = vsyncadd (%p5490_p5), %s518_s12, 4294959104  ;;  %s3447_s3 = sshll.u32 %s519_s19, 7  ;;  %s539_s23 = sand.u32 1, %s5311_s18  }
  0x6a   : > { %s3448_s14 = sshll.u32 %s539_s23, 10  ;;  %s5641_s21 = scalar_lea.vmem [#allocation12], %s3447_s3 }
  0x6b   : > { %s538_s8 = scalar_lea.sflag [#allocation14], %s517_s25  ;;  %s5643_s6 = scalar_lea.vmem [#allocation13], %s3448_s14 }
  0x6c   : > { %5298 = dma.done.wait (%p5496_p6), %s538_s8, 24576  }
  0x6d   : > { %5300 = vsyncadd (%p5496_p6), %s538_s8, 4294942720  ;;  %s6626_s13 = sld [smem:[#allocation26_spill]]  ;;  %s3449_s9 = sshll.u32 %s539_s23, 9 }
  0x6e   : > { %s6627_s1 = sld [smem:[#allocation25_spill]]  ;;  %s5663_s0 = scalar_lea.vmem [#allocation15], %s3449_s9 }
  0x6f   : > { %s6628_s22 = sld [smem:[#allocation40_spill]] }
  0x70   : > { %s6629_s20 = sld [smem:[#allocation42_spill]] }
  0x73   : > { %p609_p1 = scmp.lt.s32.totalorder %s6626_s13, 1  ;;  %p618_p5 = scmp.eq.s32.totalorder %s6626_s13, 0 }
  0x74   : > { %p619_p7 = scmp.eq.s32.totalorder %s6627_s1, 0 }
  0x75   : > { %s6674_s13 = smov (!%p609_p1, %s6626_s13), 1 }
  0x76   : > { %s3450_s30 = sshll.u32 %s6674_s13, 1  ;;  %p620_p6 = pnand %p619_p7, %p618_p5 }
  0x77   : > { %s5656_s28 = scalar_lea.vmem %s6628_s22, %s3450_s30  ;;  %s5661_s24 = scalar_lea.vmem %s6629_s20, %s3450_s30 }
  0x78   : > { %623 = sbr.rel (%p620_p6) target bundleno = 130 (0x82), region = 96 }
  0x7d   : > { %v624_v0 = vld [vmem:[#allocation4] sm:$0xff]  ;;  %v625_v1 = vld [vmem:[#allocation4 + $0x8] sm:$0xff]  ;;  %v626_v2 = vld [vmem:[#allocation4 + $0x10] sm:$0xff] }
  0x7e   : > { %628 = vst [vmem:[#allocation16] sm:$0xff] %v624_v0  ;;  %v627_v3 = vld [vmem:[#allocation4 + $0x18] sm:$0xff] }
  0x7f   : > { %629 = vst [vmem:[#allocation16 + $0x8] sm:$0xff] %v625_v1 }
  0x80   : > { %630 = vst [vmem:[#allocation16 + $0x10] sm:$0xff] %v626_v2 }
  0x81   : > { %631 = vst [vmem:[#allocation16 + $0x18] sm:$0xff] %v627_v3 }
  0x82 PF: > { %s6630_s4 = sld [smem:[#allocation25_spill]] }
  0x88   : > { %p3452_p9 = scmp.ne.s32.totalorder %s6630_s4, 0 }
  0x8a   : > { %634 = sbr.rel (%p3452_p9) target bundleno = 301 (0x12d), region = 100 }
  0x8f   : > { %v635_v4 = vld [vmem:[#allocation16] sm:$0xff]  ;;  %v636_v5 = vld [vmem:[#allocation16 + $0x8] sm:$0xff]  ;;  %v637_v8 = vld [vmem:[#allocation16 + $0x10] sm:$0xff]  ;;  %v5360_v14 = vmov 256.0  }
  0x90   : > { %v640_v6 = vmul.f32 %v635_v4, %v635_v4  ;;  %v641_v7 = vmul.f32 %v636_v5, %v636_v5  ;;  %698 = vst [vmem:[#allocation3 + $0x10] sm:$0xff] %v635_v4  ;;  %v638_v9 = vld [vmem:[#allocation16 + $0x18] sm:$0xff]  ;;  %v642_v11 = vmul.f32 %v637_v8, %v637_v8  ;;  %4930 = vrcp.f32 %v5360_v14 }
  0x91   : > { %699 = vst [vmem:[#allocation3] sm:$0xff] %v636_v5  ;;  %v643_v12 = vmul.f32 %v638_v9, %v638_v9  ;;  %v639_v31 = vld [vmem:[%s5656_s28] sm:$0x3] }
  0x92   : > { %v644_v10 = vadd.f32 %v641_v7, %v640_v6  ;;  %700 = vst [vmem:[#allocation3 + $0x18] sm:$0xff] %v637_v8  ;;  %v686_v36 = vperm.slane %v639_v31, 0  ;;  %v687_v37 = vperm.slane %v639_v31, 1 }
  0x93   : > { %701 = vst [vmem:[#allocation3 + $0x8] sm:$0xff] %v638_v9  ;;  %v647_v13 = vadd.f32 %v643_v12, %v642_v11 }
  0x94   : > { %645 = vadd.xlane.f32.xlu0 %v644_v10 }
  0x96   : > { %v4931_v15 = vpop.eup %4930 }
  0x97   : > { %v651_v16 = vmul.f32 256.0, %v4931_v15  ;;  %vm655_vm0 = vweird.f32 %v4931_v15 }
  0x99   : > { %v652_v17 = vsub.f32 1.0, %v651_v16 }
  0x9b   : > { %v653_v18 = vmul.f32 %v4931_v15, %v652_v17 }
  0x9c   : > { %648 = vadd.xlane.f32.xlu0 %v647_v13 }
  0x9d   : > { %v654_v19 = vadd.f32 %v4931_v15, %v653_v18 }
  0x9f   : > { %v656_v20 = vsel %vm655_vm0, %v4931_v15, %v654_v19 }
 0x107   : > { %v646_v21 = vpop.xlane.xlu0 %645 }
 0x108   : > { %v657_v22 = vmul.f32 %v656_v20, %v646_v21 }
 0x10a   : > { %v659_v23 = vadd.f32 1e-05, %v657_v22 }
 0x10c   : > { %4932 = vrsqrt.f32 %v659_v23  ;;  %vm667_vm2 = vweird.f32 %v659_v23 }
 0x10f   : > { %v649_v24 = vpop.xlane.xlu0 %648 }
 0x110   : > { %v658_v25 = vmul.f32 %v656_v20, %v649_v24 }
 0x112   : > { %v4933_v26 = vpop.eup %4932  ;;  %v660_v27 = vadd.f32 1e-05, %v658_v25 }
 0x113   : > { %v662_v28 = vmul.f32 %v4933_v26, %v659_v23  ;;  %vm668_vm1 = vweird.f32 %v4933_v26 }
 0x114   : > { %4934 = vrsqrt.f32 %v660_v27  ;;  %vm669_vm3 = vmor %vm667_vm2, %vm668_vm1  ;;  %vm677_vm5 = vweird.f32 %v660_v27 }
 0x115   : > { %v663_v29 = vmul.f32 %v4933_v26, %v662_v28 }
 0x117   : > { %v664_v30 = vmul.f32 0.5, %v663_v29 }
 0x119   : > { %v665_v32 = vsub.f32 1.5, %v664_v30 }
 0x11a   : > { %v4935_v33 = vpop.eup %4934 }
 0x11b   : > { %v666_v34 = vmul.f32 %v4933_v26, %v665_v32  ;;  %v672_v35 = vmul.f32 %v4935_v33, %v660_v27  ;;  %vm678_vm4 = vweird.f32 %v4935_v33 }
 0x11c   : > { %vm679_vm6 = vmor %vm677_vm5, %vm678_vm4 }
 0x11d   : > { %v670_v38 = vsel %vm669_vm3, %v4933_v26, %v666_v34  ;;  %v673_v39 = vmul.f32 %v4935_v33, %v672_v35 }
 0x11e   : > { %v681_v40 = vmul.f32 %v670_v38, %v635_v4  ;;  %v682_v41 = vmul.f32 %v670_v38, %v636_v5 }
 0x11f   : > { %v674_v42 = vmul.f32 0.5, %v673_v39 }
 0x120   : > { %v690_v43 = vmul.f32 %v686_v36, %v681_v40  ;;  %v691_v44 = vmul.f32 %v687_v37, %v682_v41 }
 0x121   : > { %v675_v45 = vsub.f32 1.5, %v674_v42 }
 0x122   : > { %v694_v46 = vpack.c.bf16 %v691_v44, %v690_v43 }
 0x123   : > { %v676_v47 = vmul.f32 %v4935_v33, %v675_v45 }
 0x124   : > { %696 = vst [vmem:[#allocation2] sm:$0xff] %v694_v46 }
 0x125   : > { %v680_v48 = vsel %vm679_vm6, %v4935_v33, %v676_v47 }
 0x126   : > { %v683_v49 = vmul.f32 %v680_v48, %v637_v8  ;;  %v684_v50 = vmul.f32 %v680_v48, %v638_v9 }
 0x128   : > { %v692_v51 = vmul.f32 %v686_v36, %v683_v49  ;;  %v693_v52 = vmul.f32 %v687_v37, %v684_v50 }
 0x12a   : > { %v695_v53 = vpack.c.bf16 %v693_v52, %v692_v51 }
 0x12c   : > { %697 = vst [vmem:[#allocation2 + $0x8] sm:$0xff] %v695_v53 }
 0x12d PF: > { %v4527_v54 = vld [vmem:[%s5634_s15 + $0xac] sm:$0xf]  ;;  %v3549_v55 = vld [vmem:[%s5634_s15 + $0xb4] sm:$0xf0]  ;;  %v4524_v59 = vld [vmem:[%s5634_s15 + $0x94] sm:$0xf] }
 0x12e   : > { %v4551_v56 = vld [vmem:[%s5634_s15 + $0x16c] sm:$0xf]  ;;  %v3552_v57 = vor.u32 %v4527_v54, %v3549_v55  ;;  %v3645_v58 = vld [vmem:[%s5634_s15 + $0x174] sm:$0xf0]  ;;  %v3537_v60 = vld [vmem:[%s5634_s15 + $0x9c] sm:$0xf0] }
 0x12f   : > { %v3648_v61 = vor.u32 %v4551_v56, %v3645_v58  ;;  %v4548_v62 = vld [vmem:[%s5634_s15 + $0x154] sm:$0xf]  ;;  %v3633_v63 = vld [vmem:[%s5634_s15 + $0x15c] sm:$0xf0]  ;;  %v3547_v0 = vld [vmem:[%s5634_s15 + $0xa8] sm:$0xf]  ;;  %v3540_v1 = vor.u32 %v4524_v59, %v3537_v60 }
 0x130   : > { %1062 = vmatpush.bf16.msra.mxu2 %v3552_v57  ;;  %v4528_v2 = vld [vmem:[%s5634_s15 + $0xb0] sm:$0xf0]  ;;  %v3643_v3 = vld [vmem:[%s5634_s15 + $0x168] sm:$0xf]  ;;  %v3636_v5 = vor.u32 %v4548_v62, %v3633_v63  ;;  %v4521_v8 = vld [vmem:[%s5634_s15 + $0x7c] sm:$0xf] }
 0x131   : > { %v4552_v4 = vld [vmem:[%s5634_s15 + $0x170] sm:$0xf0]  ;;  %1076 = vmatpush.bf16.msra.mxu3 %v3648_v61  ;;  %v3548_v6 = vor.u32 %v4528_v2, %v3547_v0  ;;  %v3525_v9 = vld [vmem:[%s5634_s15 + $0x84] sm:$0xf0]  ;;  %v4545_v10 = vld [vmem:[%s5634_s15 + $0x13c] sm:$0xf] }
 0x132   : > { %v3644_v7 = vor.u32 %v4552_v4, %v3643_v3  ;;  %v3621_v11 = vld [vmem:[%s5634_s15 + $0x144] sm:$0xf0]  ;;  %v3535_v12 = vld [vmem:[%s5634_s15 + $0x90] sm:$0xf]  ;;  %v4525_v13 = vld [vmem:[%s5634_s15 + $0x98] sm:$0xf0]  ;;  %v3528_v17 = vor.u32 %v4521_v8, %v3525_v9 }
 0x133   : > { %1034 = vmatpush.bf16.msra.mxu0 %v3548_v6  ;;  %v3536_v14 = vor.u32 %v4525_v13, %v3535_v12  ;;  %v3631_v15 = vld [vmem:[%s5634_s15 + $0x150] sm:$0xf]  ;;  %v4549_v16 = vld [vmem:[%s5634_s15 + $0x158] sm:$0xf0]  ;;  %v4518_v19 = vld [vmem:[%s5634_s15 + $0x64] sm:$0xf]  ;;  %v3624_v21 = vor.u32 %v4545_v10, %v3621_v11 }
 0x134   : > { %1048 = vmatpush.bf16.msra.mxu1 %v3644_v7  ;;  %1063 = vmatpush.bf16.msra.mxu2 %v3540_v1  ;;  %v3632_v18 = vor.u32 %v4549_v16, %v3631_v15  ;;  %v3513_v20 = vld [vmem:[%s5634_s15 + $0x6c] sm:$0xf0]  ;;  %v3523_v22 = vld [vmem:[%s5634_s15 + $0x78] sm:$0xf]  ;;  %v4522_v23 = vld [vmem:[%s5634_s15 + $0x80] sm:$0xf0] }
 0x135   : > { %1077 = vmatpush.bf16.msra.mxu3 %v3636_v5  ;;  %v3619_v24 = vld [vmem:[%s5634_s15 + $0x138] sm:$0xf]  ;;  %v4542_v25 = vld [vmem:[%s5634_s15 + $0x124] sm:$0xf]  ;;  %v3609_v26 = vld [vmem:[%s5634_s15 + $0x12c] sm:$0xf0]  ;;  %v3524_v28 = vor.u32 %v4522_v23, %v3523_v22  ;;  %v3516_v31 = vor.u32 %v4518_v19, %v3513_v20 }
 0x136   : > { %v4546_v27 = vld [vmem:[%s5634_s15 + $0x140] sm:$0xf0]  ;;  %v3511_v30 = vld [vmem:[%s5634_s15 + $0x60] sm:$0xf]  ;;  %v4519_v32 = vld [vmem:[%s5634_s15 + $0x68] sm:$0xf0]  ;;  %v3612_v35 = vor.u32 %v4542_v25, %v3609_v26 }
 0x137   : > { %1035 = vmatpush.bf16.msra.mxu0 %v3536_v14  ;;  %v3620_v29 = vor.u32 %v4546_v27, %v3619_v24  ;;  %v3607_v33 = vld [vmem:[%s5634_s15 + $0x120] sm:$0xf]  ;;  %v4543_v34 = vld [vmem:[%s5634_s15 + $0x128] sm:$0xf0]  ;;  %v3501_v37 = vld [vmem:[%s5634_s15 + $0x54] sm:$0xf0]  ;;  %v3512_v40 = vor.u32 %v4519_v32, %v3511_v30 }
 0x138   : > { %1049 = vmatpush.bf16.msra.mxu1 %v3632_v18  ;;  %1064 = vmatpush.bf16.msra.mxu2 %v3528_v17  ;;  %v4515_v36 = vld [vmem:[%s5634_s15 + $0x4c] sm:$0xf]  ;;  %v3597_v39 = vld [vmem:[%s5634_s15 + $0x114] sm:$0xf0]  ;;  %v3608_v41 = vor.u32 %v4543_v34, %v3607_v33  ;;  %v3499_v42 = vld [vmem:[%s5634_s15 + $0x48] sm:$0xf] }
 0x139   : > { %1078 = vmatpush.bf16.msra.mxu3 %v3624_v21  ;;  %v4539_v38 = vld [vmem:[%s5634_s15 + $0x10c] sm:$0xf]  ;;  %v3504_v43 = vor.u32 %v4515_v36, %v3501_v37  ;;  %v4516_v44 = vld [vmem:[%s5634_s15 + $0x50] sm:$0xf0]  ;;  %v3595_v45 = vld [vmem:[%s5634_s15 + $0x108] sm:$0xf] }
 0x13a   : > { %v4540_v46 = vld [vmem:[%s5634_s15 + $0x110] sm:$0xf0]  ;;  %v3600_v47 = vor.u32 %v4539_v38, %v3597_v39  ;;  %v3489_v49 = vld [vmem:[%s5634_s15 + $0x3c] sm:$0xf0]  ;;  %v3500_v52 = vor.u32 %v4516_v44, %v3499_v42  ;;  %v3487_v54 = vld [vmem:[%s5634_s15 + $0x30] sm:$0xf] }
 0x13b   : > { %1036 = vmatpush.bf16.msra.mxu0 %v3524_v28  ;;  %v4512_v48 = vld [vmem:[%s5634_s15 + $0x34] sm:$0xf]  ;;  %v3585_v51 = vld [vmem:[%s5634_s15 + $0xfc] sm:$0xf0]  ;;  %v3596_v53 = vor.u32 %v4540_v46, %v3595_v45  ;;  %v4513_v56 = vld [vmem:[%s5634_s15 + $0x38] sm:$0xf0] }
 0x13c   : > { %1050 = vmatpush.bf16.msra.mxu1 %v3620_v29  ;;  %1065 = vmatpush.bf16.msra.mxu2 %v3516_v31  ;;  %v4536_v50 = vld [vmem:[%s5634_s15 + $0xf4] sm:$0xf]  ;;  %v3492_v55 = vor.u32 %v4512_v48, %v3489_v49  ;;  %v3583_v57 = vld [vmem:[%s5634_s15 + $0xf0] sm:$0xf]  ;;  %v4537_v58 = vld [vmem:[%s5634_s15 + $0xf8] sm:$0xf0]  ;;  %v3488_v0 = vor.u32 %v4513_v56, %v3487_v54 }
 0x13d   : > { %1079 = vmatpush.bf16.msra.mxu3 %v3612_v35  ;;  %v3588_v59 = vor.u32 %v4536_v50, %v3585_v51  ;;  %v4509_v60 = vld [vmem:[%s5634_s15 + $0x1c] sm:$0xf]  ;;  %v3477_v61 = vld [vmem:[%s5634_s15 + $0x24] sm:$0xf0]  ;;  %v3584_v1 = vor.u32 %v4537_v58, %v3583_v57  ;;  %v3475_v2 = vld [vmem:[%s5634_s15 + $0x18] sm:$0xf] }
 0x13e   : > { %v4533_v62 = vld [vmem:[%s5634_s15 + $0xdc] sm:$0xf]  ;;  %v3573_v63 = vld [vmem:[%s5634_s15 + $0xe4] sm:$0xf0]  ;;  %v3480_v3 = vor.u32 %v4509_v60, %v3477_v61  ;;  %v4510_v4 = vld [vmem:[%s5634_s15 + $0x20] sm:$0xf0] }
 0x13f   : > { %1037 = vmatpush.bf16.msra.mxu0 %v3512_v40  ;;  %v3571_v5 = vld [vmem:[%s5634_s15 + $0xd8] sm:$0xf]  ;;  %v4534_v6 = vld [vmem:[%s5634_s15 + $0xe0] sm:$0xf0]  ;;  %v3576_v7 = vor.u32 %v4533_v62, %v3573_v63  ;;  %v3465_v9 = vld [vmem:[%s5634_s15 + $0xc] sm:$0xf0]  ;;  %v3476_v12 = vor.u32 %v4510_v4, %v3475_v2 }
 0x140   : > { %1051 = vmatpush.bf16.msra.mxu1 %v3608_v41  ;;  %1066 = vmatpush.bf16.msra.mxu2 %v3504_v43  ;;  %v4506_v8 = vld [vmem:[%s5634_s15 + $0x4] sm:$0xf]  ;;  %v3561_v11 = vld [vmem:[%s5634_s15 + $0xcc] sm:$0xf0]  ;;  %v3572_v13 = vor.u32 %v4534_v6, %v3571_v5  ;;  %v3455_v14 = vld [vmem:[#allocation2] sm:$0xf] }
 0x141   : > { %1080 = vmatpush.bf16.msra.mxu3 %v3600_v47  ;;  %v4530_v10 = vld [vmem:[%s5634_s15 + $0xc4] sm:$0xf]  ;;  %v3468_v16 = vor.u32 %v4506_v8, %v3465_v9  ;;  %v3463_v18 = vld [vmem:[%s5634_s15] sm:$0xf]  ;;  %v4507_v19 = vld [vmem:[%s5634_s15 + $0x8] sm:$0xf0] }
 0x142   : > { %v4505_v15 = vld [vmem:[#allocation2 + $0x4] sm:$0xf0]  ;;  %v4504_v17 = vld [vmem:[#allocation2 + $0x4] sm:$0xf]  ;;  %v3564_v20 = vor.u32 %v4530_v10, %v3561_v11  ;;  %v3457_v21 = vld [vmem:[#allocation2 + $0x8] sm:$0xf0]  ;;  %v3464_v25 = vor.u32 %v4507_v19, %v3463_v18 }
 0x143   : > { %1038 = vmatpush.bf16.msra.mxu0 %v3500_v52  ;;  %v3559_v22 = vld [vmem:[%s5634_s15 + $0xc0] sm:$0xf]  ;;  %v4531_v23 = vld [vmem:[%s5634_s15 + $0xc8] sm:$0xf0]  ;;  %v5731_v24 = vor.u32 %v4505_v15, %v3455_v14  ;;  %v5733_v26 = vor.u32 %v4504_v17, %v3457_v21  ;;  %s5361_s25 = smov 96   ;;  %s5362_s19 = smov 32  }
 0x144   : > { %1052 = vmatpush.bf16.msra.mxu1 %v3596_v53  ;;  %1067 = vmatpush.bf16.msra.mxu2 %v3492_v55  ;;  %v3560_v27 = vor.u32 %v4531_v23, %v3559_v22  ;;  %vm1138_vm7 = vcmask 261120   ;;  %s6631_s17 = sld [smem:[#allocation36_spill]]  ;;  %vm1141_vm8 = vcmask 523264   ;;  %v5363_v41 = vmov 0   ;;  %v1120_v47 = vld [vmem:[#allocation9] sm:$0xff]  ;;  %v1121_v56 = vld [vmem:[#allocation9 + $0x8] sm:$0xff] }
 0x145   : > { %1081 = vmatpush.bf16.msra.mxu3 %v3588_v59  ;;  %4936 = vset.pattern.permute.xlu1 %v5363_v41  ;;  %vm1144_vm9 = vcmask 785408   ;;  %s6633_s8 = sld [smem:[#allocation38_spill]]  ;;  %s5364_s9 = smov 64   ;;  %vm1233_vm11 = vcmask 130048  }
 0x146   : > { %4937 = vset.pattern.permute.xlu2 %v5363_v41  ;;  %4943 = vset.pattern.permute.xlu0 %v5363_v41 }
 0x147   : > { %1039 = vmatpush.bf16.msra.mxu0 %v3488_v0 }
 0x148   : > { %1053 = vmatpush.bf16.msra.mxu1 %v3584_v1  ;;  %1068 = vmatpush.bf16.msra.mxu2 %v3480_v3 }
 0x149   : > { %1082 = vmatpush.bf16.msra.mxu3 %v3576_v7 }
 0x14a   : > { %s6632_s3 = smov %s6631_s17  ;;  %v1183_v40 = vld [vmem:[%s6631_s17] sm:$0xff] }
 0x14b   : > { %1040 = vmatpush.bf16.msra.mxu0 %v3476_v12  ;;  %v1118_v48 = vld [vmem:[%s6633_s8] sm:$0xff]  ;;  %v1119_v54 = vld [vmem:[%s6633_s8 + $0x8] sm:$0xff] }
 0x14c   : > { %1054 = vmatpush.bf16.msra.mxu1 %v3572_v13  ;;  %1069 = vmatpush.bf16.msra.mxu2 %v3468_v16 }
 0x14d   : > { %1083 = vmatpush.bf16.msra.mxu3 %v3564_v20 }
 0x14f   : > { %1070 = vmatmul.bf16.vlgmr.msra.gmra.mxu2 %v5731_v24  ;;  %1041 = vmatpush.bf16.msra.mxu0 %v3464_v25 }
 0x150   : > { %1084 = vmatmul.bf16.vlgmr.msra.gmra.mxu3 %v5733_v26  ;;  %1055 = vmatpush.bf16.msra.mxu1 %v3560_v27  ;;  %v1184_v27 = vld [vmem:[%s6632_s3 + $0x8] sm:$0xff] }
 0x152   : > { %1042 = vmatmul.bf16.vlgmr.msra.gmra.mxu0 %v5731_v24 }
 0x153   : > { %1056 = vmatmul.bf16.vlgmr.msra.gmra.mxu1 %v5733_v26 }
 0x1cf   : > { %v1043_v28 = vpop.f32.mrf.mxu0 }
 0x1d0   : > { %v1057_v29 = vpop.f32.mrf.mxu1 }
 0x1d1   : > { %v1058_v30 = vadd.f32 %v1057_v29, %v1043_v28 }
 0x1d2   : > { %v1071_v31 = vpop.f32.mrf.mxu2 }
 0x1d3   : > { %v1085_v32 = vpop.f32.mrf.mxu3  ;;  %1126 = vrot.lane.b32.xlu2 %v1058_v30, %s5361_s25  ;;  %v1122_v10 = vmul.f32 %v1118_v48, %v1058_v30 }
 0x1d4   : > { %v1086_v33 = vadd.f32 %v1085_v32, %v1071_v31  ;;  %v4529_v31 = vld [vmem:[%s5634_s15 + $0xb8] sm:$0xf0]  ;;  %v3651_v32 = vld [vmem:[%s5634_s15 + $0x170] sm:$0xf] }
 0x1d6   : > { %1163 = vrot.lane.b32.xlu1 %v1086_v33, %s5362_s19  ;;  %1157 = vrot.lane.b32.xlu0 %v1086_v33, %s5361_s25  ;;  %v1153_v51 = vmul.f32 %v1118_v48, %v1086_v33 }
 0x1d7   : > { %v1045_v34 = vpop.f32.mrf.mxu0 }
 0x1d8   : > { %v1059_v35 = vpop.f32.mrf.mxu1 }
 0x1d9   : > { %v1060_v36 = vadd.f32 %v1059_v35, %v1045_v34  ;;  %v4553_v34 = vld [vmem:[%s5634_s15 + $0x178] sm:$0xf0]  ;;  %v3543_v35 = vld [vmem:[%s5634_s15 + $0x98] sm:$0xf] }
 0x1da   : > { %v1073_v37 = vpop.f32.mrf.mxu2 }
 0x1db   : > { %v1087_v38 = vpop.f32.mrf.mxu3  ;;  %1128 = vrot.lane.b32.xlu2 %v1060_v36, %s5361_s25  ;;  %v1123_v13 = vmul.f32 %v1119_v54, %v1060_v36 }
 0x1dc   : > { %v1088_v39 = vadd.f32 %v1087_v38, %v1073_v37  ;;  %v3652_v37 = vor.u32 %v4553_v34, %v3651_v32  ;;  %v3639_v38 = vld [vmem:[%s5634_s15 + $0x158] sm:$0xf] }
 0x1de   : > { %1165 = vrot.lane.b32.xlu1 %v1088_v39, %s5362_s19  ;;  %1159 = vrot.lane.b32.xlu0 %v1088_v39, %s5361_s25  ;;  %v1154_v60 = vmul.f32 %v1119_v54, %v1088_v39  ;;  %v4550_v39 = vld [vmem:[%s5634_s15 + $0x160] sm:$0xf0] }
 0x1df   : > { %1104 = vmatpush.bf16.msrb.mxu1 %v3652_v37 }
 0x1e6   : > { %1134 = vrot.lane.b32.xlu1 %v1060_v36, %s5362_s19  ;;  %1132 = vrot.lane.b32.xlu0 %v1058_v30, %s5362_s19  ;;  %v3555_v30 = vld [vmem:[%s5634_s15 + $0xb0] sm:$0xf]  ;;  %v4526_v36 = vld [vmem:[%s5634_s15 + $0xa0] sm:$0xf0] }
 0x1e7   : > { %v3556_v33 = vor.u32 %v4529_v31, %v3555_v30 }
 0x1e9   : > { %1090 = vmatpush.bf16.msrb.mxu0 %v3556_v33 }
 0x1ee   : > { %1188 = vperm.xlu1 %4936, %v1183_v40   ;;  %v3544_v40 = vor.u32 %v4526_v36, %v3543_v35 }
 0x1f0   : > { %1091 = vmatpush.bf16.msrb.mxu0 %v3544_v40 }
 0x22d   : > { %v1127_v49 = vpop.permute.xlu2 %1126 }
 0x235   : > { %v1129_v0 = vpop.permute.xlu2 %1128 }
 0x248   : > { %v1164_v42 = vpop.permute.xlu1 %1163  ;;  %v1158_v43 = vpop.permute.xlu0 %1157 }
 0x249   : > { %v1169_v44 = vsel %vm1138_vm7, %v1158_v43, %v1164_v42 }
 0x24a   : > { %v1171_v45 = vsel %vm1141_vm8, %v1169_v44, %v1158_v43  ;;  %v3531_v43 = vld [vmem:[%s5634_s15 + $0x80] sm:$0xf]  ;;  %v4523_v44 = vld [vmem:[%s5634_s15 + $0x88] sm:$0xf0] }
 0x24b   : > { %v1173_v46 = vsel %vm1144_vm9, %v1171_v45, %v1164_v42  ;;  %v3640_v42 = vor.u32 %v4550_v39, %v3639_v38  ;;  %v3627_v45 = vld [vmem:[%s5634_s15 + $0x140] sm:$0xf] }
 0x24c   : > { %v1175_v50 = vmul.f32 %v1173_v46, %v1120_v47  ;;  %v4547_v46 = vld [vmem:[%s5634_s15 + $0x148] sm:$0xf0] }
 0x24d   : > { %1105 = vmatpush.bf16.msrb.mxu1 %v3640_v42  ;;  %v3628_v48 = vor.u32 %v4547_v46, %v3627_v45 }
 0x24e   : > { %v1177_v58 = vadd.f32 %v1175_v50, %v1153_v51  ;;  %v4520_v50 = vld [vmem:[%s5634_s15 + $0x70] sm:$0xf0]  ;;  %v3615_v51 = vld [vmem:[%s5634_s15 + $0x128] sm:$0xf] }
 0x250   : > { %v1166_v52 = vpop.permute.xlu1 %1165  ;;  %v1160_v53 = vpop.permute.xlu0 %1159  ;;  %v1179_v63 = vpack.c.bf16 %v1177_v58, %v1177_v58  ;;  %v4541_v58 = vld [vmem:[%s5634_s15 + $0x118] sm:$0xf0] }
 0x251   : > { %v1170_v55 = vsel %vm1138_vm7, %v1160_v53, %v1166_v52  ;;  %1106 = vmatpush.bf16.msrb.mxu1 %v3628_v48 }
 0x252   : > { %v1172_v57 = vsel %vm1141_vm8, %v1170_v55, %v1160_v53  ;;  %v1208_v8 = vunpack.c.l.b16 %v1179_v63  ;;  %v3507_v55 = vld [vmem:[%s5634_s15 + $0x50] sm:$0xf]  ;;  %v3495_v63 = vld [vmem:[%s5634_s15 + $0x38] sm:$0xf] }
 0x253   : > { %v1174_v59 = vsel %vm1144_vm9, %v1172_v57, %v1166_v52  ;;  %v4544_v52 = vld [vmem:[%s5634_s15 + $0x130] sm:$0xf0]  ;;  %v3603_v57 = vld [vmem:[%s5634_s15 + $0x110] sm:$0xf] }
 0x254   : > { %v1176_v61 = vmul.f32 %v1174_v59, %v1121_v56  ;;  %v3616_v54 = vor.u32 %v4544_v52, %v3615_v51  ;;  %v4944_v59 = vld [vmem:[#allocation7] ss:$0 sm:$0xff] }
 0x256   : > { %v1178_v62 = vadd.f32 %v1176_v61, %v1154_v60  ;;  %1107 = vmatpush.bf16.msrb.mxu1 %v3616_v54 }
 0x258   : > { %v1135_v1 = vpop.permute.xlu1 %1134  ;;  %v1133_v2 = vpop.permute.xlu0 %1132  ;;  %v1180_v3 = vpack.c.bf16 %v1178_v62, %v1178_v62  ;;  %v3604_v62 = vor.u32 %v4541_v58, %v3603_v57 }
 0x259   : > { %v1140_v4 = vsel %vm1138_vm7, %v1129_v0, %v1135_v1  ;;  %v1139_v5 = vsel %vm1138_vm7, %v1127_v49, %v1133_v2 }
 0x25a   : > { %v1143_v6 = vsel %vm1141_vm8, %v1140_v4, %v1129_v0  ;;  %v1142_v7 = vsel %vm1141_vm8, %v1139_v5, %v1127_v49  ;;  %v1209_v9 = vunpack.c.l.b16 %v1180_v3  ;;  %v3519_v49 = vld [vmem:[%s5634_s15 + $0x68] sm:$0xf]  ;;  %v4514_v0 = vld [vmem:[%s5634_s15 + $0x40] sm:$0xf0]  ;;  %1108 = vmatpush.bf16.msrb.mxu1 %v3604_v62  ;;  %v3483_v5 = vld [vmem:[%s5634_s15 + $0x20] sm:$0xf] }
 0x25b   : > { %v1146_v11 = vsel %vm1144_vm9, %v1143_v6, %v1135_v1  ;;  %v1145_v12 = vsel %vm1144_vm9, %v1142_v7, %v1133_v2  ;;  %v3520_v53 = vor.u32 %v4520_v50, %v3519_v49  ;;  %v3591_v1 = vld [vmem:[%s5634_s15 + $0xf8] sm:$0xf]  ;;  %v4538_v2 = vld [vmem:[%s5634_s15 + $0x100] sm:$0xf0]  ;;  %v3496_v3 = vor.u32 %v4514_v0, %v3495_v63  ;;  %v4511_v6 = vld [vmem:[%s5634_s15 + $0x28] sm:$0xf0] }
 0x25c   : > { %v1148_v14 = vmul.f32 %v1146_v11, %v1121_v56  ;;  %v1147_v15 = vmul.f32 %v1145_v12, %v1120_v47  ;;  %v1210_v16 = vpack.c.b16 %v1209_v9, %v1208_v8  ;;  %v3532_v47 = vor.u32 %v4523_v44, %v3531_v43  ;;  %v4517_v56 = vld [vmem:[%s5634_s15 + $0x58] sm:$0xf0]  ;;  %v3579_v8 = vld [vmem:[%s5634_s15 + $0xe0] sm:$0xf]  ;;  %v4535_v9 = vld [vmem:[%s5634_s15 + $0xe8] sm:$0xf0] }
 0x25d   : > { %v3508_v60 = vor.u32 %v4517_v56, %v3507_v55  ;;  %v3592_v4 = vor.u32 %v4538_v2, %v3591_v1  ;;  %v3484_v12 = vor.u32 %v4511_v6, %v3483_v5 }
 0x25e   : > { %v1150_v17 = vadd.f32 %v1148_v14, %v1123_v13  ;;  %v1149_v18 = vadd.f32 %v1147_v15, %v1122_v10  ;;  %1282 = vrot.lane.b32.xlu2 %v1210_v16, %s5364_s9  ;;  %v1215_v19 = vsel %vm1141_vm8, %v1210_v16, 0  ;;  %1092 = vmatpush.bf16.msrb.mxu0 %v3532_v47  ;;  %v3580_v14 = vor.u32 %v4535_v9, %v3579_v8  ;;  %v3471_v15 = vld [vmem:[%s5634_s15 + $0x8] sm:$0xf]  ;;  %v4508_v16 = vld [vmem:[%s5634_s15 + $0x10] sm:$0xf0] }
 0x25f   : > { %1224 = vmatpush.bf16.xpose.msrb.mxu2 %v1215_v19  ;;  %1109 = vmatpush.bf16.msrb.mxu1 %v3592_v4  ;;  %v3472_v19 = vor.u32 %v4508_v16, %v3471_v15  ;;  %v3717_v16 = vld [vmem:[%s5641_s21 + $0x78] sm:$0xf0] }
 0x260   : > { %v1152_v20 = vpack.c.bf16 %v1150_v17, %v1150_v17  ;;  %v1151_v21 = vpack.c.bf16 %v1149_v18, %v1149_v18  ;;  %v1189_v61 = vpop.permute.xlu1 %1188  ;;  %v3567_v17 = vld [vmem:[%s5634_s15 + $0xc8] sm:$0xf]  ;;  %v4532_v18 = vld [vmem:[%s5634_s15 + $0xd0] sm:$0xf0]  ;;  %s6634_s15 = sld [smem:[#allocation25_spill]] }
 0x261   : > { %vm1199_vm10 = vcmp.eq.f32.partialorder %v1189_v61, %v4944_v59 }
 0x262   : > { %v1204_v22 = vunpack.c.l.b16 %v1152_v20  ;;  %v1203_v23 = vunpack.c.l.b16 %v1151_v21  ;;  %1093 = vmatpush.bf16.msrb.mxu0 %v3520_v53  ;;  %v3568_v20 = vor.u32 %v4532_v18, %v3567_v17  ;;  %v3707_v17 = vld [vmem:[%s5641_s21 + $0x60] sm:$0xf]  ;;  %v4567_v18 = vld [vmem:[%s5641_s21 + $0x64] sm:$0xf0] }
 0x263   : > { %1110 = vmatpush.bf16.msrb.mxu1 %v3580_v14  ;;  %v4568_v14 = vld [vmem:[%s5641_s21 + $0x74] sm:$0xf] }
 0x264   : > { %v1205_v25 = vpack.c.b16 %v1204_v22, %v1203_v23 }
 0x266   : > { %1280 = vrot.lane.b32.xlu0 %v1205_v25, %s5364_s9  ;;  %3653 = vmatmul.msk.bf16.vlgmr.msrb.gmra.mxu2 %vm1141_vm8, %v1205_v25  ;;  %p3721_p12 = scmp.ne.s32.totalorder %s6634_s15, 1 }
 0x267   : > { %1193 = vperm.xlu2 %4937, %v1184_v27   ;;  %1094 = vmatpush.bf16.msrb.mxu0 %v3508_v60 }
 0x268   : > { %1111 = vmatpush.bf16.msrb.mxu1 %v3568_v20  ;;  %v4566_v20 = vld [vmem:[%s5641_s21 + $0x64] sm:$0xf] }
 0x26b   : > { %1095 = vmatpush.bf16.msrb.mxu0 %v3496_v3  ;;  %1112 = vmatmul.bf16.vlgmr.msrb.gmra.mxu1 %v5733_v26 }
 0x26f   : > { %1096 = vmatpush.bf16.msrb.mxu0 %v3484_v12  ;;  %v3715_v12 = vld [vmem:[%s5641_s21 + $0x70] sm:$0xf] }
 0x273   : > { %1097 = vmatpush.bf16.msrb.mxu0 %v3472_v19  ;;  %v3720_v19 = vor.u32 %v4568_v14, %v3717_v16  ;;  %v1363_v14 = vld [vmem:[#allocation3 + $0x8] sm:$0xff] }
 0x275   : > { %1474 = vmatpush.bf16.msra.mxu1 %v3720_v19 }
 0x276   : > { %1098 = vmatmul.bf16.vlgmr.msrb.gmra.mxu0 %v5731_v24 }
 0x2b8   : > { %v1283_v28 = vpop.permute.xlu2 %1282 }
 0x2b9   : > { %v1288_v29 = vsel %vm1141_vm8, %v1283_v28, 0 }
 0x2ba   : > { %1297 = vmatpush.bf16.xpose.msra.mxu2 %v1288_v29 }
 0x2c1   : > { %v1194_v13 = vpop.permute.xlu2 %1193 }
 0x2c2   : > { %vm1200_vm12 = vcmp.eq.f32.partialorder %v1194_v13, %v4944_v59  ;;  %v4569_v13 = vld [vmem:[%s5641_s21 + $0x74] sm:$0xf0] }
 0x2c3   : > { %v3716_v15 = vor.u32 %v4569_v13, %v3715_v12  ;;  %v1362_v13 = vld [vmem:[#allocation3 + $0x18] sm:$0xff] }
 0x2c5   : > { %1460 = vmatpush.bf16.msra.mxu0 %v3716_v15 }
 0x2d8   : > { %v1281_v41 = vpop.permute.xlu0 %1280 }
 0x2d9   : > { %3655 = vmatmul.msk.bf16.vlgmr.msra.gmra.mxu2 %vm1141_vm8, %v1281_v41 }
 0x2e8   : > { %v1113_v41 = vpop.f32.mrf.mxu1 }
 0x2e9   : > { %v1226_v7 = vpop.f32.mrf.mxu2 }
 0x2ea   : > { %v1231_v10 = vsel %vm1199_vm10, %v1226_v7, -1e+09 }
 0x2eb   : > { %v1234_v11 = vsel %vm1233_vm11, %v1231_v10, -inf }
 0x2ec   : > { %1235 = vmax.xlane.f32.xlu0 %v1234_v11 }
 0x2f0   : > { %v1115_v43 = vpop.f32.mrf.mxu1 }
 0x2f1   : > { %v1228_v21 = vpop.f32.mrf.mxu2 }
 0x2f2   : > { %v1232_v22 = vsel %vm1200_vm12, %v1228_v21, -1e+09  ;;  %v3709_v21 = vld [vmem:[%s5641_s21 + $0x68] sm:$0xf0] }
 0x2f3   : > { %v1237_v23 = vsel %vm1233_vm11, %v1232_v22, -inf  ;;  %v1099_v40 = vpop.f32.mrf.mxu0 }
 0x2f4   : > { %1238 = vmax.xlane.f32.xlu1 %v1237_v23  ;;  %v1114_v44 = vadd.f32 %v1113_v41, %v1099_v40  ;;  %v3708_v23 = vor.u32 %v4567_v18, %v3707_v17  ;;  %v4560_v40 = vld [vmem:[%s5641_s21 + $0x34] sm:$0xf]  ;;  %v3685_v41 = vld [vmem:[%s5641_s21 + $0x38] sm:$0xf0] }
 0x2f6   : > { %v1181_v46 = vpack.c.bf16 %v1114_v44, %v1114_v44  ;;  %1461 = vmatpush.bf16.msra.mxu0 %v3708_v23  ;;  %v3675_v44 = vld [vmem:[%s5641_s21 + $0x20] sm:$0xf] }
 0x2f8   : > { %v1259_v48 = vunpack.c.l.b16 %v1181_v46  ;;  %v4558_v46 = vld [vmem:[%s5641_s21 + $0x24] sm:$0xf] }
 0x2fb   : > { %v1101_v42 = vpop.f32.mrf.mxu0 }
 0x2fc   : > { %v1116_v45 = vadd.f32 %v1115_v43, %v1101_v42  ;;  %v3688_v43 = vor.u32 %v4560_v40, %v3685_v41 }
 0x2fe   : > { %v1182_v47 = vpack.c.bf16 %v1116_v45, %v1116_v45  ;;  %v4559_v45 = vld [vmem:[%s5641_s21 + $0x24] sm:$0xf0] }
 0x300   : > { %v1260_v49 = vunpack.c.l.b16 %v1182_v47  ;;  %v3677_v47 = vld [vmem:[%s5641_s21 + $0x28] sm:$0xf0] }
 0x302   : > { %v1261_v50 = vpack.c.b16 %v1260_v49, %v1259_v48  ;;  %v3676_v48 = vor.u32 %v4559_v45, %v3675_v44  ;;  %v3680_v49 = vor.u32 %v4558_v46, %v3677_v47 }
 0x304   : > { %1273 = vmatpush.bf16.msrb.mxu3 %v1261_v50 }
 0x35c   : > { %v1299_v25 = vpop.f32.mrf.mxu2 }
 0x35d   : > { %v1304_v27 = vsel %vm1199_vm10, %v1299_v25, -1e+09  ;;  %v3712_v25 = vor.u32 %v4566_v20, %v3709_v21 }
 0x35e   : > { %v1306_v28 = vsel %vm1233_vm11, %v1304_v27, -inf }
 0x35f   : > { %v1236_v29 = vpop.xlane.xlu0 %1235  ;;  %1307 = vmax.xlane.f32.xlu2 %v1306_v28  ;;  %v4565_v28 = vld [vmem:[%s5641_s21 + $0x54] sm:$0xf0]  ;;  %1475 = vmatpush.bf16.msra.mxu1 %v3712_v25 }
 0x360   : > { %v1240_v30 = vsub.f32 %v1231_v10, %v1236_v29  ;;  %v4564_v29 = vld [vmem:[%s5641_s21 + $0x54] sm:$0xf] }
 0x362   : > { %v1242_v31 = vmul.f32 1.442695, %v1240_v30  ;;  %v3701_v30 = vld [vmem:[%s5641_s21 + $0x58] sm:$0xf0] }
 0x364   : > { %4945 = vpow2.f32 %v1242_v31  ;;  %v1301_v32 = vpop.f32.mrf.mxu2 }
 0x365   : > { %v1305_v33 = vsel %vm1200_vm12, %v1301_v32, -1e+09  ;;  %v3704_v32 = vor.u32 %v4564_v29, %v3701_v30 }
 0x366   : > { %v1309_v34 = vsel %vm1233_vm11, %v1305_v33, -inf }
 0x367   : > { %1310 = vmax.xlane.f32.xlu2 %v1309_v34  ;;  %v1239_v35 = vpop.xlane.xlu1 %1238  ;;  %v4563_v34 = vld [vmem:[%s5641_s21 + $0x44] sm:$0xf0]  ;;  %1476 = vmatpush.bf16.msra.mxu1 %v3704_v32 }
 0x368   : > { %v1241_v24 = vsub.f32 %v1232_v22, %v1239_v35  ;;  %v4562_v35 = vld [vmem:[%s5641_s21 + $0x44] sm:$0xf] }
 0x36a   : > { %v4946_v36 = vpop.eup %4945  ;;  %v1244_v26 = vmul.f32 1.442695, %v1241_v24  ;;  %v3693_v24 = vld [vmem:[%s5641_s21 + $0x48] sm:$0xf0] }
 0x36b   : > { %v1246_v37 = vsel %vm1233_vm11, %v4946_v36, 0.0 }
 0x36c   : > { %4947 = vpow2.f32 %v1244_v26  ;;  %1247 = vadd.xlane.f32.xlu0 %v1246_v37  ;;  %v3696_v26 = vor.u32 %v4562_v35, %v3693_v24  ;;  %v3683_v37 = vld [vmem:[%s5641_s21 + $0x30] sm:$0xf] }
 0x36e   : > { %1477 = vmatpush.bf16.msra.mxu1 %v3696_v26 }
 0x372   : > { %v4948_v38 = vpop.eup %4947  ;;  %1478 = vmatpush.bf16.msra.mxu1 %v3688_v43 }
 0x373   : > { %v1249_v39 = vsel %vm1233_vm11, %v4948_v38, 0.0 }
 0x374   : > { %1250 = vadd.xlane.f32.xlu1 %v1249_v39 }
 0x376   : > { %1479 = vmatpush.bf16.msra.mxu1 %v3680_v49 }
 0x38d   : > { %1329 = vrot.lane.b32.xlu1 %v1261_v50, %s5364_s9  ;;  %v3667_v50 = vld [vmem:[%s5641_s21 + $0x10] sm:$0xf] }
 0x3d2   : > { %v1308_v51 = vpop.xlane.xlu2 %1307 }
 0x3d3   : > { %v1312_v52 = vsub.f32 %v1304_v27, %v1308_v51  ;;  %v3699_v27 = vld [vmem:[%s5641_s21 + $0x50] sm:$0xf]  ;;  %v4557_v51 = vld [vmem:[%s5641_s21 + $0x14] sm:$0xf0] }
 0x3d4   : > { %v3700_v31 = vor.u32 %v4565_v28, %v3699_v27 }
 0x3d5   : > { %v1314_v53 = vmul.f32 1.442695, %v1312_v52 }
 0x3d6   : > { %1462 = vmatpush.bf16.msra.mxu0 %v3700_v31 }
 0x3d7   : > { %4949 = vpow2.f32 %v1314_v53  ;;  %v4556_v53 = vld [vmem:[%s5641_s21 + $0x14] sm:$0xf] }
 0x3da   : > { %v1311_v54 = vpop.xlane.xlu2 %1310 }
 0x3db   : > { %v1313_v55 = vsub.f32 %v1305_v33, %v1311_v54  ;;  %v3691_v33 = vld [vmem:[%s5641_s21 + $0x40] sm:$0xf]  ;;  %v3669_v54 = vld [vmem:[%s5641_s21 + $0x18] sm:$0xf0] }
 0x3dd   : > { %v4950_v56 = vpop.eup %4949  ;;  %v1316_v57 = vmul.f32 1.442695, %v1313_v55  ;;  %v3668_v55 = vor.u32 %v4557_v51, %v3667_v50 }
 0x3de   : > { %v1318_v58 = vsel %vm1233_vm11, %v4950_v56, 0.0 }
 0x3df   : > { %4951 = vpow2.f32 %v1316_v57  ;;  %1319 = vadd.xlane.f32.xlu2 %v1318_v58  ;;  %v1248_v59 = vpop.xlane.xlu0 %1247 }
 0x3e0   : > { %4953 = vrcp.f32 %v1248_v59  ;;  %v3659_v59 = vld [vmem:[%s5641_s21] sm:$0xf] }
 0x3e5   : > { %v4952_v60 = vpop.eup %4951 }
 0x3e6   : > { %v1321_v61 = vsel %vm1233_vm11, %v4952_v60, 0.0  ;;  %v4954_v63 = vpop.eup %4953 }
 0x3e7   : > { %1322 = vadd.xlane.f32.xlu0 %v1321_v61  ;;  %v1251_v62 = vpop.xlane.xlu1 %1250  ;;  %v1254_v1 = vmul.f32 %v4954_v63, %v4946_v36  ;;  %v3692_v36 = vor.u32 %v4563_v34, %v3691_v33  ;;  %v4554_v61 = vld [vmem:[%s5641_s21 + $0x4] sm:$0xf]  ;;  %v3661_v63 = vld [vmem:[%s5641_s21 + $0x8] sm:$0xf0] }
 0x3e8   : > { %4955 = vrcp.f32 %v1251_v62 }
 0x3e9   : > { %1463 = vmatpush.bf16.msra.mxu0 %v3692_v36 }
 0x3ee   : > { %v4956_v0 = vpop.eup %4955 }
 0x3ef   : > { %v1255_v2 = vmul.f32 %v4956_v0, %v4948_v38  ;;  %v4561_v38 = vld [vmem:[%s5641_s21 + $0x34] sm:$0xf0]  ;;  %v3664_v0 = vor.u32 %v4554_v61, %v3661_v63 }
 0x3f0   : > { %v3684_v42 = vor.u32 %v4561_v38, %v3683_v37 }
 0x3f1   : > { %v1256_v3 = vpack.c.bf16 %v1255_v2, %v1254_v1 }
 0x3f2   : > { %1464 = vmatpush.bf16.msra.mxu0 %v3684_v42 }
 0x3f3   : > { %3654 = vmatmul.msk.bf16.vlgmr.msrb.gmra.mxu3 %vm1233_vm11, %v1256_v3 }
 0x3f6   : > { %1465 = vmatpush.bf16.msra.mxu0 %v3676_v48 }
 0x3fa   : > { %1466 = vmatpush.bf16.msra.mxu0 %v3668_v55 }
 0x3ff   : > { %v1330_v4 = vpop.permute.xlu1 %1329 }
 0x400   : > { %1342 = vmatpush.bf16.msra.mxu3 %v1330_v4 }
 0x452   : > { %v1320_v5 = vpop.xlane.xlu2 %1319 }
 0x453   : > { %4957 = vrcp.f32 %v1320_v5 }
 0x459   : > { %v4958_v7 = vpop.eup %4957 }
 0x45a   : > { %v1323_v6 = vpop.xlane.xlu0 %1322  ;;  %v1326_v9 = vmul.f32 %v4958_v7, %v4950_v56  ;;  %v3672_v56 = vor.u32 %v4556_v53, %v3669_v54  ;;  %v1360_v7 = vld [vmem:[#allocation3 + $0x10] sm:$0xff] }
 0x45b   : > { %4959 = vrcp.f32 %v1323_v6 }
 0x45c   : > { %1480 = vmatpush.bf16.msra.mxu1 %v3672_v56 }
 0x460   : > { %1481 = vmatpush.bf16.msra.mxu1 %v3664_v0 }
 0x461   : > { %v4960_v8 = vpop.eup %4959 }
 0x462   : > { %v1327_v10 = vmul.f32 %v4960_v8, %v4952_v60  ;;  %v4555_v60 = vld [vmem:[%s5641_s21 + $0x4] sm:$0xf0]  ;;  %v1361_v8 = vld [vmem:[#allocation3] sm:$0xff] }
 0x463   : > { %v3660_v62 = vor.u32 %v4555_v60, %v3659_v59 }
 0x464   : > { %v1328_v11 = vpack.c.bf16 %v1327_v10, %v1326_v9 }
 0x465   : > { %1467 = vmatpush.bf16.msra.mxu0 %v3660_v62 }
 0x466   : > { %3656 = vmatmul.msk.bf16.vlgmr.msra.gmra.mxu3 %vm1233_vm11, %v1328_v11 }
 0x476   : > { %v5826_v22 = vpop.f32.mrf.mxu3 }
 0x47e   : > { %v1277_v39 = vpop.f32.mrf.mxu3 }
 0x4e9   : > { %v1344_v52 = vpop.f32.mrf.mxu3 }
 0x4f1   : > { %v1346_v57 = vpop.f32.mrf.mxu3 }
 0x4f2   : > { %v4938_v58 = vpack.i.bf16 %v1346_v57, %v1344_v52 }
 0x4f4   : > { %4939 = vrot.lane.b32.xlu2 %v4938_v58, %s5364_s9 }
 0x54e   : > { %v4940_v1 = vpop.permute.xlu2 %4939 }
 0x54f   : > { %v4942_v2 = vunpack.i.h.bf16 %v4940_v1  ;;  %v4941_v3 = vunpack.i.l.bf16 %v4940_v1 }
 0x551   : > { %v1358_v4 = vsel %vm1141_vm8, %v1277_v39, %v4942_v2  ;;  %v1357_v5 = vsel %vm1141_vm8, %v5826_v22, %v4941_v3 }
 0x552   : > { %v1359_v6 = vpack.c.bf16 %v1358_v4, %v1357_v5 }
 0x554   : > { %1468 = vmatmul.bf16.vlgmr.msra.gmra.mxu0 %v1359_v6  ;;  %1482 = vmatmul.bf16.vlgmr.msra.gmra.mxu1 %v1359_v6 }
 0x5d1   : > { %v1469_v9 = vpop.f32.mrf.mxu0  ;;  %v1483_v10 = vpop.f32.mrf.mxu1 }
 0x5d2   : > { %v1488_v11 = vadd.f32 %v1469_v9, %v1360_v7  ;;  %v1489_v12 = vadd.f32 %v1483_v10, %v1361_v8 }
 0x5d4   : > { %1492 = vst [vmem:[#allocation3 + $0x10] sm:$0xff] %v1488_v11 }
 0x5d5   : > { %1493 = vst [vmem:[#allocation3] sm:$0xff] %v1489_v12 }
 0x5d9   : > { %v1471_v15 = vpop.f32.mrf.mxu0  ;;  %v1485_v16 = vpop.f32.mrf.mxu1  ;;  %1499 = sbr.rel (%p3721_p12) target bundleno = 2032 (0x7f0), region = 104 }
 0x5da   : > { %v1490_v17 = vadd.f32 %v1471_v15, %v1362_v13  ;;  %v1491_v18 = vadd.f32 %v1485_v16, %v1363_v14 }
 0x5dc   : > { %1494 = vst [vmem:[#allocation3 + $0x18] sm:$0xff] %v1490_v17 }
 0x5dd   : > { %1495 = vst [vmem:[#allocation3 + $0x8] sm:$0xff] %v1491_v18 }
 0x5de   : > { %v5857_v19 = vld [vmem:[#allocation3 + $0x10] sm:$0xff]  ;;  %v5859_v20 = vld [vmem:[#allocation3] sm:$0xff] }
 0x5df   : > { %v1505_v22 = vmul.f32 %v5857_v19, %v5857_v19  ;;  %v1506_v23 = vmul.f32 %v5859_v20, %v5859_v20  ;;  %v3948_v27 = vld [vmem:[%s5643_s6 + $0x1c0] sm:$0xf]  ;;  %v4626_v32 = vld [vmem:[%s5643_s6 + $0x1c4] sm:$0xf] }
 0x5e0   : > { %v4630_v28 = vld [vmem:[%s5643_s6 + $0x1dc] sm:$0xf0]  ;;  %v3950_v35 = vld [vmem:[%s5643_s6 + $0x1e0] sm:$0xf0] }
 0x5e1   : > { %v3949_v29 = vor.u32 %v4630_v28, %v3948_v27  ;;  %v4204_v30 = vld [vmem:[%s5643_s6 + $0x3c0] sm:$0xf]  ;;  %v1509_v33 = vadd.f32 %v1506_v23, %v1505_v22  ;;  %v4690_v24 = vld [vmem:[%s5643_s6 + $0x3c4] sm:$0xf]  ;;  %v3953_v26 = vor.u32 %v4626_v32, %v3950_v35 }
 0x5e2   : > { %v4694_v31 = vld [vmem:[%s5643_s6 + $0x3dc] sm:$0xf0]  ;;  %v4206_v36 = vld [vmem:[%s5643_s6 + $0x3e0] sm:$0xf0] }
 0x5e3   : > { %v5861_v21 = vld [vmem:[#allocation3 + $0x18] sm:$0xff]  ;;  %v4205_v34 = vor.u32 %v4694_v31, %v4204_v30  ;;  %2329 = vmatpush.bf16.msra.mxu0 %v3949_v29  ;;  %v4209_v37 = vor.u32 %v4690_v24, %v4206_v36  ;;  %v3916_v38 = vld [vmem:[%s5643_s6 + $0x180] sm:$0xf]  ;;  %1510 = vadd.xlane.f32.xlu0 %v1509_v33 }
 0x5e4   : > { %v5867_v25 = vld [vmem:[#allocation3 + $0x8] sm:$0xff]  ;;  %v4622_v39 = vld [vmem:[%s5643_s6 + $0x19c] sm:$0xf0]  ;;  %v1507_v41 = vmul.f32 %v5861_v21, %v5861_v21  ;;  %v4618_v45 = vld [vmem:[%s5643_s6 + $0x184] sm:$0xf]  ;;  %2357 = vmatpush.bf16.msra.mxu2 %v3953_v26 }
 0x5e5   : > { %v4172_v40 = vld [vmem:[%s5643_s6 + $0x380] sm:$0xf]  ;;  %v1508_v42 = vmul.f32 %v5867_v25, %v5867_v25  ;;  %2343 = vmatpush.bf16.msra.mxu1 %v4205_v34  ;;  %v3917_v43 = vor.u32 %v4622_v39, %v3916_v38  ;;  %v3918_v46 = vld [vmem:[%s5643_s6 + $0x1a0] sm:$0xf0]  ;;  %2371 = vmatpush.bf16.msra.mxu3 %v4209_v37 }
 0x5e6   : > { %v4686_v44 = vld [vmem:[%s5643_s6 + $0x39c] sm:$0xf0]  ;;  %v3921_v48 = vor.u32 %v4618_v45, %v3918_v46  ;;  %v4682_v49 = vld [vmem:[%s5643_s6 + $0x384] sm:$0xf] }
 0x5e7   : > { %v4173_v47 = vor.u32 %v4686_v44, %v4172_v40  ;;  %v4174_v50 = vld [vmem:[%s5643_s6 + $0x3a0] sm:$0xf0]  ;;  %v3884_v51 = vld [vmem:[%s5643_s6 + $0x140] sm:$0xf]  ;;  %2330 = vmatpush.bf16.msra.mxu0 %v3917_v43  ;;  %v1512_v60 = vadd.f32 %v1508_v42, %v1507_v41 }
 0x5e8   : > { %v4177_v52 = vor.u32 %v4682_v49, %v4174_v50  ;;  %v4614_v53 = vld [vmem:[%s5643_s6 + $0x15c] sm:$0xf0]  ;;  %v4610_v57 = vld [vmem:[%s5643_s6 + $0x144] sm:$0xf]  ;;  %2358 = vmatpush.bf16.msra.mxu2 %v3921_v48 }
 0x5e9   : > { %v4140_v54 = vld [vmem:[%s5643_s6 + $0x340] sm:$0xf]  ;;  %v3885_v56 = vor.u32 %v4614_v53, %v3884_v51  ;;  %v3886_v58 = vld [vmem:[%s5643_s6 + $0x160] sm:$0xf0]  ;;  %2344 = vmatpush.bf16.msra.mxu1 %v4173_v47 }
 0x5ea   : > { %v4678_v55 = vld [vmem:[%s5643_s6 + $0x35c] sm:$0xf0]  ;;  %v4674_v59 = vld [vmem:[%s5643_s6 + $0x344] sm:$0xf]  ;;  %2372 = vmatpush.bf16.msra.mxu3 %v4177_v52  ;;  %v3889_v1 = vor.u32 %v4610_v57, %v3886_v58  ;;  %v5365_v52 = vmov 256.0  }
 0x5eb   : > { %v4141_v61 = vor.u32 %v4678_v55, %v4140_v54  ;;  %v4142_v62 = vld [vmem:[%s5643_s6 + $0x360] sm:$0xf0]  ;;  %v3852_v63 = vld [vmem:[%s5643_s6 + $0x100] sm:$0xf]  ;;  %2331 = vmatpush.bf16.msra.mxu0 %v3885_v56  ;;  %1513 = vadd.xlane.f32.xlu0 %v1512_v60  ;;  %4961 = vrcp.f32 %v5365_v52 }
 0x5ec   : > { %v4606_v0 = vld [vmem:[%s5643_s6 + $0x11c] sm:$0xf0]  ;;  %v4145_v2 = vor.u32 %v4674_v59, %v4142_v62  ;;  %v4602_v5 = vld [vmem:[%s5643_s6 + $0x104] sm:$0xf]  ;;  %2359 = vmatpush.bf16.msra.mxu2 %v3889_v1  ;;  %v3956_v1 = vld [vmem:[%s5643_s6 + $0x1c8] sm:$0xf] }
 0x5ed   : > { %v4108_v3 = vld [vmem:[%s5643_s6 + $0x300] sm:$0xf]  ;;  %v3854_v6 = vld [vmem:[%s5643_s6 + $0x120] sm:$0xf0]  ;;  %v3853_v9 = vor.u32 %v4606_v0, %v3852_v63  ;;  %2345 = vmatpush.bf16.msra.mxu1 %v4141_v61 }
 0x5ee   : > { %v4670_v4 = vld [vmem:[%s5643_s6 + $0x31c] sm:$0xf0]  ;;  %v4666_v7 = vld [vmem:[%s5643_s6 + $0x304] sm:$0xf]  ;;  %2373 = vmatpush.bf16.msra.mxu3 %v4145_v2  ;;  %v3857_v13 = vor.u32 %v4602_v5, %v3854_v6  ;;  %v4695_v5 = vld [vmem:[%s5643_s6 + $0x3e4] sm:$0xf0] }
 0x5ef   : > { %v4110_v8 = vld [vmem:[%s5643_s6 + $0x320] sm:$0xf0]  ;;  %v4109_v10 = vor.u32 %v4670_v4, %v4108_v3  ;;  %v3820_v11 = vld [vmem:[%s5643_s6 + $0xc0] sm:$0xf]  ;;  %2332 = vmatpush.bf16.msra.mxu0 %v3853_v9  ;;  %v4631_v3 = vld [vmem:[%s5643_s6 + $0x1e4] sm:$0xf0] }
 0x5f0   : > { %v4598_v12 = vld [vmem:[%s5643_s6 + $0xdc] sm:$0xf0]  ;;  %v4113_v14 = vor.u32 %v4666_v7, %v4110_v8  ;;  %v4594_v17 = vld [vmem:[%s5643_s6 + $0xc4] sm:$0xf]  ;;  %2360 = vmatpush.bf16.msra.mxu2 %v3857_v13  ;;  %v4212_v4 = vld [vmem:[%s5643_s6 + $0x3c8] sm:$0xf]  ;;  %v3957_v6 = vor.u32 %v4631_v3, %v3956_v1 }
 0x5f1   : > { %v4076_v15 = vld [vmem:[%s5643_s6 + $0x2c0] sm:$0xf]  ;;  %v3822_v18 = vld [vmem:[%s5643_s6 + $0xe0] sm:$0xf0]  ;;  %v3821_v27 = vor.u32 %v4598_v12, %v3820_v11  ;;  %2346 = vmatpush.bf16.msra.mxu1 %v4109_v10  ;;  %v4213_v7 = vor.u32 %v4695_v5, %v4212_v4  ;;  %v4627_v8 = vld [vmem:[%s5643_s6 + $0x1cc] sm:$0xf]  ;;  %v5944_v11 = vpop.eup %4961 }
 0x5f2   : > { %v4662_v16 = vld [vmem:[%s5643_s6 + $0x2dc] sm:$0xf0]  ;;  %v4658_v22 = vld [vmem:[%s5643_s6 + $0x2c4] sm:$0xf]  ;;  %2374 = vmatpush.bf16.msra.mxu3 %v4113_v14  ;;  %v3825_v31 = vor.u32 %v4594_v17, %v3822_v18  ;;  %v3958_v9 = vld [vmem:[%s5643_s6 + $0x1e8] sm:$0xf0]  ;;  %vm1520_vm13 = vweird.f32 %v5944_v11 }
 0x5f3   : > { %v4078_v23 = vld [vmem:[%s5643_s6 + $0x2e0] sm:$0xf0]  ;;  %v4077_v28 = vor.u32 %v4662_v16, %v4076_v15  ;;  %v3788_v29 = vld [vmem:[%s5643_s6 + $0x80] sm:$0xf]  ;;  %2333 = vmatpush.bf16.msra.mxu0 %v3821_v27  ;;  %v4691_v10 = vld [vmem:[%s5643_s6 + $0x3cc] sm:$0xf]  ;;  %v3961_v12 = vor.u32 %v4627_v8, %v3958_v9 }
 0x5f4   : > { %v4590_v30 = vld [vmem:[%s5643_s6 + $0x9c] sm:$0xf0]  ;;  %v4081_v32 = vor.u32 %v4658_v22, %v4078_v23  ;;  %v4586_v35 = vld [vmem:[%s5643_s6 + $0x84] sm:$0xf]  ;;  %2361 = vmatpush.bf16.msra.mxu2 %v3825_v31  ;;  %v4214_v13 = vld [vmem:[%s5643_s6 + $0x3e8] sm:$0xf0] }
 0x5f5   : > { %v4044_v33 = vld [vmem:[%s5643_s6 + $0x280] sm:$0xf]  ;;  %v3790_v24 = vld [vmem:[%s5643_s6 + $0xa0] sm:$0xf0]  ;;  %v3789_v37 = vor.u32 %v4590_v30, %v3788_v29  ;;  %2347 = vmatpush.bf16.msra.mxu1 %v4077_v28  ;;  %v3924_v14 = vld [vmem:[%s5643_s6 + $0x188] sm:$0xf]  ;;  %v4217_v16 = vor.u32 %v4691_v10, %v4214_v13 }
 0x5f6   : > { %v4654_v34 = vld [vmem:[%s5643_s6 + $0x29c] sm:$0xf0]  ;;  %v4650_v36 = vld [vmem:[%s5643_s6 + $0x284] sm:$0xf]  ;;  %2375 = vmatpush.bf16.msra.mxu3 %v4081_v32  ;;  %v3793_v39 = vor.u32 %v4586_v35, %v3790_v24  ;;  %v4623_v15 = vld [vmem:[%s5643_s6 + $0x1a4] sm:$0xf0] }
 0x5f7   : > { %v4046_v26 = vld [vmem:[%s5643_s6 + $0x2a0] sm:$0xf0]  ;;  %v4045_v38 = vor.u32 %v4654_v34, %v4044_v33  ;;  %2334 = vmatpush.bf16.msra.mxu0 %v3789_v37  ;;  %v3756_v41 = vld [vmem:[%s5643_s6 + $0x40] sm:$0xf]  ;;  %v3925_v17 = vor.u32 %v4623_v15, %v3924_v14  ;;  %v4180_v18 = vld [vmem:[%s5643_s6 + $0x388] sm:$0xf] }
 0x5f8   : > { %v4049_v40 = vor.u32 %v4650_v36, %v4046_v26  ;;  %2362 = vmatpush.bf16.msra.mxu2 %v3793_v39  ;;  %v4582_v42 = vld [vmem:[%s5643_s6 + $0x5c] sm:$0xf0]  ;;  %v4578_v46 = vld [vmem:[%s5643_s6 + $0x44] sm:$0xf]  ;;  %v4687_v22 = vld [vmem:[%s5643_s6 + $0x3a4] sm:$0xf0] }
 0x5f9   : > { %2348 = vmatpush.bf16.msra.mxu1 %v4045_v38  ;;  %v4012_v43 = vld [vmem:[%s5643_s6 + $0x240] sm:$0xf]  ;;  %v3757_v44 = vor.u32 %v4582_v42, %v3756_v41  ;;  %v3758_v47 = vld [vmem:[%s5643_s6 + $0x60] sm:$0xf0]  ;;  %v4619_v23 = vld [vmem:[%s5643_s6 + $0x18c] sm:$0xf]  ;;  %v4181_v27 = vor.u32 %v4687_v22, %v4180_v18 }
 0x5fa   : > { %2376 = vmatpush.bf16.msra.mxu3 %v4049_v40  ;;  %v4646_v45 = vld [vmem:[%s5643_s6 + $0x25c] sm:$0xf0]  ;;  %v3761_v49 = vor.u32 %v4578_v46, %v3758_v47  ;;  %v4642_v50 = vld [vmem:[%s5643_s6 + $0x244] sm:$0xf]  ;;  %v3926_v28 = vld [vmem:[%s5643_s6 + $0x1a8] sm:$0xf0] }
 0x5fb   : > { %v4013_v48 = vor.u32 %v4646_v45, %v4012_v43  ;;  %v4014_v51 = vld [vmem:[%s5643_s6 + $0x260] sm:$0xf0]  ;;  %2335 = vmatpush.bf16.msra.mxu0 %v3757_v44  ;;  %v3724_v54 = vld [vmem:[%s5643_s6] sm:$0xf]  ;;  %v4683_v29 = vld [vmem:[%s5643_s6 + $0x38c] sm:$0xf]  ;;  %v3929_v32 = vor.u32 %v4619_v23, %v3926_v28 }
 0x5fc   : > { %v4017_v53 = vor.u32 %v4642_v50, %v4014_v51  ;;  %2363 = vmatpush.bf16.msra.mxu2 %v3761_v49  ;;  %v4574_v55 = vld [vmem:[%s5643_s6 + $0x1c] sm:$0xf0]  ;;  %v4570_v59 = vld [vmem:[%s5643_s6 + $0x4] sm:$0xf]  ;;  %v4182_v30 = vld [vmem:[%s5643_s6 + $0x3a8] sm:$0xf0] }
 0x5fd   : > { %2349 = vmatpush.bf16.msra.mxu1 %v4013_v48  ;;  %v3980_v56 = vld [vmem:[%s5643_s6 + $0x200] sm:$0xf]  ;;  %v3725_v57 = vor.u32 %v4574_v55, %v3724_v54  ;;  %v3726_v60 = vld [vmem:[%s5643_s6 + $0x20] sm:$0xf0]  ;;  %v1516_v31 = vmul.f32 256.0, %v5944_v11  ;;  %v4185_v33 = vor.u32 %v4683_v29, %v4182_v30 }
 0x5fe   : > { %2377 = vmatpush.bf16.msra.mxu3 %v4017_v53  ;;  %v4638_v58 = vld [vmem:[%s5643_s6 + $0x21c] sm:$0xf0]  ;;  %v3729_v62 = vor.u32 %v4570_v59, %v3726_v60  ;;  %v4634_v63 = vld [vmem:[%s5643_s6 + $0x204] sm:$0xf]  ;;  %v3892_v34 = vld [vmem:[%s5643_s6 + $0x148] sm:$0xf] }
 0x5ff   : > { %v3981_v61 = vor.u32 %v4638_v58, %v3980_v56  ;;  %v3982_v0 = vld [vmem:[%s5643_s6 + $0x220] sm:$0xf0]  ;;  %2336 = vmatpush.bf16.msra.mxu0 %v3725_v57  ;;  %v4615_v35 = vld [vmem:[%s5643_s6 + $0x164] sm:$0xf0]  ;;  %v4611_v37 = vld [vmem:[%s5643_s6 + $0x14c] sm:$0xf] }
 0x600   : > { %v3985_v2 = vor.u32 %v4634_v63, %v3982_v0  ;;  %2364 = vmatpush.bf16.msra.mxu2 %v3729_v62  ;;  %v4148_v24 = vld [vmem:[%s5643_s6 + $0x348] sm:$0xf]  ;;  %v3893_v36 = vor.u32 %v4615_v35, %v3892_v34  ;;  %v3894_v38 = vld [vmem:[%s5643_s6 + $0x168] sm:$0xf0]  ;;  %v1517_v43 = vsub.f32 1.0, %v1516_v31 }
 0x601   : > { %2350 = vmatpush.bf16.msra.mxu1 %v3981_v61  ;;  %v4679_v26 = vld [vmem:[%s5643_s6 + $0x364] sm:$0xf0]  ;;  %v3897_v40 = vor.u32 %v4611_v37, %v3894_v38  ;;  %v4675_v41 = vld [vmem:[%s5643_s6 + $0x34c] sm:$0xf] }
 0x602   : > { %2378 = vmatpush.bf16.msra.mxu3 %v3985_v2  ;;  %v4149_v39 = vor.u32 %v4679_v26, %v4148_v24  ;;  %v4150_v42 = vld [vmem:[%s5643_s6 + $0x368] sm:$0xf0]  ;;  %v3860_v45 = vld [vmem:[%s5643_s6 + $0x108] sm:$0xf]  ;;  %v1518_v60 = vmul.f32 %v5944_v11, %v1517_v43 }
 0x603   : > { %2385 = vmatpush.bf16.msrb.mxu0 %v3957_v6  ;;  %v4153_v44 = vor.u32 %v4675_v41, %v4150_v42  ;;  %v4607_v46 = vld [vmem:[%s5643_s6 + $0x124] sm:$0xf0]  ;;  %v4603_v50 = vld [vmem:[%s5643_s6 + $0x10c] sm:$0xf] }
 0x604   : > { %2413 = vmatpush.bf16.msrb.mxu2 %v3961_v12  ;;  %v4116_v47 = vld [vmem:[%s5643_s6 + $0x308] sm:$0xf]  ;;  %v3861_v48 = vor.u32 %v4607_v46, %v3860_v45  ;;  %v3862_v51 = vld [vmem:[%s5643_s6 + $0x128] sm:$0xf0]  ;;  %v1519_v9 = vadd.f32 %v5944_v11, %v1518_v60 }
 0x605   : > { %2399 = vmatpush.bf16.msrb.mxu1 %v4213_v7  ;;  %v4671_v49 = vld [vmem:[%s5643_s6 + $0x324] sm:$0xf0]  ;;  %v3865_v53 = vor.u32 %v4603_v50, %v3862_v51  ;;  %v4667_v54 = vld [vmem:[%s5643_s6 + $0x30c] sm:$0xf] }
 0x606   : > { %2427 = vmatpush.bf16.msrb.mxu3 %v4217_v16  ;;  %v4117_v52 = vor.u32 %v4671_v49, %v4116_v47  ;;  %v4118_v55 = vld [vmem:[%s5643_s6 + $0x328] sm:$0xf0]  ;;  %v3828_v57 = vld [vmem:[%s5643_s6 + $0xc8] sm:$0xf]  ;;  %v1521_v29 = vsel %vm1520_vm13, %v5944_v11, %v1519_v9 }
 0x607   : > { %2386 = vmatpush.bf16.msrb.mxu0 %v3925_v17  ;;  %v4121_v56 = vor.u32 %v4667_v54, %v4118_v55  ;;  %v4599_v58 = vld [vmem:[%s5643_s6 + $0xe4] sm:$0xf0]  ;;  %v4595_v63 = vld [vmem:[%s5643_s6 + $0xcc] sm:$0xf] }
 0x608   : > { %2414 = vmatpush.bf16.msrb.mxu2 %v3929_v32  ;;  %v4084_v59 = vld [vmem:[%s5643_s6 + $0x2c8] sm:$0xf]  ;;  %v3829_v61 = vor.u32 %v4599_v58, %v3828_v57  ;;  %v3830_v0 = vld [vmem:[%s5643_s6 + $0xe8] sm:$0xf0] }
 0x609   : > { %2400 = vmatpush.bf16.msrb.mxu1 %v4181_v27  ;;  %v4663_v62 = vld [vmem:[%s5643_s6 + $0x2e4] sm:$0xf0]  ;;  %v3833_v2 = vor.u32 %v4595_v63, %v3830_v0  ;;  %v4659_v3 = vld [vmem:[%s5643_s6 + $0x2cc] sm:$0xf]  ;;  %v1504_v0 = vld [vmem:[%s5661_s24] sm:$0x3] }
 0x60a   : > { %2428 = vmatpush.bf16.msrb.mxu3 %v4185_v33  ;;  %v4085_v1 = vor.u32 %v4663_v62, %v4084_v59  ;;  %v4086_v4 = vld [vmem:[%s5643_s6 + $0x2e8] sm:$0xf0]  ;;  %v3796_v6 = vld [vmem:[%s5643_s6 + $0x88] sm:$0xf] }
 0x60b   : > { %2387 = vmatpush.bf16.msrb.mxu0 %v3893_v36  ;;  %v4089_v5 = vor.u32 %v4659_v3, %v4086_v4  ;;  %v4591_v7 = vld [vmem:[%s5643_s6 + $0xa4] sm:$0xf0]  ;;  %v4587_v13 = vld [vmem:[%s5643_s6 + $0x8c] sm:$0xf]  ;;  %v1551_v4 = vperm.slane %v1504_v0, 0 }
 0x60c   : > { %2415 = vmatpush.bf16.msrb.mxu2 %v3897_v40  ;;  %v4052_v8 = vld [vmem:[%s5643_s6 + $0x288] sm:$0xf]  ;;  %v3797_v10 = vor.u32 %v4591_v7, %v3796_v6  ;;  %v3798_v14 = vld [vmem:[%s5643_s6 + $0xa8] sm:$0xf0] }
 0x60d   : > { %2401 = vmatpush.bf16.msrb.mxu1 %v4149_v39  ;;  %v4655_v12 = vld [vmem:[%s5643_s6 + $0x2a4] sm:$0xf0]  ;;  %v3801_v16 = vor.u32 %v4587_v13, %v3798_v14  ;;  %v4651_v17 = vld [vmem:[%s5643_s6 + $0x28c] sm:$0xf]  ;;  %v4632_v13 = vld [vmem:[%s5643_s6 + $0x1ec] sm:$0xf0] }
 0x60e   : > { %2429 = vmatpush.bf16.msrb.mxu3 %v4153_v44  ;;  %v4053_v15 = vor.u32 %v4655_v12, %v4052_v8  ;;  %v4054_v18 = vld [vmem:[%s5643_s6 + $0x2a8] sm:$0xf0]  ;;  %v3764_v23 = vld [vmem:[%s5643_s6 + $0x48] sm:$0xf]  ;;  %v3964_v12 = vld [vmem:[%s5643_s6 + $0x1d0] sm:$0xf] }
 0x60f   : > { %2388 = vmatpush.bf16.msrb.mxu0 %v3861_v48  ;;  %v4057_v22 = vor.u32 %v4651_v17, %v4054_v18  ;;  %v4583_v27 = vld [vmem:[%s5643_s6 + $0x64] sm:$0xf0]  ;;  %v4579_v32 = vld [vmem:[%s5643_s6 + $0x4c] sm:$0xf]  ;;  %v4220_v14 = vld [vmem:[%s5643_s6 + $0x3d0] sm:$0xf] }
 0x610   : > { %2416 = vmatpush.bf16.msrb.mxu2 %v3865_v53  ;;  %v4020_v28 = vld [vmem:[%s5643_s6 + $0x248] sm:$0xf]  ;;  %v3765_v30 = vor.u32 %v4583_v27, %v3764_v23  ;;  %v3766_v33 = vld [vmem:[%s5643_s6 + $0x68] sm:$0xf0]  ;;  %v4692_v23 = vld [vmem:[%s5643_s6 + $0x3d4] sm:$0xf] }
 0x611   : > { %2402 = vmatpush.bf16.msrb.mxu1 %v4117_v52  ;;  %v4647_v31 = vld [vmem:[%s5643_s6 + $0x264] sm:$0xf0]  ;;  %v3769_v35 = vor.u32 %v4579_v32, %v3766_v33  ;;  %v4643_v24 = vld [vmem:[%s5643_s6 + $0x24c] sm:$0xf] }
 0x612   : > { %2430 = vmatpush.bf16.msrb.mxu3 %v4121_v56  ;;  %v4021_v34 = vor.u32 %v4647_v31, %v4020_v28  ;;  %v4022_v36 = vld [vmem:[%s5643_s6 + $0x268] sm:$0xf0]  ;;  %v3732_v38 = vld [vmem:[%s5643_s6 + $0x8] sm:$0xf]  ;;  %v3965_v28 = vor.u32 %v4632_v13, %v3964_v12  ;;  %v4624_v31 = vld [vmem:[%s5643_s6 + $0x1ac] sm:$0xf0] }
 0x613   : > { %2389 = vmatpush.bf16.msrb.mxu0 %v3829_v61  ;;  %v4025_v11 = vor.u32 %v4643_v24, %v4022_v36  ;;  %v4575_v39 = vld [vmem:[%s5643_s6 + $0x24] sm:$0xf0]  ;;  %v4571_v43 = vld [vmem:[%s5643_s6 + $0xc] sm:$0xf]  ;;  %v4620_v24 = vld [vmem:[%s5643_s6 + $0x194] sm:$0xf] }
 0x614   : > { %2417 = vmatpush.bf16.msrb.mxu2 %v3833_v2  ;;  %v3988_v40 = vld [vmem:[%s5643_s6 + $0x208] sm:$0xf]  ;;  %v3733_v41 = vor.u32 %v4575_v39, %v3732_v38  ;;  %v3734_v44 = vld [vmem:[%s5643_s6 + $0x28] sm:$0xf0]  ;;  %v3934_v36 = vld [vmem:[%s5643_s6 + $0x1b0] sm:$0xf0] }
 0x615   : > { %2403 = vmatpush.bf16.msrb.mxu1 %v4085_v1  ;;  %v4639_v42 = vld [vmem:[%s5643_s6 + $0x224] sm:$0xf0]  ;;  %v3737_v47 = vor.u32 %v4571_v43, %v3734_v44  ;;  %v4635_v48 = vld [vmem:[%s5643_s6 + $0x20c] sm:$0xf]  ;;  %v3900_v39 = vld [vmem:[%s5643_s6 + $0x150] sm:$0xf] }
 0x616   : > { %2431 = vmatpush.bf16.msrb.mxu3 %v4089_v5  ;;  %v3989_v46 = vor.u32 %v4639_v42, %v3988_v40  ;;  %v3990_v49 = vld [vmem:[%s5643_s6 + $0x228] sm:$0xf0]  ;;  %v1552_v5 = vperm.slane %v1504_v0, 1  ;;  %v4616_v40 = vld [vmem:[%s5643_s6 + $0x16c] sm:$0xf0] }
 0x617   : > { %2390 = vmatpush.bf16.msrb.mxu0 %v3797_v10  ;;  %v3993_v50 = vor.u32 %v4635_v48, %v3990_v49  ;;  %v4156_v43 = vld [vmem:[%s5643_s6 + $0x350] sm:$0xf]  ;;  %v4158_v48 = vld [vmem:[%s5643_s6 + $0x370] sm:$0xf0]  ;;  %v3901_v49 = vor.u32 %v4616_v40, %v3900_v39 }
 0x618   : > { %2418 = vmatpush.bf16.msrb.mxu2 %v3801_v16  ;;  %v4628_v16 = vld [vmem:[%s5643_s6 + $0x1d4] sm:$0xf]  ;;  %v4680_v44 = vld [vmem:[%s5643_s6 + $0x36c] sm:$0xf0] }
 0x619   : > { %2404 = vmatpush.bf16.msrb.mxu1 %v4053_v15  ;;  %v4696_v15 = vld [vmem:[%s5643_s6 + $0x3ec] sm:$0xf0] }
 0x61a   : > { %2432 = vmatpush.bf16.msrb.mxu3 %v4057_v22  ;;  %v3966_v22 = vld [vmem:[%s5643_s6 + $0x1f0] sm:$0xf0]  ;;  %v4600_v0 = vld [vmem:[%s5643_s6 + $0xec] sm:$0xf0] }
 0x61b   : > { %2391 = vmatpush.bf16.msrb.mxu0 %v3765_v30  ;;  %v3932_v30 = vld [vmem:[%s5643_s6 + $0x190] sm:$0xf]  ;;  %v3969_v32 = vor.u32 %v4628_v16, %v3966_v22  ;;  %v4062_v22 = vld [vmem:[%s5643_s6 + $0x2b0] sm:$0xf0] }
 0x61c   : > { %2419 = vmatpush.bf16.msrb.mxu2 %v3769_v35  ;;  %v4688_v35 = vld [vmem:[%s5643_s6 + $0x3ac] sm:$0xf0] }
 0x61d   : > { %2405 = vmatpush.bf16.msrb.mxu1 %v4021_v34  ;;  %v4188_v34 = vld [vmem:[%s5643_s6 + $0x390] sm:$0xf] }
 0x61e   : > { %2433 = vmatpush.bf16.msrb.mxu3 %v4025_v11  ;;  %v4190_v11 = vld [vmem:[%s5643_s6 + $0x3b0] sm:$0xf0]  ;;  %v4189_v38 = vor.u32 %v4688_v35, %v4188_v34  ;;  %v3804_v12 = vld [vmem:[%s5643_s6 + $0x90] sm:$0xf] }
 0x61f   : > { %2392 = vmatpush.bf16.msrb.mxu0 %v3733_v41  ;;  %v3937_v41 = vor.u32 %v4620_v24, %v3934_v36  ;;  %v4592_v13 = vld [vmem:[%s5643_s6 + $0xac] sm:$0xf0]  ;;  %v4580_v34 = vld [vmem:[%s5643_s6 + $0x54] sm:$0xf] }
 0x620   : > { %2420 = vmatpush.bf16.msrb.mxu2 %v3737_v47  ;;  %v4676_v47 = vld [vmem:[%s5643_s6 + $0x354] sm:$0xf]  ;;  %v4060_v16 = vld [vmem:[%s5643_s6 + $0x290] sm:$0xf] }
 0x621   : > { %2406 = vmatpush.bf16.msrb.mxu1 %v3989_v46  ;;  %v3902_v46 = vld [vmem:[%s5643_s6 + $0x170] sm:$0xf0]  ;;  %v3996_v39 = vld [vmem:[%s5643_s6 + $0x210] sm:$0xf] }
 0x622   : > { %2434 = vmatpush.bf16.msrb.mxu3 %v3993_v50  ;;  %v4157_v50 = vor.u32 %v4680_v44, %v4156_v43  ;;  %v3774_v35 = vld [vmem:[%s5643_s6 + $0x70] sm:$0xf0]  ;;  %v4640_v40 = vld [vmem:[%s5643_s6 + $0x22c] sm:$0xf0] }
 0x623   : > { %v4644_v24 = vld [vmem:[%s5643_s6 + $0x254] sm:$0xf] }
 0x624   : > { %v4030_v36 = vld [vmem:[%s5643_s6 + $0x270] sm:$0xf0] }
 0x625   : > { %v4572_v43 = vld [vmem:[%s5643_s6 + $0x14] sm:$0xf] }
 0x626   : > { %v3742_v44 = vld [vmem:[%s5643_s6 + $0x30] sm:$0xf0] }
 0x656   : > { %v1511_v26 = vpop.xlane.xlu0 %1510 }
 0x657   : > { %v1522_v37 = vmul.f32 %v1521_v29, %v1511_v26  ;;  %v4684_v26 = vld [vmem:[%s5643_s6 + $0x394] sm:$0xf] }
 0x658   : > { %v4193_v42 = vor.u32 %v4684_v26, %v4190_v11  ;;  %v3740_v26 = vld [vmem:[%s5643_s6 + $0x10] sm:$0xf] }
 0x659   : > { %v1524_v45 = vadd.f32 1e-05, %v1522_v37  ;;  %v3933_v37 = vor.u32 %v4624_v31, %v3932_v30 }
 0x65b   : > { %4963 = vrsqrt.f32 %v1524_v45  ;;  %vm1532_vm15 = vweird.f32 %v1524_v45 }
 0x65e   : > { %v1514_v51 = vpop.xlane.xlu0 %1513 }
 0x65f   : > { %v1523_v52 = vmul.f32 %v1521_v29, %v1514_v51  ;;  %v4221_v29 = vor.u32 %v4696_v15, %v4220_v14  ;;  %v3868_v51 = vld [vmem:[%s5643_s6 + $0x110] sm:$0xf] }
 0x661   : > { %v4964_v53 = vpop.eup %4963  ;;  %v1525_v54 = vadd.f32 1e-05, %v1523_v52  ;;  %v4608_v52 = vld [vmem:[%s5643_s6 + $0x12c] sm:$0xf0] }
 0x662   : > { %v1527_v55 = vmul.f32 %v4964_v53, %v1524_v45  ;;  %vm1533_vm14 = vweird.f32 %v4964_v53  ;;  %v4612_v45 = vld [vmem:[%s5643_s6 + $0x154] sm:$0xf] }
 0x663   : > { %4965 = vrsqrt.f32 %v1525_v54  ;;  %vm1534_vm0 = vmor %vm1532_vm15, %vm1533_vm14  ;;  %vm1542_vm2 = vweird.f32 %v1525_v54 }
 0x664   : > { %v1528_v56 = vmul.f32 %v4964_v53, %v1527_v55  ;;  %v4124_v55 = vld [vmem:[%s5643_s6 + $0x310] sm:$0xf] }
 0x666   : > { %v1529_v57 = vmul.f32 0.5, %v1528_v56  ;;  %v4672_v56 = vld [vmem:[%s5643_s6 + $0x32c] sm:$0xf0] }
 0x668   : > { %v1530_v58 = vsub.f32 1.5, %v1529_v57  ;;  %v4604_v57 = vld [vmem:[%s5643_s6 + $0x114] sm:$0xf] }
 0x669   : > { %v4966_v59 = vpop.eup %4965 }
 0x66a   : > { %v1537_v60 = vmul.f32 %v4966_v59, %v1525_v54  ;;  %v1531_v61 = vmul.f32 %v4964_v53, %v1530_v58  ;;  %vm1543_vm1 = vweird.f32 %v4966_v59  ;;  %v4161_v54 = vor.u32 %v4676_v47, %v4158_v48  ;;  %v3870_v58 = vld [vmem:[%s5643_s6 + $0x130] sm:$0xf0]  ;;  %v3972_v47 = vld [vmem:[%s5643_s6 + $0x1d8] sm:$0xf] }
 0x66b   : > { %vm1544_vm3 = vmor %vm1542_vm2, %vm1543_vm1  ;;  %v4633_v48 = vld [vmem:[%s5643_s6 + $0x1f4] sm:$0xf0] }
 0x66c   : > { %v1538_v62 = vmul.f32 %v4966_v59, %v1537_v60  ;;  %v1535_v1 = vsel %vm1534_vm0, %v4964_v53, %v1531_v61  ;;  %v3905_v53 = vor.u32 %v4612_v45, %v3902_v46  ;;  %v4126_v60 = vld [vmem:[%s5643_s6 + $0x330] sm:$0xf0]  ;;  %v3869_v61 = vor.u32 %v4608_v52, %v3868_v51  ;;  %v4629_v51 = vld [vmem:[%s5643_s6 + $0x1dc] sm:$0xf] }
 0x66d   : > { %v1546_v6 = vmul.f32 %v1535_v1, %v5857_v19  ;;  %v1547_v7 = vmul.f32 %v1535_v1, %v5859_v20  ;;  %v3873_v1 = vor.u32 %v4604_v57, %v3870_v58  ;;  %v4636_v45 = vld [vmem:[%s5643_s6 + $0x214] sm:$0xf]  ;;  %v3745_v57 = vor.u32 %v4572_v43, %v3742_v44  ;;  %v4661_v43 = vld [vmem:[%s5643_s6 + $0x2dc] sm:$0xf] }
 0x66e   : > { %v1539_v63 = vmul.f32 0.5, %v1538_v62  ;;  %v4125_v62 = vor.u32 %v4672_v56, %v4124_v55  ;;  %v3998_v46 = vld [vmem:[%s5643_s6 + $0x230] sm:$0xf0]  ;;  %v4693_v55 = vld [vmem:[%s5643_s6 + $0x3dc] sm:$0xf] }
 0x66f   : > { %v1555_v17 = vmul.f32 %v1551_v4, %v1546_v6  ;;  %v1556_v19 = vmul.f32 %v1552_v5, %v1547_v7  ;;  %v3838_v6 = vld [vmem:[%s5643_s6 + $0xf0] sm:$0xf0]  ;;  %v4230_v56 = vld [vmem:[%s5643_s6 + $0x3f8] sm:$0xf0]  ;;  %v4001_v58 = vor.u32 %v4636_v45, %v3998_v46 }
 0x670   : > { %v1540_v2 = vsub.f32 1.5, %v1539_v63  ;;  %v3836_v63 = vld [vmem:[%s5643_s6 + $0xd0] sm:$0xf]  ;;  %v4660_v7 = vld [vmem:[%s5643_s6 + $0x2d4] sm:$0xf] }
 0x671   : > { %v4102_v44 = vld [vmem:[%s5643_s6 + $0x2f8] sm:$0xf0] }
 0x672   : > { %v1541_v3 = vmul.f32 %v4966_v59, %v1540_v2 }
 0x674   : > { %v1545_v8 = vsel %vm1544_vm3, %v4966_v59, %v1541_v3  ;;  %v4668_v59 = vld [vmem:[%s5643_s6 + $0x314] sm:$0xf]  ;;  %v4092_v3 = vld [vmem:[%s5643_s6 + $0x2d0] sm:$0xf] }
 0x675   : > { %v1548_v9 = vmul.f32 %v1545_v8, %v5861_v21  ;;  %v1549_v10 = vmul.f32 %v1545_v8, %v5867_v25  ;;  %v4222_v21 = vld [vmem:[%s5643_s6 + $0x3f0] sm:$0xf0]  ;;  %v4129_v2 = vor.u32 %v4668_v59, %v4126_v60  ;;  %v3973_v59 = vor.u32 %v4633_v48, %v3972_v47  ;;  %v3812_v47 = vld [vmem:[%s5643_s6 + $0x98] sm:$0xf] }
 0x676   : > { %v4225_v33 = vor.u32 %v4692_v23, %v4222_v21  ;;  %v4094_v8 = vld [vmem:[%s5643_s6 + $0x2f0] sm:$0xf0]  ;;  %v3805_v23 = vor.u32 %v4592_v13, %v3804_v12  ;;  %v4593_v48 = vld [vmem:[%s5643_s6 + $0xb4] sm:$0xf0] }
 0x677   : > { %v1557_v20 = vmul.f32 %v1551_v4, %v1548_v9  ;;  %v1558_v18 = vmul.f32 %v1552_v5, %v1549_v10  ;;  %v4664_v4 = vld [vmem:[%s5643_s6 + $0x2ec] sm:$0xf0]  ;;  %v4596_v5 = vld [vmem:[%s5643_s6 + $0xd4] sm:$0xf]  ;;  %v3837_v9 = vor.u32 %v4600_v0, %v3836_v63  ;;  %v4097_v15 = vor.u32 %v4660_v7, %v4094_v8 }
 0x678   : > { %v4093_v10 = vor.u32 %v4664_v4, %v4092_v3  ;;  %v3841_v14 = vor.u32 %v4596_v5, %v3838_v6  ;;  %v4233_v0 = vor.u32 %v4693_v55, %v4230_v56  ;;  %v4621_v3 = vld [vmem:[%s5643_s6 + $0x19c] sm:$0xf] }
 0x679   : > { %v6021_v25 = vpack.c.bf16 %v1557_v20, %v1555_v17  ;;  %v6023_v27 = vpack.c.bf16 %v1558_v18, %v1556_v19  ;;  %v4656_v17 = vld [vmem:[%s5643_s6 + $0x2ac] sm:$0xf0]  ;;  %v4588_v19 = vld [vmem:[%s5643_s6 + $0x94] sm:$0xf]  ;;  %v3942_v4 = vld [vmem:[%s5643_s6 + $0x1b8] sm:$0xf0] }
 0x67a   : > { %v3806_v20 = vld [vmem:[%s5643_s6 + $0xb0] sm:$0xf0]  ;;  %v4061_v21 = vor.u32 %v4656_v17, %v4060_v16  ;;  %v4685_v5 = vld [vmem:[%s5643_s6 + $0x39c] sm:$0xf]  ;;  %v3945_v12 = vor.u32 %v4621_v3, %v3942_v4 }
 0x67b   : > { %2337 = vmatmul.bf16.vlgmr.msra.gmra.mxu0 %v6021_v25  ;;  %2351 = vmatmul.bf16.vlgmr.msra.gmra.mxu1 %v6023_v27  ;;  %v4652_v18 = vld [vmem:[%s5643_s6 + $0x294] sm:$0xf]  ;;  %v3809_v30 = vor.u32 %v4588_v19, %v3806_v20  ;;  %v4198_v6 = vld [vmem:[%s5643_s6 + $0x3b8] sm:$0xf0] }
 0x67c   : > { %2365 = vmatmul.bf16.vlgmr.msra.gmra.mxu2 %v6021_v25  ;;  %2379 = vmatmul.bf16.vlgmr.msra.gmra.mxu3 %v6023_v27  ;;  %v4065_v31 = vor.u32 %v4652_v18, %v4062_v22  ;;  %v4201_v13 = vor.u32 %v4685_v5, %v4198_v6  ;;  %v4613_v16 = vld [vmem:[%s5643_s6 + $0x15c] sm:$0xf] }
 0x67d   : > { %2441 = vmatpush.bf16.msra.mxu0 %v3965_v28  ;;  %2455 = vmatpush.bf16.msra.mxu1 %v4221_v29  ;;  %v3772_v28 = vld [vmem:[%s5643_s6 + $0x50] sm:$0xf]  ;;  %v3910_v17 = vld [vmem:[%s5643_s6 + $0x178] sm:$0xf0] }
 0x67e   : > { %2469 = vmatpush.bf16.msra.mxu2 %v3969_v32  ;;  %2483 = vmatpush.bf16.msra.mxu3 %v4225_v33  ;;  %v4584_v29 = vld [vmem:[%s5643_s6 + $0x6c] sm:$0xf0]  ;;  %v4677_v19 = vld [vmem:[%s5643_s6 + $0x35c] sm:$0xf] }
 0x67f   : > { %v4028_v32 = vld [vmem:[%s5643_s6 + $0x250] sm:$0xf]  ;;  %v3773_v11 = vor.u32 %v4584_v29, %v3772_v28  ;;  %v4166_v20 = vld [vmem:[%s5643_s6 + $0x378] sm:$0xf0]  ;;  %v3913_v28 = vor.u32 %v4613_v16, %v3910_v17 }
 0x680   : > { %v4648_v33 = vld [vmem:[%s5643_s6 + $0x26c] sm:$0xf0]  ;;  %v4169_v29 = vor.u32 %v4677_v19, %v4166_v20  ;;  %v4653_v55 = vld [vmem:[%s5643_s6 + $0x29c] sm:$0xf] }
 0x681   : > { %2442 = vmatpush.bf16.msra.mxu0 %v3933_v37  ;;  %2456 = vmatpush.bf16.msra.mxu1 %v4189_v38  ;;  %v4029_v37 = vor.u32 %v4648_v33, %v4028_v32  ;;  %v4576_v38 = vld [vmem:[%s5643_s6 + $0x2c] sm:$0xf0]  ;;  %v4605_v32 = vld [vmem:[%s5643_s6 + $0x11c] sm:$0xf] }
 0x682   : > { %2470 = vmatpush.bf16.msra.mxu2 %v3937_v41  ;;  %2484 = vmatpush.bf16.msra.mxu3 %v4193_v42  ;;  %v3777_v41 = vor.u32 %v4580_v34, %v3774_v35  ;;  %v4033_v42 = vor.u32 %v4644_v24, %v4030_v36  ;;  %v3741_v52 = vor.u32 %v4576_v38, %v3740_v26  ;;  %v3878_v33 = vld [vmem:[%s5643_s6 + $0x138] sm:$0xf0]  ;;  %v3844_v26 = vld [vmem:[%s5643_s6 + $0xd8] sm:$0xf] }
 0x683   : > { %v4669_v34 = vld [vmem:[%s5643_s6 + $0x31c] sm:$0xf] }
 0x684   : > { %v4134_v35 = vld [vmem:[%s5643_s6 + $0x338] sm:$0xf0] }
 0x685   : > { %2443 = vmatpush.bf16.msra.mxu0 %v3901_v49  ;;  %2457 = vmatpush.bf16.msra.mxu1 %v4157_v50  ;;  %v4228_v49 = vld [vmem:[%s5643_s6 + $0x3d8] sm:$0xf]  ;;  %v4137_v38 = vor.u32 %v4669_v34, %v4134_v35  ;;  %v4070_v56 = vld [vmem:[%s5643_s6 + $0x2b8] sm:$0xf0] }
 0x686   : > { %2471 = vmatpush.bf16.msra.mxu2 %v3905_v53  ;;  %2485 = vmatpush.bf16.msra.mxu3 %v4161_v54  ;;  %v4697_v50 = vld [vmem:[%s5643_s6 + $0x3f4] sm:$0xf0]  ;;  %v3997_v53 = vor.u32 %v4640_v40, %v3996_v39  ;;  %v3974_v54 = vld [vmem:[%s5643_s6 + $0x1f8] sm:$0xf0] }
 0x687   : > { %v4229_v60 = vor.u32 %v4697_v50, %v4228_v49  ;;  %v3977_v63 = vor.u32 %v4629_v51, %v3974_v54  ;;  %v4100_v39 = vld [vmem:[%s5643_s6 + $0x2d8] sm:$0xf]  ;;  %v4105_v50 = vor.u32 %v4661_v43, %v4102_v44  ;;  %v3814_v54 = vld [vmem:[%s5643_s6 + $0xb8] sm:$0xf0] }
 0x688   : > { %v4665_v40 = vld [vmem:[%s5643_s6 + $0x2f4] sm:$0xf0]  ;;  %v4645_v3 = vld [vmem:[%s5643_s6 + $0x25c] sm:$0xf] }
 0x689   : > { %2444 = vmatpush.bf16.msra.mxu0 %v3869_v61  ;;  %2458 = vmatpush.bf16.msra.mxu1 %v4125_v62  ;;  %v3940_v61 = vld [vmem:[%s5643_s6 + $0x198] sm:$0xf]  ;;  %v4101_v46 = vor.u32 %v4665_v40, %v4100_v39  ;;  %v4038_v4 = vld [vmem:[%s5643_s6 + $0x278] sm:$0xf0]  ;;  %v4348_v39 = vld [vmem:[%s5663_s0 + $0xd0] sm:$0xf] }
 0x68a   : > { %2472 = vmatpush.bf16.msra.mxu2 %v3873_v1  ;;  %2486 = vmatpush.bf16.msra.mxu3 %v4129_v2  ;;  %v4625_v62 = vld [vmem:[%s5643_s6 + $0x1b4] sm:$0xf0]  ;;  %v4637_v16 = vld [vmem:[%s5643_s6 + $0x21c] sm:$0xf] }
 0x68b   : > { %2393 = vmatmul.bf16.vlgmr.msrb.gmra.mxu0 %v6021_v25  ;;  %2407 = vmatmul.bf16.vlgmr.msrb.gmra.mxu1 %v6023_v27  ;;  %v4196_v1 = vld [vmem:[%s5643_s6 + $0x398] sm:$0xf]  ;;  %v3941_v7 = vor.u32 %v4625_v62, %v3940_v61  ;;  %v4073_v62 = vor.u32 %v4653_v55, %v4070_v56  ;;  %v4006_v17 = vld [vmem:[%s5643_s6 + $0x238] sm:$0xf0] }
 0x68c   : > { %2421 = vmatmul.bf16.vlgmr.msrb.gmra.mxu2 %v6021_v25  ;;  %2435 = vmatmul.bf16.vlgmr.msrb.gmra.mxu3 %v6023_v27  ;;  %v4689_v2 = vld [vmem:[%s5643_s6 + $0x3b4] sm:$0xf0] }
 0x68d   : > { %2445 = vmatpush.bf16.msra.mxu0 %v3837_v9  ;;  %2459 = vmatpush.bf16.msra.mxu1 %v4093_v10  ;;  %v4197_v8 = vor.u32 %v4689_v2, %v4196_v1  ;;  %v3908_v9 = vld [vmem:[%s5643_s6 + $0x158] sm:$0xf]  ;;  %v4581_v1 = vld [vmem:[%s5643_s6 + $0x5c] sm:$0xf] }
 0x68e   : > { %2473 = vmatpush.bf16.msra.mxu2 %v3841_v14  ;;  %2487 = vmatpush.bf16.msra.mxu3 %v4097_v15  ;;  %v4617_v10 = vld [vmem:[%s5643_s6 + $0x174] sm:$0xf0]  ;;  %v3782_v2 = vld [vmem:[%s5643_s6 + $0x78] sm:$0xf0] }
 0x68f   : > { %v4164_v14 = vld [vmem:[%s5643_s6 + $0x358] sm:$0xf]  ;;  %v3909_v18 = vor.u32 %v4617_v10, %v3908_v9  ;;  %v3785_v9 = vor.u32 %v4581_v1, %v3782_v2  ;;  %v4041_v10 = vor.u32 %v4645_v3, %v4038_v4  ;;  %v4428_v1 = vld [vmem:[%s5663_s0 + $0x170] sm:$0xf] }
 0x690   : > { %v4681_v15 = vld [vmem:[%s5643_s6 + $0x374] sm:$0xf0] }
 0x691   : > { %2446 = vmatpush.bf16.msra.mxu0 %v3805_v23  ;;  %2460 = vmatpush.bf16.msra.mxu1 %v4061_v21  ;;  %v4165_v22 = vor.u32 %v4681_v15, %v4164_v14  ;;  %v3876_v23 = vld [vmem:[%s5643_s6 + $0x118] sm:$0xf]  ;;  %v4573_v14 = vld [vmem:[%s5643_s6 + $0x1c] sm:$0xf] }
 0x692   : > { %2474 = vmatpush.bf16.msra.mxu2 %v3809_v30  ;;  %2488 = vmatpush.bf16.msra.mxu3 %v4065_v31  ;;  %v4609_v21 = vld [vmem:[%s5643_s6 + $0x134] sm:$0xf0]  ;;  %v3750_v15 = vld [vmem:[%s5643_s6 + $0x38] sm:$0xf0] }
 0x693   : > { %v4132_v30 = vld [vmem:[%s5643_s6 + $0x318] sm:$0xf]  ;;  %v3877_v24 = vor.u32 %v4609_v21, %v3876_v23  ;;  %v4300_v23 = vld [vmem:[%s5663_s0 + $0x70] sm:$0xf] }
 0x694   : > { %v4673_v31 = vld [vmem:[%s5643_s6 + $0x334] sm:$0xf0] }
 0x695   : > { %2447 = vmatpush.bf16.msra.mxu0 %v3773_v11  ;;  %2461 = vmatpush.bf16.msra.mxu1 %v4029_v37  ;;  %v4133_v36 = vor.u32 %v4673_v31, %v4132_v30  ;;  %v4601_v11 = vld [vmem:[%s5643_s6 + $0xf4] sm:$0xf0]  ;;  %v3881_v37 = vor.u32 %v4605_v32, %v3878_v33  ;;  %v4711_v30 = vld [vmem:[%s5663_s0 + $0x64] sm:$0xf0]  ;;  %v4364_v32 = vld [vmem:[%s5663_s0 + $0xf0] sm:$0xf] }
 0x696   : > { %2475 = vmatpush.bf16.msra.mxu2 %v3777_v41  ;;  %2489 = vmatpush.bf16.msra.mxu3 %v4033_v42  ;;  %v4597_v41 = vld [vmem:[%s5643_s6 + $0xdc] sm:$0xf]  ;;  %v3845_v45 = vor.u32 %v4601_v11, %v3844_v26  ;;  %v4068_v51 = vld [vmem:[%s5643_s6 + $0x298] sm:$0xf]  ;;  %v4276_v11 = vld [vmem:[%s5663_s0 + $0x40] sm:$0xf] }
 0x697   : > { %v3846_v42 = vld [vmem:[%s5643_s6 + $0xf8] sm:$0xf0]  ;;  %v4713_v21 = vld [vmem:[%s5663_s0 + $0x74] sm:$0xf0] }
 0x698   : > { %v3849_v49 = vor.u32 %v4597_v41, %v3846_v42  ;;  %v4729_v33 = vld [vmem:[%s5663_s0 + $0xf4] sm:$0xf0]  ;;  %v4268_v42 = vld [vmem:[%s5663_s0 + $0x30] sm:$0xf] }
 0x699   : > { %2448 = vmatpush.bf16.msra.mxu0 %v3741_v52  ;;  %2462 = vmatpush.bf16.msra.mxu1 %v3997_v53  ;;  %v4657_v52 = vld [vmem:[%s5643_s6 + $0x2b4] sm:$0xf0]  ;;  %v4589_v53 = vld [vmem:[%s5643_s6 + $0x9c] sm:$0xf]  ;;  %v4365_v34 = vor.u32 %v4729_v33, %v4364_v32 }
 0x69a   : > { %2476 = vmatpush.bf16.msra.mxu2 %v3745_v57  ;;  %2490 = vmatpush.bf16.msra.mxu3 %v4001_v58  ;;  %v3813_v57 = vor.u32 %v4593_v48, %v3812_v47  ;;  %v4069_v58 = vor.u32 %v4657_v52, %v4068_v51  ;;  %v3817_v61 = vor.u32 %v4589_v53, %v3814_v54  ;;  %v4725_v40 = vld [vmem:[%s5663_s0 + $0xd4] sm:$0xf0]  ;;  %v4260_v48 = vld [vmem:[%s5663_s0 + $0x20] sm:$0xf]  ;;  %v4332_v51 = vld [vmem:[%s5663_s0 + $0xb0] sm:$0xf] }
 0x69b   : > { %v4349_v41 = vor.u32 %v4725_v40, %v4348_v39  ;;  %v4705_v43 = vld [vmem:[%s5663_s0 + $0x34] sm:$0xf0]  ;;  %v4252_v54 = vld [vmem:[%s5663_s0 + $0x10] sm:$0xf]  ;;  %v4708_v39 = vld [vmem:[%s5663_s0 + $0x54] sm:$0xf] }
 0x69c   : > { %2449 = vmatmul.bf16.vlgmr.msra.gmra.mxu0 %v6021_v25  ;;  %2463 = vmatmul.bf16.vlgmr.msra.gmra.mxu1 %v6023_v27  ;;  %v4269_v44 = vor.u32 %v4705_v43, %v4268_v42  ;;  %v4721_v52 = vld [vmem:[%s5663_s0 + $0xb4] sm:$0xf0]  ;;  %v4286_v40 = vld [vmem:[%s5663_s0 + $0x58] sm:$0xf0] }
 0x69d   : > { %2497 = vmatpush.bf16.msrb.mxu0 %v3973_v59  ;;  %2511 = vmatpush.bf16.msrb.mxu1 %v4229_v60  ;;  %v3780_v59 = vld [vmem:[%s5643_s6 + $0x58] sm:$0xf]  ;;  %v4333_v53 = vor.u32 %v4721_v52, %v4332_v51  ;;  %v4358_v52 = vld [vmem:[%s5663_s0 + $0xe8] sm:$0xf0] }
 0x69e   : > { %2525 = vmatpush.bf16.msrb.mxu2 %v3977_v63  ;;  %2539 = vmatpush.bf16.msrb.mxu3 %v4233_v0  ;;  %v4585_v60 = vld [vmem:[%s5643_s6 + $0x74] sm:$0xf0] }
 0x69f   : > { %2477 = vmatmul.bf16.vlgmr.msra.gmra.mxu2 %v6021_v25  ;;  %2491 = vmatmul.bf16.vlgmr.msra.gmra.mxu3 %v6023_v27  ;;  %v4036_v63 = vld [vmem:[%s5643_s6 + $0x258] sm:$0xf]  ;;  %v3781_v5 = vor.u32 %v4585_v60, %v3780_v59 }
 0x6a0   : > { %v4649_v0 = vld [vmem:[%s5643_s6 + $0x274] sm:$0xf0] }
 0x6a1   : > { %2498 = vmatpush.bf16.msrb.mxu0 %v3941_v7  ;;  %2512 = vmatpush.bf16.msrb.mxu1 %v4197_v8  ;;  %v4037_v6 = vor.u32 %v4649_v0, %v4036_v63  ;;  %v3748_v7 = vld [vmem:[%s5643_s6 + $0x18] sm:$0xf]  ;;  %v4244_v63 = vld [vmem:[%s5663_s0] sm:$0xf]  ;;  %v4699_v0 = vld [vmem:[%s5663_s0 + $0x4] sm:$0xf0] }
 0x6a2   : > { %2526 = vmatpush.bf16.msrb.mxu2 %v3945_v12  ;;  %2540 = vmatpush.bf16.msrb.mxu3 %v4201_v13  ;;  %v4577_v8 = vld [vmem:[%s5643_s6 + $0x34] sm:$0xf0]  ;;  %v4245_v3 = vor.u32 %v4699_v0, %v4244_v63  ;;  %v4476_v0 = vld [vmem:[%s5663_s0 + $0x1d0] sm:$0xf] }
 0x6a3   : > { %v4004_v12 = vld [vmem:[%s5643_s6 + $0x218] sm:$0xf]  ;;  %v3749_v19 = vor.u32 %v4577_v8, %v3748_v7  ;;  %v4302_v7 = vld [vmem:[%s5663_s0 + $0x78] sm:$0xf0] }
 0x6a4   : > { %v4641_v13 = vld [vmem:[%s5643_s6 + $0x234] sm:$0xf0] }
 0x6a5   : > { %2499 = vmatpush.bf16.msrb.mxu0 %v3909_v18  ;;  %2513 = vmatpush.bf16.msrb.mxu1 %v4165_v22  ;;  %v4005_v20 = vor.u32 %v4641_v13, %v4004_v12  ;;  %v3753_v18 = vor.u32 %v4573_v14, %v3750_v15  ;;  %v4009_v22 = vor.u32 %v4637_v16, %v4006_v17  ;;  %v4701_v55 = vld [vmem:[%s5663_s0 + $0x14] sm:$0xf0] }
 0x6a6   : > { %2527 = vmatpush.bf16.msrb.mxu2 %v3913_v28  ;;  %2541 = vmatpush.bf16.msrb.mxu3 %v4169_v29  ;;  %v4301_v28 = vor.u32 %v4713_v21, %v4300_v23  ;;  %v4292_v29 = vld [vmem:[%s5663_s0 + $0x60] sm:$0xf]  ;;  %v4253_v56 = vor.u32 %v4701_v55, %v4252_v54  ;;  %v4745_v4 = vld [vmem:[%s5663_s0 + $0x174] sm:$0xf0]  ;;  %v4710_v23 = vld [vmem:[%s5663_s0 + $0x64] sm:$0xf] }
 0x6a7   : > { %v4293_v31 = vor.u32 %v4711_v30, %v4292_v29  ;;  %v4294_v21 = vld [vmem:[%s5663_s0 + $0x68] sm:$0xf0]  ;;  %v4308_v30 = vld [vmem:[%s5663_s0 + $0x80] sm:$0xf] }
 0x6a8   : > { %v4297_v29 = vor.u32 %v4710_v23, %v4294_v21 }
 0x6a9   : > { %2500 = vmatpush.bf16.msrb.mxu0 %v3877_v24  ;;  %2514 = vmatpush.bf16.msrb.mxu1 %v4133_v36  ;;  %v4356_v24 = vld [vmem:[%s5663_s0 + $0xe0] sm:$0xf]  ;;  %v4727_v36 = vld [vmem:[%s5663_s0 + $0xe4] sm:$0xf0] }
 0x6aa   : > { %2528 = vmatpush.bf16.msrb.mxu2 %v3881_v37  ;;  %2542 = vmatpush.bf16.msrb.mxu3 %v4137_v38  ;;  %v4357_v26 = vor.u32 %v4727_v36, %v4356_v24  ;;  %v4707_v37 = vld [vmem:[%s5663_s0 + $0x44] sm:$0xf0]  ;;  %v4728_v36 = vld [vmem:[%s5663_s0 + $0xf4] sm:$0xf] }
 0x6ab   : > { %v4277_v38 = vor.u32 %v4707_v37, %v4276_v11  ;;  %v4412_v37 = vld [vmem:[%s5663_s0 + $0x150] sm:$0xf] }
 0x6ad   : > { %2501 = vmatpush.bf16.msrb.mxu0 %v3845_v45  ;;  %2515 = vmatpush.bf16.msrb.mxu1 %v4101_v46  ;;  %v4340_v45 = vld [vmem:[%s5663_s0 + $0xc0] sm:$0xf]  ;;  %v4723_v46 = vld [vmem:[%s5663_s0 + $0xc4] sm:$0xf0] }
 0x6ae   : > { %2529 = vmatpush.bf16.msrb.mxu2 %v3849_v49  ;;  %2543 = vmatpush.bf16.msrb.mxu3 %v4105_v50  ;;  %v4341_v47 = vor.u32 %v4723_v46, %v4340_v45  ;;  %v4703_v49 = vld [vmem:[%s5663_s0 + $0x24] sm:$0xf0]  ;;  %v4484_v45 = vld [vmem:[%s5663_s0 + $0x1e0] sm:$0xf] }
 0x6af   : > { %v4261_v50 = vor.u32 %v4703_v49, %v4260_v48  ;;  %v4759_v46 = vld [vmem:[%s5663_s0 + $0x1e4] sm:$0xf0] }
 0x6b0   : > { %v4485_v51 = vor.u32 %v4759_v46, %v4484_v45 }
 0x6b1   : > { %2502 = vmatpush.bf16.msrb.mxu0 %v3813_v57  ;;  %2516 = vmatpush.bf16.msrb.mxu1 %v4069_v58  ;;  %v4324_v57 = vld [vmem:[%s5663_s0 + $0xa0] sm:$0xf]  ;;  %v4719_v58 = vld [vmem:[%s5663_s0 + $0xa4] sm:$0xf0] }
 0x6b2   : > { %2530 = vmatpush.bf16.msrb.mxu2 %v3817_v61  ;;  %2544 = vmatpush.bf16.msrb.mxu3 %v4073_v62  ;;  %v4325_v61 = vor.u32 %v4719_v58, %v4324_v57  ;;  %v4706_v57 = vld [vmem:[%s5663_s0 + $0x44] sm:$0xf]  ;;  %v4278_v58 = vld [vmem:[%s5663_s0 + $0x48] sm:$0xf0] }
 0x6b3   : > { %v4281_v63 = vor.u32 %v4706_v57, %v4278_v58 }
 0x6b5   : > { %2503 = vmatpush.bf16.msrb.mxu0 %v3781_v5  ;;  %2517 = vmatpush.bf16.msrb.mxu1 %v4037_v6  ;;  %v4429_v5 = vor.u32 %v4745_v4, %v4428_v1  ;;  %v4712_v6 = vld [vmem:[%s5663_s0 + $0x74] sm:$0xf]  ;;  %v4757_v1 = vld [vmem:[%s5663_s0 + $0x1d4] sm:$0xf0] }
 0x6b6   : > { %2531 = vmatpush.bf16.msrb.mxu2 %v3785_v9  ;;  %2545 = vmatpush.bf16.msrb.mxu3 %v4041_v10  ;;  %v4305_v8 = vor.u32 %v4712_v6, %v4302_v7  ;;  %v4316_v9 = vld [vmem:[%s5663_s0 + $0x90] sm:$0xf]  ;;  %v4717_v10 = vld [vmem:[%s5663_s0 + $0x94] sm:$0xf0]  ;;  %v4477_v4 = vor.u32 %v4757_v1, %v4476_v0 }
 0x6b7   : > { %v4317_v14 = vor.u32 %v4717_v10, %v4316_v9  ;;  %v4724_v9 = vld [vmem:[%s5663_s0 + $0xd4] sm:$0xf]  ;;  %v4350_v10 = vld [vmem:[%s5663_s0 + $0xd8] sm:$0xf0] }
 0x6b9   : > { %2504 = vmatpush.bf16.msrb.mxu0 %v3749_v19  ;;  %2518 = vmatpush.bf16.msrb.mxu1 %v4005_v20  ;;  %v4420_v19 = vld [vmem:[%s5663_s0 + $0x160] sm:$0xf]  ;;  %v4743_v20 = vld [vmem:[%s5663_s0 + $0x164] sm:$0xf0] }
 0x6ba   : > { %2532 = vmatpush.bf16.msrb.mxu2 %v3753_v18  ;;  %2546 = vmatpush.bf16.msrb.mxu3 %v4009_v22  ;;  %v4421_v22 = vor.u32 %v4743_v20, %v4420_v19  ;;  %v4270_v19 = vld [vmem:[%s5663_s0 + $0x38] sm:$0xf0]  ;;  %v4468_v20 = vld [vmem:[%s5663_s0 + $0x1c0] sm:$0xf] }
 0x6bc   : > { %2505 = vmatmul.bf16.vlgmr.msrb.gmra.mxu0 %v6021_v25  ;;  %2519 = vmatmul.bf16.vlgmr.msrb.gmra.mxu1 %v6023_v27 }
 0x6bd   : > { %2533 = vmatmul.bf16.vlgmr.msrb.gmra.mxu2 %v6021_v25  ;;  %2547 = vmatmul.bf16.vlgmr.msrb.gmra.mxu3 %v6023_v27  ;;  %v4284_v25 = vld [vmem:[%s5663_s0 + $0x50] sm:$0xf]  ;;  %v4709_v27 = vld [vmem:[%s5663_s0 + $0x54] sm:$0xf0] }
 0x6be   : > { %3109 = vmatpush.bf16.msra.mxu0 %v4301_v28  ;;  %3123 = vmatpush.bf16.msra.mxu1 %v4365_v34  ;;  %v4285_v35 = vor.u32 %v4709_v27, %v4284_v25  ;;  %v4492_v25 = vld [vmem:[%s5663_s0 + $0x1f0] sm:$0xf]  ;;  %v4761_v27 = vld [vmem:[%s5663_s0 + $0x1f4] sm:$0xf0] }
 0x6bf   : > { %3137 = vmatpush.bf16.msra.mxu2 %v4429_v5  ;;  %v4493_v24 = vor.u32 %v4761_v27, %v4492_v25 }
 0x6c1   : > { %3151 = vmatpush.bf16.msra.mxu3 %v4493_v24 }
 0x6c2   : > { %3110 = vmatpush.bf16.msra.mxu0 %v4293_v31  ;;  %3124 = vmatpush.bf16.msra.mxu1 %v4357_v26  ;;  %v4715_v31 = vld [vmem:[%s5663_s0 + $0x84] sm:$0xf0]  ;;  %v4366_v26 = vld [vmem:[%s5663_s0 + $0xf8] sm:$0xf0] }
 0x6c3   : > { %3138 = vmatpush.bf16.msra.mxu2 %v4421_v22  ;;  %v4309_v34 = vor.u32 %v4715_v31, %v4308_v30  ;;  %v4369_v11 = vor.u32 %v4728_v36, %v4366_v26  ;;  %v4755_v22 = vld [vmem:[%s5663_s0 + $0x1c4] sm:$0xf0]  ;;  %v4342_v30 = vld [vmem:[%s5663_s0 + $0xc8] sm:$0xf0] }
 0x6c4   : > { %v4469_v26 = vor.u32 %v4755_v22, %v4468_v20 }
 0x6c5   : > { %3152 = vmatpush.bf16.msra.mxu3 %v4485_v51 }
 0x6c6   : > { %3111 = vmatpush.bf16.msra.mxu0 %v4285_v35  ;;  %3125 = vmatpush.bf16.msra.mxu1 %v4349_v41 }
 0x6c9   : > { %3153 = vmatpush.bf16.msra.mxu3 %v4477_v4 }
 0x6ca   : > { %3112 = vmatpush.bf16.msra.mxu0 %v4277_v38  ;;  %3126 = vmatpush.bf16.msra.mxu1 %v4341_v47  ;;  %v4741_v38 = vld [vmem:[%s5663_s0 + $0x154] sm:$0xf0]  ;;  %v4726_v47 = vld [vmem:[%s5663_s0 + $0xe4] sm:$0xf] }
 0x6cb   : > { %v4413_v43 = vor.u32 %v4741_v38, %v4412_v37  ;;  %v4361_v55 = vor.u32 %v4726_v47, %v4358_v52 }
 0x6cd   : > { %3139 = vmatpush.bf16.msra.mxu2 %v4413_v43  ;;  %3154 = vmatpush.bf16.msra.mxu3 %v4469_v26 }
 0x6ce   : > { %3113 = vmatpush.bf16.msra.mxu0 %v4269_v44  ;;  %3127 = vmatpush.bf16.msra.mxu1 %v4333_v53  ;;  %v4289_v44 = vor.u32 %v4708_v39, %v4286_v40  ;;  %v4404_v53 = vld [vmem:[%s5663_s0 + $0x140] sm:$0xf] }
 0x6d2   : > { %3114 = vmatpush.bf16.msra.mxu0 %v4261_v50  ;;  %3128 = vmatpush.bf16.msra.mxu1 %v4325_v61 }
 0x6d6   : > { %3115 = vmatpush.bf16.msra.mxu0 %v4253_v56  ;;  %3129 = vmatpush.bf16.msra.mxu1 %v4317_v14  ;;  %v4739_v56 = vld [vmem:[%s5663_s0 + $0x144] sm:$0xf0]  ;;  %v4704_v14 = vld [vmem:[%s5663_s0 + $0x34] sm:$0xf] }
 0x6d7   : > { %v4405_v61 = vor.u32 %v4739_v56, %v4404_v53  ;;  %v4273_v36 = vor.u32 %v4704_v14, %v4270_v19  ;;  %v4702_v53 = vld [vmem:[%s5663_s0 + $0x24] sm:$0xf] }
 0x6d9   : > { %3140 = vmatpush.bf16.msra.mxu2 %v4405_v61 }
 0x6da   : > { %3116 = vmatpush.bf16.msra.mxu0 %v4245_v3  ;;  %3130 = vmatpush.bf16.msra.mxu1 %v4309_v34  ;;  %v4735_v34 = vld [vmem:[%s5663_s0 + $0x124] sm:$0xf0] }
 0x6de   : > { %3165 = vmatpush.bf16.msrb.mxu0 %v4305_v8  ;;  %3179 = vmatpush.bf16.msrb.mxu1 %v4369_v11 }
 0x6e2   : > { %3166 = vmatpush.bf16.msrb.mxu0 %v4297_v29  ;;  %3180 = vmatpush.bf16.msrb.mxu1 %v4361_v55  ;;  %v4722_v29 = vld [vmem:[%s5663_s0 + $0xc4] sm:$0xf]  ;;  %v4262_v55 = vld [vmem:[%s5663_s0 + $0x28] sm:$0xf0] }
 0x6e3   : > { %v4345_v38 = vor.u32 %v4722_v29, %v4342_v30  ;;  %v4460_v30 = vld [vmem:[%s5663_s0 + $0x1b0] sm:$0xf] }
 0x6e6   : > { %3167 = vmatpush.bf16.msrb.mxu0 %v4289_v44 }
 0x6ea   : > { %3168 = vmatpush.bf16.msrb.mxu0 %v4281_v63 }
 0x6ee   : > { %3169 = vmatpush.bf16.msrb.mxu0 %v4273_v36 }
 0x6f8   : > { %v2338_v59 = vpop.f32.mrf.mxu0  ;;  %v2352_v60 = vpop.f32.mrf.mxu1 }
 0x6f9   : > { %v6187_v62 = vadd.f32 %v2352_v60, %v2338_v59 }
 0x6fb   : > { %v4234_v2 = vmul.f32 -1.442695, %v6187_v62 }
 0x6fd   : > { %4967 = vpow2.f32 %v4234_v2 }
 0x6ff   : > { %v2366_v12 = vpop.f32.mrf.mxu2  ;;  %v2380_v13 = vpop.f32.mrf.mxu3 }
 0x700   : > { %v6198_v15 = vadd.f32 %v2380_v13, %v2366_v12  ;;  %v2340_v16 = vpop.f32.mrf.mxu0  ;;  %v2354_v17 = vpop.f32.mrf.mxu1  ;;  %v4396_v12 = vld [vmem:[%s5663_s0 + $0x130] sm:$0xf]  ;;  %v4737_v13 = vld [vmem:[%s5663_s0 + $0x134] sm:$0xf0] }
 0x701   : > { %v6202_v18 = vadd.f32 %v2354_v17, %v2340_v16  ;;  %v4397_v24 = vor.u32 %v4737_v13, %v4396_v12  ;;  %v4718_v12 = vld [vmem:[%s5663_s0 + $0xa4] sm:$0xf] }
 0x702   : > { %v4235_v28 = vmul.f32 -1.442695, %v6198_v15 }
 0x703   : > { %v4968_v32 = vpop.eup %4967  ;;  %v4238_v33 = vmul.f32 -1.442695, %v6202_v18  ;;  %3141 = vmatpush.bf16.msra.mxu2 %v4397_v24 }
 0x704   : > { %v6212_v35 = vadd.f32 1.0, %v4968_v32  ;;  %4969 = vpow2.f32 %v4235_v28  ;;  %v4353_v28 = vor.u32 %v4724_v9, %v4350_v10 }
 0x705   : > { %4971 = vpow2.f32 %v4238_v33  ;;  %v4388_v33 = vld [vmem:[%s5663_s0 + $0x120] sm:$0xf] }
 0x706   : > { %4973 = vrcp.f32 %v6212_v35  ;;  %3181 = vmatpush.bf16.msrb.mxu1 %v4353_v28  ;;  %v2594_v56 = vand.u32 2147483647, %v6212_v35  ;;  %v2596_v57 = vand.u32 2147483648, %v6212_v35  ;;  %vm2590_vm7 = vweird.f32 %v6212_v35 }
 0x707   : > { %v2368_v41 = vpop.f32.mrf.mxu2  ;;  %v2382_v42 = vpop.f32.mrf.mxu3 }
 0x708   : > { %v6224_v48 = vadd.f32 %v2382_v42, %v2368_v41  ;;  %v2394_v49 = vpop.f32.mrf.mxu0  ;;  %v2408_v50 = vpop.f32.mrf.mxu1  ;;  %v4389_v42 = vor.u32 %v4735_v34, %v4388_v33  ;;  %vm6304_vm8 = vcmp.eq.f32.partialorder %v2594_v56, 8.507059e+37  ;;  %v2597_v13 = vor.u32 1.1754944e-38, %v2596_v57 }
 0x709   : > { %v6228_v54 = vadd.f32 %v2408_v50, %v2394_v49 }
 0x70a   : > { %v4970_v59 = vpop.eup %4969  ;;  %v4239_v60 = vmul.f32 -1.442695, %v6224_v48  ;;  %3182 = vmatpush.bf16.msrb.mxu1 %v4345_v38  ;;  %3142 = vmatpush.bf16.msra.mxu2 %v4389_v42  ;;  %v4720_v42 = vld [vmem:[%s5663_s0 + $0xb4] sm:$0xf] }
 0x70b   : > { %v4972_v2 = vpop.eup %4971  ;;  %v6236_v3 = vadd.f32 1.0, %v4970_v59  ;;  %v4236_v8 = vmul.f32 -1.442695, %v6228_v54 }
 0x70c   : > { %v6238_v5 = vpop.eup %4973  ;;  %v6240_v6 = vadd.f32 1.0, %v4972_v2  ;;  %4975 = vpow2.f32 %v4239_v60 }
 0x70d   : > { %v2586_v7 = vmul.f32 %v6238_v5, %v6212_v35  ;;  %4977 = vrcp.f32 %v6236_v3  ;;  %vm2591_vm4 = vweird.f32 %v6238_v5  ;;  %vm2605_vm9 = vweird.f32 %v6236_v3 }
 0x70e   : > { %4979 = vrcp.f32 %v6240_v6  ;;  %v2656_v60 = vand.u32 2147483648, %v6240_v6  ;;  %vm2650_vm6 = vweird.f32 %v6240_v6  ;;  %vm6317_vm11 = vmor %vm2590_vm7, %vm2591_vm4  ;;  %v2611_v28 = vand.u32 2147483648, %v6236_v3 }
 0x70f   : > { %v2422_v16 = vpop.f32.mrf.mxu2  ;;  %v2436_v17 = vpop.f32.mrf.mxu3  ;;  %v2587_v31 = vsub.f32 1.0, %v2586_v7  ;;  %4981 = vpow2.f32 %v4236_v8  ;;  %v4265_v7 = vor.u32 %v4702_v53, %v4262_v55  ;;  %v2654_v8 = vand.u32 2147483647, %v6240_v6  ;;  %v4700_v55 = vld [vmem:[%s5663_s0 + $0x14] sm:$0xf] }
 0x710   : > { %v2396_v23 = vpop.f32.mrf.mxu0  ;;  %v2410_v21 = vpop.f32.mrf.mxu1  ;;  %v6261_v27 = vadd.f32 %v2436_v17, %v2422_v16  ;;  %v2657_v17 = vor.u32 1.1754944e-38, %v2656_v60  ;;  %v2609_v33 = vand.u32 2147483647, %v6236_v3 }
 0x711   : > { %v6257_v32 = vadd.f32 %v2410_v21, %v2396_v23  ;;  %v2588_v44 = vmul.f32 %v6238_v5, %v2587_v31  ;;  %3170 = vmatpush.bf16.msrb.mxu0 %v4265_v7  ;;  %vm2655_vm13 = vcmp.eq.f32.partialorder %v2654_v8, 8.507059e+37  ;;  %v4753_v31 = vld [vmem:[%s5663_s0 + $0x1b4] sm:$0xf0] }
 0x712   : > { %v4976_v25 = vpop.eup %4975  ;;  %v4237_v45 = vmul.f32 -1.442695, %v6261_v27  ;;  %vm2610_vm2 = vcmp.eq.f32.partialorder %v2609_v33, 8.507059e+37 }
 0x713   : > { %v6263_v11 = vpop.eup %4977  ;;  %v6265_v37 = vadd.f32 1.0, %v4976_v25  ;;  %v4240_v41 = vmul.f32 -1.442695, %v6257_v32  ;;  %v2589_v59 = vadd.f32 %v6238_v5, %v2588_v44  ;;  %v4461_v44 = vor.u32 %v4753_v31, %v4460_v30 }
 0x714   : > { %v6267_v39 = vpop.eup %4979  ;;  %v2601_v40 = vmul.f32 %v6263_v11, %v6236_v3  ;;  %vm2606_vm12 = vweird.f32 %v6263_v11 }
 0x715   : > { %v2646_v43 = vmul.f32 %v6267_v39, %v6240_v6  ;;  %4983 = vrcp.f32 %v6265_v37  ;;  %v4982_v46 = vpop.eup %4981  ;;  %vm2651_vm5 = vweird.f32 %v6267_v39  ;;  %v2593_v20 = vsel %vm6317_vm11, %v6238_v5, %v2589_v59  ;;  %vm6345_vm15 = vmor %vm2605_vm9, %vm2606_vm12  ;;  %3155 = vmatpush.bf16.msra.mxu3 %v4461_v44 }
 0x716   : > { %v2602_v47 = vsub.f32 1.0, %v2601_v40  ;;  %4985 = vpow2.f32 %v4240_v41  ;;  %v6296_v4 = vadd.f32 1.0, %v4982_v46  ;;  %vm6311_vm10 = vmor %vm2650_vm6, %vm2651_vm5  ;;  %v2598_v24 = vsel %vm6304_vm8, %v2597_v13, %v2593_v20  ;;  %v4380_v46 = vld [vmem:[%s5663_s0 + $0x110] sm:$0xf] }
 0x717   : > { %v2647_v49 = vsub.f32 1.0, %v2646_v43  ;;  %v2424_v50 = vpop.f32.mrf.mxu2  ;;  %v2438_v51 = vpop.f32.mrf.mxu3  ;;  %4987 = vpow2.f32 %v4237_v45  ;;  %v2669_v38 = vand.u32 2147483647, %v6265_v37  ;;  %vm2665_vm0 = vweird.f32 %v6265_v37  ;;  %v4334_v45 = vld [vmem:[%s5663_s0 + $0xb8] sm:$0xf0] }
 0x718   : > { %v6277_v52 = vadd.f32 %v2438_v51, %v2424_v50  ;;  %v2603_v1 = vmul.f32 %v6263_v11, %v2602_v47  ;;  %4989 = vrcp.f32 %v6296_v4  ;;  %v4733_v47 = vld [vmem:[%s5663_s0 + $0x114] sm:$0xf0]  ;;  %v4337_v7 = vor.u32 %v4720_v42, %v4334_v45  ;;  %v4422_v42 = vld [vmem:[%s5663_s0 + $0x168] sm:$0xf0] }
 0x719   : > { %v2648_v58 = vmul.f32 %v6267_v39, %v2647_v49  ;;  %v6288_v61 = vpop.f32.mrf.mxu0  ;;  %v6290_v63 = vpop.f32.mrf.mxu1  ;;  %v2612_v49 = vor.u32 1.1754944e-38, %v2611_v28  ;;  %vm2670_vm3 = vcmp.eq.f32.partialorder %v2669_v38, 8.507059e+37  ;;  %v4381_v8 = vor.u32 %v4733_v47, %v4380_v46  ;;  %v4246_v28 = vld [vmem:[%s5663_s0 + $0x8] sm:$0xf0]  ;;  %v4318_v38 = vld [vmem:[%s5663_s0 + $0x98] sm:$0xf0] }
 0x71a   : > { %v4241_v10 = vmul.f32 -1.442695, %v6277_v52  ;;  %v2604_v22 = vadd.f32 %v6263_v11, %v2603_v1  ;;  %3183 = vmatpush.bf16.msrb.mxu1 %v4337_v7  ;;  %v4747_v47 = vld [vmem:[%s5663_s0 + $0x184] sm:$0xf0]  ;;  %vm2620_vm6 = vweird.f32 %v6296_v4 }
 0x71b   : > { %v6292_v0 = vpop.eup %4983  ;;  %v2649_v2 = vadd.f32 %v6267_v39, %v2648_v58  ;;  %3143 = vmatpush.bf16.msra.mxu2 %v4381_v8  ;;  %v4740_v8 = vld [vmem:[%s5663_s0 + $0x154] sm:$0xf] }
 0x71c   : > { %v2661_v9 = vmul.f32 %v6292_v0, %v6265_v37  ;;  %v4986_v6 = vpop.eup %4985  ;;  %4991 = vpow2.f32 %v4241_v10  ;;  %vm2666_vm14 = vweird.f32 %v6292_v0  ;;  %v2608_v43 = vsel %vm6345_vm15, %v6263_v11, %v2604_v22  ;;  %v4254_v11 = vld [vmem:[%s5663_s0 + $0x18] sm:$0xf0]  ;;  %v4751_v10 = vld [vmem:[%s5663_s0 + $0x1a4] sm:$0xf0] }
 0x71d   : > { %v2653_v16 = vsel %vm6311_vm10, %v6267_v39, %v2649_v2  ;;  %v6330_v23 = vadd.f32 1.0, %v4986_v6  ;;  %v4988_v21 = vpop.eup %4987  ;;  %v2671_v39 = vand.u32 2147483648, %v6265_v37  ;;  %vm6363_vm1 = vmor %vm2665_vm0, %vm2666_vm14  ;;  %v2705_v37 = vmul.f32 %v2598_v24, %v6187_v62 }
 0x71e   : > { %v2662_v19 = vsub.f32 1.0, %v2661_v9  ;;  %v2658_v34 = vsel %vm2655_vm13, %v2657_v17, %v2653_v16  ;;  %v6367_v53 = vadd.f32 1.0, %v4988_v21  ;;  %v6371_v56 = vpop.eup %4989  ;;  %v2613_v59 = vsel %vm2610_vm2, %v2612_v49, %v2608_v43  ;;  %v4326_v16 = vld [vmem:[%s5663_s0 + $0xa8] sm:$0xf0]  ;;  %v4372_v17 = vld [vmem:[%s5663_s0 + $0x100] sm:$0xf] }
 0x71f   : > { %4993 = vrcp.f32 %v6330_v23  ;;  %v2709_v50 = vmul.f32 %v2658_v34, %v6202_v18  ;;  %v2465_v18 = vadd.f32 %v6290_v63, %v6288_v61  ;;  %v2672_v60 = vor.u32 1.1754944e-38, %v2671_v39  ;;  %v4452_v63 = vld [vmem:[%s5663_s0 + $0x1a0] sm:$0xf]  ;;  %v4698_v21 = vld [vmem:[%s5663_s0 + $0x4] sm:$0xf] }
 0x720   : > { %v2663_v29 = vmul.f32 %v6292_v0, %v2662_v19  ;;  %v2616_v61 = vmul.f32 %v6371_v56, %v6296_v4  ;;  %4995 = vrcp.f32 %v6367_v53  ;;  %v4731_v19 = vld [vmem:[%s5663_s0 + $0x104] sm:$0xf0]  ;;  %v2706_v20 = vmul.f32 %v2613_v59, %v6198_v15  ;;  %v4749_v15 = vld [vmem:[%s5663_s0 + $0x194] sm:$0xf0]  ;;  %v4436_v43 = vld [vmem:[%s5663_s0 + $0x180] sm:$0xf] }
 0x721   : > { %v2452_v40 = vpop.f32.mrf.mxu0  ;;  %v2466_v41 = vpop.f32.mrf.mxu1  ;;  %v2713_v13 = vmul.f32 %v2705_v37, %v2465_v18  ;;  %v4453_v34 = vor.u32 %v4751_v10, %v4452_v63  ;;  %v4329_v36 = vor.u32 %v4718_v12, %v4326_v16  ;;  %v4249_v45 = vor.u32 %v4698_v21, %v4246_v28  ;;  %v4714_v49 = vld [vmem:[%s5663_s0 + $0x84] sm:$0xf]  ;;  %v4310_v37 = vld [vmem:[%s5663_s0 + $0x88] sm:$0xf0]  ;;  %v4494_v18 = vld [vmem:[%s5663_s0 + $0x1f8] sm:$0xf0] }
 0x722   : > { %v2478_v5 = vpop.f32.mrf.mxu2  ;;  %v2492_v25 = vpop.f32.mrf.mxu3  ;;  %v2664_v26 = vadd.f32 %v6292_v0, %v2663_v29  ;;  %v2467_v3 = vadd.f32 %v2466_v41, %v2452_v40  ;;  %v4744_v29 = vld [vmem:[%s5663_s0 + $0x174] sm:$0xf]  ;;  %v2617_v24 = vsub.f32 1.0, %v2616_v61  ;;  %v4742_v41 = vld [vmem:[%s5663_s0 + $0x164] sm:$0xf]  ;;  %v4437_v7 = vor.u32 %v4747_v47, %v4436_v43 }
 0x723   : > { %v4992_v58 = vpop.eup %4991  ;;  %v2493_v14 = vadd.f32 %v2492_v25, %v2478_v5  ;;  %v4430_v5 = vld [vmem:[%s5663_s0 + $0x178] sm:$0xf0]  ;;  %v4444_v25 = vld [vmem:[%s5663_s0 + $0x190] sm:$0xf]  ;;  %3156 = vmatpush.bf16.msra.mxu3 %v4453_v34  ;;  %3184 = vmatpush.bf16.msrb.mxu1 %v4329_v36  ;;  %v4425_v59 = vor.u32 %v4742_v41, %v4422_v42  ;;  %v4313_v61 = vor.u32 %v4714_v49, %v4310_v37  ;;  %v4758_v10 = vld [vmem:[%s5663_s0 + $0x1e4] sm:$0xf]  ;;  %vm2621_vm4 = vweird.f32 %v6371_v56 }
 0x724   : > { %v2668_v57 = vsel %vm6363_vm1, %v6292_v0, %v2664_v26  ;;  %v2717_v1 = vmul.f32 %v2709_v50, %v2467_v3  ;;  %v6381_v62 = vadd.f32 1.0, %v4992_v58  ;;  %v4257_v0 = vor.u32 %v4700_v55, %v4254_v11  ;;  %v4716_v26 = vld [vmem:[%s5663_s0 + $0x94] sm:$0xf]  ;;  %v4486_v12 = vld [vmem:[%s5663_s0 + $0x1e8] sm:$0xf0]  ;;  %vm6447_vm7 = vmor %vm2620_vm6, %vm2621_vm4 }
 0x725   : > { %v6379_v2 = vpop.eup %4993  ;;  %v2673_v9 = vsel %vm2670_vm3, %v2672_v60, %v2668_v57  ;;  %v2714_v39 = vmul.f32 %v2706_v20, %v2493_v14  ;;  %v4433_v46 = vor.u32 %v4744_v29, %v4430_v5  ;;  %v4445_v55 = vor.u32 %v4749_v15, %v4444_v25  ;;  %v4760_v57 = vld [vmem:[%s5663_s0 + $0x1f4] sm:$0xf]  ;;  %v4478_v34 = vld [vmem:[%s5663_s0 + $0x1d8] sm:$0xf0]  ;;  %v4754_v42 = vld [vmem:[%s5663_s0 + $0x1c4] sm:$0xf] }
 0x726   : > { %4997 = vrcp.f32 %v6381_v62  ;;  %v2676_v22 = vmul.f32 %v6379_v2, %v6330_v23  ;;  %3171 = vmatpush.bf16.msrb.mxu0 %v4257_v0  ;;  %v2710_v30 = vmul.f32 %v2673_v9, %v6224_v48  ;;  %v6400_v31 = vpack.c.bf16 %v2717_v1, %v2713_v13  ;;  %v6411_v3 = vpop.eup %4995  ;;  %v4414_v0 = vld [vmem:[%s5663_s0 + $0x158] sm:$0xf0]  ;;  %v4470_v43 = vld [vmem:[%s5663_s0 + $0x1c8] sm:$0xf0]  ;;  %v4734_v49 = vld [vmem:[%s5663_s0 + $0x124] sm:$0xf] }
 0x727   : > { %v4373_v48 = vor.u32 %v4731_v19, %v4372_v17  ;;  %v4321_v11 = vor.u32 %v4716_v26, %v4318_v38  ;;  %v2618_v58 = vmul.f32 %v6371_v56, %v2617_v24  ;;  %v2631_v60 = vmul.f32 %v6411_v3, %v6367_v53  ;;  %3157 = vmatpush.bf16.msra.mxu3 %v4445_v55  ;;  %v4738_v17 = vld [vmem:[%s5663_s0 + $0x144] sm:$0xf]  ;;  %v4406_v19 = vld [vmem:[%s5663_s0 + $0x148] sm:$0xf0]  ;;  %v4736_v38 = vld [vmem:[%s5663_s0 + $0x134] sm:$0xf] }
 0x728   : > { %3117 = vmatmul.bf16.vlgmr.msra.gmra.mxu0 %v6400_v31  ;;  %v2677_v44 = vsub.f32 1.0, %v2676_v22  ;;  %v4497_v63 = vor.u32 %v4760_v57, %v4494_v18  ;;  %v2624_v13 = vand.u32 2147483647, %v6296_v4  ;;  %v4417_v14 = vor.u32 %v4740_v8, %v4414_v0  ;;  %v4390_v55 = vld [vmem:[%s5663_s0 + $0x128] sm:$0xf0] }
 0x729   : > { %3144 = vmatpush.bf16.msra.mxu2 %v4373_v48  ;;  %3185 = vmatpush.bf16.msrb.mxu1 %v4321_v11  ;;  %v2626_v20 = vand.u32 2147483648, %v6296_v4  ;;  %vm2681_vm5 = vweird.f32 %v6379_v2  ;;  %v4489_v21 = vor.u32 %v4758_v10, %v4486_v12  ;;  %v2686_v28 = vand.u32 2147483648, %v6330_v23  ;;  %v4752_v8 = vld [vmem:[%s5663_s0 + $0x1b4] sm:$0xf]  ;;  %v4462_v0 = vld [vmem:[%s5663_s0 + $0x1b8] sm:$0xf0] }
 0x72a   : > { %v2480_v6 = vpop.f32.mrf.mxu2  ;;  %v2494_v35 = vpop.f32.mrf.mxu3  ;;  %3172 = vmatpush.bf16.msrb.mxu0 %v4249_v45  ;;  %v2678_v9 = vmul.f32 %v6379_v2, %v2677_v44  ;;  %vm2680_vm8 = vweird.f32 %v6330_v23  ;;  %v2684_v25 = vand.u32 2147483647, %v6330_v23  ;;  %v4409_v4 = vor.u32 %v4738_v17, %v4406_v19  ;;  %v4398_v23 = vld [vmem:[%s5663_s0 + $0x138] sm:$0xf0]  ;;  %v4750_v17 = vld [vmem:[%s5663_s0 + $0x1a4] sm:$0xf] }
 0x72b   : > { %v2495_v33 = vadd.f32 %v2494_v35, %v2480_v6  ;;  %v2619_v6 = vadd.f32 %v6371_v56, %v2618_v58  ;;  %v2632_v35 = vsub.f32 1.0, %v2631_v60  ;;  %3158 = vmatpush.bf16.msra.mxu3 %v4437_v7  ;;  %vm6459_vm9 = vmor %vm2680_vm8, %vm2681_vm5  ;;  %vm2625_vm10 = vcmp.eq.f32.partialorder %v2624_v13, 8.507059e+37  ;;  %v4382_v13 = vld [vmem:[%s5663_s0 + $0x118] sm:$0xf0]  ;;  %v5000_v60 = vld [vmem:[#allocation3 + $0x18] sm:$0xff] }
 0x72c   : > { %v6415_v50 = vpop.eup %4997  ;;  %v2679_v22 = vadd.f32 %v6379_v2, %v2678_v9  ;;  %vm2635_vm11 = vweird.f32 %v6367_v53  ;;  %v2641_v48 = vand.u32 2147483648, %v6367_v53  ;;  %v2687_v41 = vor.u32 1.1754944e-38, %v2686_v28  ;;  %v4374_v28 = vld [vmem:[%s5663_s0 + $0x108] sm:$0xf0] }
 0x72d   : > { %v2718_v40 = vmul.f32 %v2710_v30, %v2495_v33  ;;  %3193 = vmatpush.bf16.msrb.mxu2 %v4433_v46  ;;  %v2691_v1 = vmul.f32 %v6415_v50, %v6381_v62  ;;  %3186 = vmatpush.bf16.msrb.mxu1 %v4313_v61  ;;  %v4756_v33 = vld [vmem:[%s5663_s0 + $0x1d4] sm:$0xf]  ;;  %v2623_v15 = vsel %vm6447_vm7, %v6371_v56, %v2619_v6  ;;  %vm2636_vm12 = vweird.f32 %v6411_v3 }
 0x72e   : > { %v2633_v24 = vmul.f32 %v6411_v3, %v2632_v35  ;;  %v4481_v56 = vor.u32 %v4756_v33, %v4478_v34  ;;  %vm2685_vm13 = vcmp.eq.f32.partialorder %v2684_v25, 8.507059e+37  ;;  %v4401_v45 = vor.u32 %v4736_v38, %v4398_v23  ;;  %vm6486_vm15 = vmor %vm2635_vm11, %vm2636_vm12 }
 0x72f   : > { %v6417_v51 = vpack.c.bf16 %v2718_v40, %v2714_v39  ;;  %v2692_v16 = vsub.f32 1.0, %v2691_v1  ;;  %3207 = vmatpush.bf16.msrb.mxu3 %v4497_v63  ;;  %v2627_v39 = vor.u32 1.1754944e-38, %v2626_v20  ;;  %v2683_v40 = vsel %vm6459_vm9, %v6379_v2, %v2679_v22 }
 0x730   : > { %v2634_v46 = vadd.f32 %v6411_v3, %v2633_v24  ;;  %v2688_v2 = vsel %vm2685_vm13, %v2687_v41, %v2683_v40  ;;  %vm2696_vm14 = vweird.f32 %v6415_v50  ;;  %v2639_v11 = vand.u32 2147483647, %v6367_v53  ;;  %v4438_v40 = vld [vmem:[%s5663_s0 + $0x188] sm:$0xf0] }
 0x731   : > { %3131 = vmatmul.bf16.vlgmr.msra.gmra.mxu1 %v6417_v51  ;;  %3194 = vmatpush.bf16.msrb.mxu2 %v4425_v59  ;;  %v2693_v26 = vmul.f32 %v6415_v50, %v2692_v16  ;;  %v2628_v44 = vsel %vm2625_vm10, %v2627_v39, %v2623_v15  ;;  %v2701_v37 = vand.u32 2147483648, %v6381_v62  ;;  %v4473_v59 = vor.u32 %v4754_v42, %v4470_v43  ;;  %v4446_v15 = vld [vmem:[%s5663_s0 + $0x198] sm:$0xf0]  ;;  %v4746_v39 = vld [vmem:[%s5663_s0 + $0x184] sm:$0xf] }
 0x732   : > { %vm2695_vm0 = vweird.f32 %v6381_v62  ;;  %v2707_v9 = vmul.f32 %v2628_v44, %v6228_v54  ;;  %v2711_v61 = vmul.f32 %v2688_v2, %v6257_v32  ;;  %v2638_v10 = vsel %vm6486_vm15, %v6411_v3, %v2634_v46  ;;  %v4732_v32 = vld [vmem:[%s5663_s0 + $0x114] sm:$0xf]  ;;  %v4454_v3 = vld [vmem:[%s5663_s0 + $0x1a8] sm:$0xf0] }
 0x733   : > { %3208 = vmatpush.bf16.msrb.mxu3 %v4489_v21  ;;  %v2694_v47 = vadd.f32 %v6415_v50, %v2693_v26  ;;  %vm6498_vm1 = vmor %vm2695_vm0, %vm2696_vm14  ;;  %v2642_v12 = vor.u32 1.1754944e-38, %v2641_v48  ;;  %v4465_v16 = vor.u32 %v4752_v8, %v4462_v0  ;;  %vm2640_vm2 = vcmp.eq.f32.partialorder %v2639_v11, 8.507059e+37  ;;  %v4730_v21 = vld [vmem:[%s5663_s0 + $0x104] sm:$0xf] }
 0x734   : > { %v4457_v33 = vor.u32 %v4750_v17, %v4454_v3  ;;  %v4377_v24 = vor.u32 %v4730_v21, %v4374_v28 }
 0x735   : > { %3195 = vmatpush.bf16.msrb.mxu2 %v4417_v14  ;;  %v2698_v54 = vsel %vm6498_vm1, %v6415_v50, %v2694_v47  ;;  %v2702_v14 = vor.u32 1.1754944e-38, %v2701_v37  ;;  %v2643_v19 = vsel %vm2640_vm2, %v2642_v12, %v2638_v10  ;;  %v4999_v47 = vld [vmem:[#allocation3 + $0x10] sm:$0xff] }
 0x736   : > { %v2708_v34 = vmul.f32 %v2643_v19, %v6261_v27 }
 0x737   : > { %3209 = vmatpush.bf16.msrb.mxu3 %v4481_v56  ;;  %v4441_v56 = vor.u32 %v4746_v39, %v4438_v40 }
 0x738   : > { %3173 = vmatmul.bf16.vlgmr.msrb.gmra.mxu0 %v6400_v31  ;;  %v2699_v31 = vand.u32 2147483647, %v6381_v62  ;;  %v4393_v62 = vor.u32 %v4734_v49, %v4390_v55 }
 0x739   : > { %v2506_v29 = vpop.f32.mrf.mxu0  ;;  %v2520_v30 = vpop.f32.mrf.mxu1  ;;  %3196 = vmatpush.bf16.msrb.mxu2 %v4409_v4  ;;  %v4748_v4 = vld [vmem:[%s5663_s0 + $0x194] sm:$0xf] }
 0x73a   : > { %v2521_v57 = vadd.f32 %v2520_v30, %v2506_v29  ;;  %vm2700_vm3 = vcmp.eq.f32.partialorder %v2699_v31, 8.507059e+37  ;;  %v4449_v38 = vor.u32 %v4748_v4, %v4446_v15 }
 0x73b   : > { %3210 = vmatpush.bf16.msrb.mxu3 %v4473_v59  ;;  %v2703_v20 = vsel %vm2700_vm3, %v2702_v14, %v2698_v54 }
 0x73c   : > { %v2715_v6 = vmul.f32 %v2707_v9, %v2521_v57  ;;  %v2712_v5 = vmul.f32 %v2703_v20, %v6277_v52 }
 0x73d   : > { %3197 = vmatpush.bf16.msrb.mxu2 %v4401_v45 }
 0x73f   : > { %3211 = vmatpush.bf16.msrb.mxu3 %v4465_v16 }
 0x740   : > { %v2534_v18 = vpop.f32.mrf.mxu2  ;;  %v2548_v58 = vpop.f32.mrf.mxu3 }
 0x741   : > { %v2508_v1 = vpop.f32.mrf.mxu0  ;;  %v2522_v7 = vpop.f32.mrf.mxu1  ;;  %3187 = vmatmul.bf16.vlgmr.msrb.gmra.mxu1 %v6417_v51  ;;  %3198 = vmatpush.bf16.msrb.mxu2 %v4393_v62  ;;  %v4385_v51 = vor.u32 %v4732_v32, %v4382_v13  ;;  %v2549_v22 = vadd.f32 %v2548_v58, %v2534_v18  ;;  %v5002_v13 = vld [vmem:[#allocation3 + $0x8] sm:$0xff] }
 0x742   : > { %v2523_v63 = vadd.f32 %v2522_v7, %v2508_v1 }
 0x743   : > { %v2716_v36 = vmul.f32 %v2708_v34, %v2549_v22  ;;  %3212 = vmatpush.bf16.msrb.mxu3 %v4457_v33 }
 0x744   : > { %v2719_v35 = vmul.f32 %v2711_v61, %v2523_v63  ;;  %v5001_v61 = vld [vmem:[#allocation3] sm:$0xff] }
 0x745   : > { %3199 = vmatpush.bf16.msrb.mxu2 %v4385_v51 }
 0x746   : > { %v2723_v50 = vpack.c.bf16 %v2719_v35, %v2715_v6 }
 0x747   : > { %3213 = vmatpush.bf16.msrb.mxu3 %v4449_v38 }
 0x748   : > { %v2536_v29 = vpop.f32.mrf.mxu2  ;;  %v2550_v30 = vpop.f32.mrf.mxu3  ;;  %3145 = vmatmul.bf16.vlgmr.msra.gmra.mxu2 %v2723_v50 }
 0x749   : > { %v2551_v25 = vadd.f32 %v2550_v30, %v2536_v29  ;;  %3200 = vmatpush.bf16.msrb.mxu2 %v4377_v24 }
 0x74b   : > { %v2720_v26 = vmul.f32 %v2712_v5, %v2551_v25  ;;  %3214 = vmatpush.bf16.msrb.mxu3 %v4441_v56 }
 0x74d   : > { %v2724_v23 = vpack.c.bf16 %v2720_v26, %v2716_v36 }
 0x74f   : > { %3159 = vmatmul.bf16.vlgmr.msra.gmra.mxu3 %v2724_v23 }
 0x758   : > { %3201 = vmatmul.bf16.vlgmr.msrb.gmra.mxu2 %v2723_v50 }
 0x75f   : > { %3215 = vmatmul.bf16.vlgmr.msrb.gmra.mxu3 %v2724_v23 }
 0x7a5   : > { %v3118_v52 = vpop.f32.mrf.mxu0 }
 0x7ad   : > { %v3120_v44 = vpop.f32.mrf.mxu0 }
 0x7ae   : > { %v3132_v27 = vpop.f32.mrf.mxu1 }
 0x7af   : > { %v3133_v41 = vadd.f32 %v3132_v27, %v3118_v52 }
 0x7b5   : > { %v3174_v58 = vpop.f32.mrf.mxu0 }
 0x7b6   : > { %v3134_v42 = vpop.f32.mrf.mxu1 }
 0x7b7   : > { %v3135_v55 = vadd.f32 %v3134_v42, %v3120_v44 }
 0x7bd   : > { %v3176_v63 = vpop.f32.mrf.mxu0 }
 0x7be   : > { %v3188_v37 = vpop.f32.mrf.mxu1 }
 0x7bf   : > { %v3189_v1 = vadd.f32 %v3188_v37, %v3174_v58 }
 0x7c6   : > { %v3190_v9 = vpop.f32.mrf.mxu1 }
 0x7c7   : > { %v3191_v10 = vadd.f32 %v3190_v9, %v3176_v63 }
 0x7cb   : > { %v3146_v48 = vpop.f32.mrf.mxu2 }
 0x7cc   : > { %v3147_v43 = vadd.f32 %v3146_v48, %v3133_v41 }
 0x7d2   : > { %v3160_v45 = vpop.f32.mrf.mxu3 }
 0x7d3   : > { %v3161_v46 = vadd.f32 %v3160_v45, %v3147_v43  ;;  %v3148_v2 = vpop.f32.mrf.mxu2 }
 0x7d4   : > { %v3149_v11 = vadd.f32 %v3148_v2, %v3135_v55 }
 0x7d5   : > { %v3221_v49 = vadd.f32 %v4999_v47, %v3161_v46 }
 0x7d7   : > { %3225 = vst [vmem:[#allocation16] sm:$0xff] %v3221_v49 }
 0x7da   : > { %v3162_v57 = vpop.f32.mrf.mxu3 }
 0x7db   : > { %v3163_v18 = vadd.f32 %v3162_v57, %v3149_v11  ;;  %v3202_v59 = vpop.f32.mrf.mxu2 }
 0x7dc   : > { %v3203_v7 = vadd.f32 %v3202_v59, %v3189_v1 }
 0x7dd   : > { %v3223_v31 = vadd.f32 %v5000_v60, %v3163_v18 }
 0x7df   : > { %3227 = vst [vmem:[#allocation16 + $0x10] sm:$0xff] %v3223_v31 }
 0x7e2   : > { %v3216_v8 = vpop.f32.mrf.mxu3 }
 0x7e3   : > { %v3217_v0 = vadd.f32 %v3216_v8, %v3203_v7  ;;  %v3204_v62 = vpop.f32.mrf.mxu2 }
 0x7e4   : > { %v3205_v12 = vadd.f32 %v3204_v62, %v3191_v10 }
 0x7e5   : > { %v3222_v53 = vadd.f32 %v5001_v61, %v3217_v0 }
 0x7e7   : > { %3226 = vst [vmem:[#allocation16 + $0x8] sm:$0xff] %v3222_v53 }
 0x7ea   : > { %v3218_v54 = vpop.f32.mrf.mxu3 }
 0x7eb   : > { %v3219_v32 = vadd.f32 %v3218_v54, %v3205_v12 }
 0x7ed   : > { %v3224_v14 = vadd.f32 %v5002_v13, %v3219_v32 }
 0x7ef   : > { %3228 = vst [vmem:[#allocation16 + $0x18] sm:$0xff] %v3224_v14 }
 0x7f0 PF: > { %s6653_s21 = sld [smem:[#allocation28_spill]]  ;;  %s5366_s2 = smov [#allocation16]  }
 0x7f1   : > { %s6654_s22 = sld [smem:[#allocation44_spill]]  ;;  %s3234_s29 = sshll.u32 %s5366_s2, 4  ;;  %s3235_s29 = int_to_ptr.vmem [resolvable:$true] %s3234_s29 }
 0x7f2   : > { %s5367_s20 = smov 256   ;;  %s5368_s24 = smov 16  }
 0x7f6   : > { %p4820_p0 = scmp.eq.s32.totalorder %s6653_s21, 3 }
 0x7f7   : > { %s3236_s28 = sshll.u32 %s6654_s22, 4  ;;  %s3237_s28 = int_to_ptr.hbm [resolvable:$true] %s3236_s28 }
 0x7f8   : > { %4787 = dma.vmem_to_hbm [thread:$0]  (%p4820_p0), %s3235_s29, 512, %s3237_s28, [#allocation6], %s5367_s20, %s5367_s20, %s5368_s24  }
 0x7f9   : > { %5302 = dma.done.wait (%p4820_p0), [#allocation6], 512  }
 0x7fa   : > { %5304 = vsyncadd (%p4820_p0), [#allocation6], 4294966784 }
 0x7fb PF: > { %s30_s27 = sadd.s32 1, %s5347_s27   ;;  %s6655_s0 = sld [smem:[#allocation22_spill]] }
 0x7fc   : > { %p27_p2 = scmp.ge.s32.totalorder %s30_s27, 6   ;;  %s6656_s19 = sld [smem:[#allocation34_spill]] }
 0x7fd   : > { %s6657_s20 = sld [smem:[#allocation23_spill]]  ;;  %s6663_s17 = smov %s5311_s18 }
 0x7fe   : > { %s6658_s21 = sld [smem:[#allocation24_spill]]  ;;  %s6665_s24 = smov %s5343_s26 }
 0x7ff   : > { %s6659_s22 = sld [smem:[#allocation33_spill]] }
 0x800   : > { %s6660_s23 = sld [smem:[#allocation27_spill]] }
 0x801   : > { %s6661_s25 = sld [smem:[#allocation31_spill]]  ;;  %s6664_s18 = smov %s6655_s0 }
 0x802   : > { %s6662_s4 = sld [smem:[#allocation32_spill]] }
 0x804   :  { %29 = sbr.rel (!%p27_p2) target bundleno = 23 (0x17), region = 167 }
 0x808   : > { %s6666_s26 = smov %s6662_s4 }
 0x809   :  { %3253 = vsyncpa [#allocation5], 1 }
 0x80a   :  { %3255 = vsyncpa [#allocation5 + $0x1], 1 }
 0x80b   :  { %3256 = vsyncpa [#allocation8], 1 }
 0x80c   :  { %3257 = vsyncpa [#allocation11], 1 }
 0x80d   :  { %3259 = vsyncpa [#allocation11 + $0x1], 1 }
 0x80e   :  { %3260 = vsyncpa [#allocation14], 1 }
 0x80f   :  { %3262 = vsyncpa [#allocation14 + $0x1], 1 }
 0x810   :  { %3263 = vsyncpa [#allocation6], 1 }
 0x811   :  { %3265 = vsyncpa [#allocation6 + $0x1], 1 }

</bundles_post_ra>
